<compile_context>
chip_gen: v7x
topology: tpu7x:2x2x1
jax: 0.10.0
libtpu: 0.0.40
codegen_flags: <defaults>
</compile_context>

<pallas_src>
import functools
import math

import jax
import jax.numpy as jnp
from jax import lax
from jax.experimental import pallas as pl
from jax.experimental.pallas import tpu as pltpu


# ----------------------------------------------------------------------------
# In-kernel helpers
# ----------------------------------------------------------------------------
def _gelu_tanh(x):
    c = 0.7978845608028654  # sqrt(2/pi), GPT-2 "gelu_new"
    return 0.5 * x * (1.0 + jnp.tanh(c * (x + 0.044715 * x * x * x)))


def _layernorm(x, g, b):
    mu = jnp.mean(x, axis=-1, keepdims=True)
    var = jnp.mean((x - mu) ** 2, axis=-1, keepdims=True)
    return (x - mu) * lax.rsqrt(var + 1e-5) * g + b


# ----------------------------------------------------------------------------
# Fused ALL-layers kernel.  Grid = (n_layer,), layer axis "arbitrary".
# Per grid step (= per layer):
#   x -> ln1 -> qkv -> causal MHA (per-head, accumulated through wproj row
#   slices) + residual -> ln2 -> fc + gelu(bf16) -> mproj + residual
# The activation x is carried across layers in a VMEM scratch; per-layer
# weights arrive via BlockSpec index_map (l, 0, 0) => next layer's weights are
# prefetched while this layer computes.
# ----------------------------------------------------------------------------
def _layers_kernel(x_ref, ln1g_ref, ln1b_ref, wqkv_ref, bqkv_ref,
                   wproj_ref, bproj_ref, ln2g_ref, ln2b_ref,
                   wfc_ref, bfc_ref, wmproj_ref, bmproj_ref,
                   o_ref, x_sc, *, n_head):
    l = pl.program_id(0)

    @pl.when(l == 0)
    def _():
        x_sc[...] = x_ref[...]

    x = x_sc[...]                                       # [S, D] f32 carry
    S, D = x.shape
    Dh = D // n_head
    scale = 1.0 / math.sqrt(Dh)

    # ---- attention sub-block -------------------------------------------------
    h = _layernorm(x, ln1g_ref[...], ln1b_ref[...])     # f32 stats
    qkv = jnp.dot(h.astype(jnp.bfloat16), wqkv_ref[...],
                  preferred_element_type=jnp.float32) + bqkv_ref[...]   # [S, 3D]
    q = qkv[:, 0:D] * scale                             # fold 1/sqrt(Dh) into q
    k = qkv[:, D:2 * D]
    v = qkv[:, 2 * D:3 * D]

    # single 2-D causal mask, shared by all heads
    qi = lax.broadcasted_iota(jnp.int32, (S, S), 0)
    ki = lax.broadcasted_iota(jnp.int32, (S, S), 1)
    causal = ki <= qi

    # per-head attention accumulated through wproj row slices (no concat)
    acc = jnp.zeros((S, D), jnp.float32)
    for hh in range(n_head):                            # static head split
        lo = hh * Dh
        qh = q[:, lo:lo + Dh].astype(jnp.bfloat16)      # [S, Dh]
        kh = k[:, lo:lo + Dh].astype(jnp.bfloat16)
        vh = v[:, lo:lo + Dh].astype(jnp.bfloat16)
        # scores = qh @ kh^T without materializing a transpose
        s_h = lax.dot_general(qh, kh, (((1,), (1,)), ((), ())),
                              preferred_element_type=jnp.float32)       # [S, S]
        s_h = jnp.where(causal, s_h, -1e30)
        m = jnp.max(s_h, axis=-1, keepdims=True)
        p = jnp.exp(s_h - m)                            # f32 softmax
        p = p * pl.reciprocal(jnp.sum(p, axis=-1, keepdims=True), approx=True)
        o_h = jnp.dot(p.astype(jnp.bfloat16), vh,
                      preferred_element_type=jnp.float32)               # [S, Dh]
        acc = acc + jnp.dot(o_h.astype(jnp.bfloat16), wproj_ref[lo:lo + Dh, :],
                            preferred_element_type=jnp.float32)         # [S, D]
    x = x + acc + bproj_ref[...]                        # fused residual + bias

    # ---- MLP sub-block ---------------------------------------------------------
    h2 = _layernorm(x, ln2g_ref[...], ln2b_ref[...])
    m1 = jnp.dot(h2.astype(jnp.bfloat16), wfc_ref[...],
                 preferred_element_type=jnp.float32) + bfc_ref[...]     # f32 bias
    m1 = _gelu_tanh(m1.astype(jnp.bfloat16))            # bf16 VPU/EUP gelu
    x = x + jnp.dot(m1, wmproj_ref[...],
                    preferred_element_type=jnp.float32) + bmproj_ref[...]

    x_sc[...] = x                                       # carry to next layer
    o_ref[...] = x                                      # resident output block


def pallas_transformer_layers(x, p, n_head):
    S, D = x.shape
    L = p["w_qkv"].shape[0]
    kernel = functools.partial(_layers_kernel, n_head=n_head)
    lspec = lambda shape: pl.BlockSpec(shape, lambda l: (l, 0, 0))
    return pl.pallas_call(
        kernel,
        out_shape=jax.ShapeDtypeStruct((S, D), jnp.float32),
        grid_spec=pltpu.PrefetchScalarGridSpec(
            num_scalar_prefetch=0,
            grid=(L,),
            in_specs=[
                pl.BlockSpec((S, D), lambda l: (0, 0)),     # x (resident, read @ l==0)
                lspec((None, 1, D)),                        # ln1_g
                lspec((None, 1, D)),                        # ln1_b
                lspec((None, D, 3 * D)),                    # w_qkv  (prefetched per layer)
                lspec((None, 1, 3 * D)),                    # b_qkv
                lspec((None, D, D)),                        # w_proj
                lspec((None, 1, D)),                        # b_proj
                lspec((None, 1, D)),                        # ln2_g
                lspec((None, 1, D)),                        # ln2_b
                lspec((None, D, 4 * D)),                    # w_fc
                lspec((None, 1, 4 * D)),                    # b_fc
                lspec((None, 4 * D, D)),                    # w_mproj
                lspec((None, 1, D)),                        # b_mproj
            ],
            out_specs=pl.BlockSpec((S, D), lambda l: (0, 0)),
            scratch_shapes=[pltpu.VMEM((S, D), jnp.float32)],   # x carry across layers
        ),
        compiler_params=pltpu.CompilerParams(
            dimension_semantics=("arbitrary",),             # sequential layer dependency
            vmem_limit_bytes=48 * 1024 * 1024,              # < v7x 64 MiB physical
        ),
    )(x, p["ln1_g"], p["ln1_b"], p["w_qkv"], p["b_qkv"], p["w_proj"], p["b_proj"],
      p["ln2_g"], p["ln2_b"], p["w_fc"], p["b_fc"], p["w_mproj"], p["b_mproj"])


# ----------------------------------------------------------------------------
# Fused tail kernel: final layernorm (computed ONCE, cached in VMEM scratch) +
# last-token LM head tiled over the vocab (wte rows streamed, never transposed)
# + online log-sum-exp + verbalizer gather.
#   predictions[i] = logits_last[ids[i]] - logsumexp(logits_last)
# The module returns the normalized log-probs themselves, so the full-vocab
# logsumexp pass is kept (the argmax-only shortcut would change the outputs).
# ----------------------------------------------------------------------------
def _lmhead_verbalize_kernel(ids_ref, x_ref, g_ref, b_ref, wte_ref, pred_ref,
                             h_sc, m_sc, l_sc, gath_sc, *, tile_v, vocab_size):
    j = pl.program_id(0)

    @pl.when(j == 0)
    def _():
        # final layernorm hoisted out of the vocab loop
        h_sc[...] = _layernorm(x_ref[...], g_ref[...], b_ref[...]).astype(jnp.bfloat16)
        m_sc[...] = jnp.full_like(m_sc, -jnp.inf)
        l_sc[...] = jnp.zeros_like(l_sc)
        gath_sc[...] = jnp.zeros_like(gath_sc)

    h = h_sc[...]                                        # [1, D] bf16

    # logits tile = h @ wte_tile^T; wte rows streamed, no transpose materialized
    logits = lax.dot_general(h, wte_ref[...], (((1,), (1,)), ((), ())),
                             preferred_element_type=jnp.float32)   # [1, tile_v]

    lane = lax.broadcasted_iota(jnp.int32, logits.shape, 1) + j * tile_v
    logits = jnp.where(lane < vocab_size, logits, -1e30)  # mask vocab padding rows

    # online log-sum-exp across vocab tiles
    m_prev = m_sc[...]
    m_new = jnp.maximum(m_prev, jnp.max(logits, axis=-1, keepdims=True))
    l_sc[...] = l_sc[...] * jnp.exp(m_prev - m_new) + jnp.sum(
        jnp.exp(logits - m_new), axis=-1, keepdims=True)
    m_sc[...] = m_new

    # gather the verbalizer token logits that live in this tile
    num_labels = pred_ref.shape[1]
    lab_iota = lax.broadcasted_iota(jnp.int32, (1, num_labels), 1)
    for i in range(num_labels):                          # static, small
        tid = ids_ref[i]
        val = jnp.sum(jnp.where(lane == tid, logits, 0.0))
        gath_sc[...] += jnp.where(lab_iota == i, val, 0.0)

    @pl.when(j == pl.num_programs(0) - 1)
    def _():
        pred_ref[...] = gath_sc[...] - (m_sc[...] + jnp.log(l_sc[...]))


def pallas_lmhead_verbalize(x_last, lnf_g, lnf_b, wte_bf16, verbalizer_ids,
                            vocab_size, tile_v):
    D = x_last.shape[1]
    v_pad = wte_bf16.shape[0]
    assert v_pad % tile_v == 0, "wte padding and tile_v must share a constant"
    n_tiles = v_pad // tile_v
    num_labels = verbalizer_ids.shape[0]
    kernel = functools.partial(_lmhead_verbalize_kernel,
                               tile_v=tile_v, vocab_size=vocab_size)
    return pl.pallas_call(
        kernel,
        out_shape=jax.ShapeDtypeStruct((1, num_labels), jnp.float32),
        grid_spec=pltpu.PrefetchScalarGridSpec(
            num_scalar_prefetch=1,
            grid=(n_tiles,),
            in_specs=[
                pl.BlockSpec((1, D), lambda j, ids: (0, 0)),        # x_last
                pl.BlockSpec((1, D), lambda j, ids: (0, 0)),        # lnf gamma
                pl.BlockSpec((1, D), lambda j, ids: (0, 0)),        # lnf beta
                pl.BlockSpec((tile_v, D), lambda j, ids: (j, 0)),   # wte row tile
            ],
            out_specs=pl.BlockSpec((1, num_labels), lambda j, ids: (0, 0)),
            scratch_shapes=[
                pltpu.VMEM((1, D), jnp.bfloat16),           # cached layernormed h
                pltpu.VMEM((1, 1), jnp.float32),            # running max
                pltpu.VMEM((1, 1), jnp.float32),            # running sum-exp
                pltpu.VMEM((1, num_labels), jnp.float32),   # gathered logits
            ],
        ),
        compiler_params=pltpu.CompilerParams(
            dimension_semantics=("arbitrary",),             # vocab axis is a reduction
            vmem_limit_bytes=32 * 1024 * 1024,              # 2*tile_v*D*2B fits easily
        ),
    )(verbalizer_ids, x_last, lnf_g, lnf_b, wte_bf16)


# ----------------------------------------------------------------------------
# Small GPT-2-style causal LM with stacked [L, ...] weights (bf16 matmul
# weights, f32 LN params / biases).  wte is padded to a multiple of the
# LM-head vocab tile — padding and tile derived from the SAME constant.
# ----------------------------------------------------------------------------
def init_gpt2_params(key, vocab, hidden, max_seq, n_layer, tile_v):
    scale = 0.02
    v_pad = ((vocab + tile_v - 1) // tile_v) * tile_v
    keys = jax.random.split(key, 6)

    def w(k, shape):
        return (scale * jax.random.normal(k, shape, jnp.float32)).astype(jnp.bfloat16)

    wte = scale * jax.random.normal(keys[0], (vocab, hidden), jnp.float32)
    wte_pad = jnp.zeros((v_pad, hidden), jnp.float32).at[:vocab].set(wte)
    return {
        "wte": wte_pad.astype(jnp.bfloat16),               # [V_pad, D]; never transposed
        "wpe": scale * jax.random.normal(keys[1], (max_seq, hidden), jnp.float32),
        "lnf_g": jnp.ones((1, hidden), jnp.float32),
        "lnf_b": jnp.zeros((1, hidden), jnp.float32),
        "ln1_g": jnp.ones((n_layer, 1, hidden), jnp.float32),
        "ln1_b": jnp.zeros((n_layer, 1, hidden), jnp.float32),
        "w_qkv": w(keys[2], (n_layer, hidden, 3 * hidden)),
        "b_qkv": jnp.zeros((n_layer, 1, 3 * hidden), jnp.float32),
        "w_proj": w(keys[3], (n_layer, hidden, hidden)),
        "b_proj": jnp.zeros((n_layer, 1, hidden), jnp.float32),
        "ln2_g": jnp.ones((n_layer, 1, hidden), jnp.float32),
        "ln2_b": jnp.zeros((n_layer, 1, hidden), jnp.float32),
        "w_fc": w(keys[4], (n_layer, hidden, 4 * hidden)),
        "b_fc": jnp.zeros((n_layer, 1, 4 * hidden), jnp.float32),
        "w_mproj": w(keys[5], (n_layer, 4 * hidden, hidden)),
        "b_mproj": jnp.zeros((n_layer, 1, hidden), jnp.float32),
    }


# ----------------------------------------------------------------------------
# GPT2Wrapper.forward equivalent (single-token verbalizer branch)
# ----------------------------------------------------------------------------
def gpt2_wrapper_forward(params, token_ids, verbalizer_ids, *, n_head,
                         vocab_size, tile_v):
    # TODO(synk): tokenizer(input_sentence)['input_ids'] replaced by token_ids.
    S = token_ids.shape[0]
    x = (jnp.take(params["wte"], token_ids, axis=0).astype(jnp.float32)
         + params["wpe"][:S])                                 # tiny XLA glue gather

    # all transformer layers in ONE pallas_call (layer-axis grid, weight DMA
    # for layer l+1 prefetched behind layer l's compute)
    x = pallas_transformer_layers(x, params, n_head)

    x_last = x[S - 1:S, :]                                    # last token only [1, D]
    predictions = pallas_lmhead_verbalize(
        x_last, params["lnf_g"], params["lnf_b"], params["wte"],
        verbalizer_ids, vocab_size, tile_v)[0]                # [num_labels]
    prediction = jnp.argmax(predictions, axis=-1)[None]       # shape [1]
    return prediction, predictions


if __name__ == "__main__":
    VOCAB = 4000          # padded to 4096 = 2 vocab tiles -> exercises online LSE
    HIDDEN = 128          # lane-dense (multiple of 128)
    N_HEAD = 4            # Dh = 32
    N_LAYER = 2
    SEQ = 16
    NUM_LABELS = 2
    TILE_V = 2048         # LM-head vocab tile (>= 2048 per perf review)

    key = jax.random.PRNGKey(0)
    k_params, k_tokens = jax.random.split(key)

    params = init_gpt2_params(k_params, VOCAB, HIDDEN, SEQ, N_LAYER, TILE_V)
    token_ids = jax.random.randint(k_tokens, (SEQ,), 0, VOCAB, dtype=jnp.int32)
    verbalizer_ids = jnp.array([5, 17], dtype=jnp.int32)   # single-token verbalizer

    fwd = jax.jit(functools.partial(gpt2_wrapper_forward, n_head=N_HEAD,
                                    vocab_size=VOCAB, tile_v=TILE_V))
    prediction, predictions = fwd(params, token_ids, verbalizer_ids)
    jax.block_until_ready((prediction, predictions))

    assert prediction.shape == (1,)
    assert predictions.shape == (NUM_LABELS,)
    assert bool(jnp.all(jnp.isfinite(predictions)))
    assert 0 <= int(prediction[0]) < NUM_LABELS
    print("KERNEL_OK")
</pallas_src>

<mosaic_0001>
module attributes {stable_mosaic.version = 11 : i64} {
  func.func @_lmhead_verbalize_kernel(%arg0: i32, %arg1: memref<2xi32, #tpu.memory_space<smem>>, %arg2: memref<1x128xf32, #tpu.memory_space<vmem>>, %arg3: memref<1x128xf32, #tpu.memory_space<vmem>>, %arg4: memref<1x128xf32, #tpu.memory_space<vmem>>, %arg5: memref<2048x128xbf16, #tpu.memory_space<vmem>>, %arg6: memref<1x2xf32, #tpu.memory_space<vmem>>, %arg7: memref<1x128xbf16, #tpu.memory_space<vmem>>, %arg8: memref<1x1xf32, #tpu.memory_space<vmem>>, %arg9: memref<1x1xf32, #tpu.memory_space<vmem>>, %arg10: memref<1x2xf32, #tpu.memory_space<vmem>>) attributes {dimension_semantics = [#tpu.dimension_semantics<arbitrary>], iteration_bounds = array<i64: 2>, scalar_prefetch = 1 : i64, scratch_operands = 4 : i64, tpu.core_type = #tpu.core_type<tc>, window_params = [{pipeline_mode = #tpu.pipeline_mode<synchronous>, transform_indices = @transform_0, window_bounds = array<i64: 1, 128>}, {pipeline_mode = #tpu.pipeline_mode<synchronous>, transform_indices = @transform_1, window_bounds = array<i64: 1, 128>}, {pipeline_mode = #tpu.pipeline_mode<synchronous>, transform_indices = @transform_2, window_bounds = array<i64: 1, 128>}, {transform_indices = @transform_3, window_bounds = array<i64: 2048, 128>}, {pipeline_mode = #tpu.pipeline_mode<synchronous>, transform_indices = @transform_4, window_bounds = array<i64: 1, 2>}]} {
    %c0_i32 = arith.constant 0 : i32
    %0 = arith.cmpi eq, %arg0, %c0_i32 : i32
    %1 = arith.extui %0 : i1 to i32
    %c0_i32_0 = arith.constant 0 : i32
    %2 = arith.cmpi ne, %1, %c0_i32_0 : i32
    scf.if %2 {
      %c0_33 = arith.constant 0 : index
      %c0_34 = arith.constant 0 : index
      %68 = vector.load %arg2[%c0_33, %c0_34] : memref<1x128xf32, #tpu.memory_space<vmem>>, vector<1x128xf32>
      %c0_35 = arith.constant 0 : index
      %c0_36 = arith.constant 0 : index
      %69 = vector.load %arg3[%c0_35, %c0_36] : memref<1x128xf32, #tpu.memory_space<vmem>>, vector<1x128xf32>
      %c0_37 = arith.constant 0 : index
      %c0_38 = arith.constant 0 : index
      %70 = vector.load %arg4[%c0_37, %c0_38] : memref<1x128xf32, #tpu.memory_space<vmem>>, vector<1x128xf32>
      %cst_39 = arith.constant dense<0.000000e+00> : vector<1xf32>
      %71 = vector.multi_reduction <add>, %68, %cst_39 [1] : vector<1x128xf32> to vector<1xf32>
      %72 = vector.shape_cast %71 : vector<1xf32> to vector<1x1xf32>
      %cst_40 = arith.constant 1.280000e+02 : f32
      %73 = vector.broadcast %cst_40 : f32 to vector<1x1xf32>
      %74 = arith.divf %72, %73 : vector<1x1xf32>
      %75 = vector.broadcast %74 : vector<1x1xf32> to vector<1x128xf32>
      %76 = arith.subf %68, %75 : vector<1x128xf32>
      %77 = arith.mulf %76, %76 : vector<1x128xf32>
      %cst_41 = arith.constant dense<0.000000e+00> : vector<1xf32>
      %78 = vector.multi_reduction <add>, %77, %cst_41 [1] : vector<1x128xf32> to vector<1xf32>
      %79 = vector.shape_cast %78 : vector<1xf32> to vector<1x1xf32>
      %cst_42 = arith.constant 1.280000e+02 : f32
      %80 = vector.broadcast %cst_42 : f32 to vector<1x1xf32>
      %81 = arith.divf %79, %80 : vector<1x1xf32>
      %82 = vector.broadcast %74 : vector<1x1xf32> to vector<1x128xf32>
      %83 = arith.subf %68, %82 : vector<1x128xf32>
      %cst_43 = arith.constant 9.99999974E-6 : f32
      %84 = vector.broadcast %cst_43 : f32 to vector<1x1xf32>
      %85 = arith.addf %81, %84 : vector<1x1xf32>
      %86 = math.rsqrt %85 : vector<1x1xf32>
      %87 = vector.broadcast %86 : vector<1x1xf32> to vector<1x128xf32>
      %88 = arith.mulf %83, %87 : vector<1x128xf32>
      %89 = arith.mulf %88, %69 : vector<1x128xf32>
      %90 = arith.addf %89, %70 : vector<1x128xf32>
      %91 = arith.truncf %90 : vector<1x128xf32> to vector<1x128xbf16>
      %c0_44 = arith.constant 0 : index
      %c0_45 = arith.constant 0 : index
      %92 = vector.load %arg7[%c0_44, %c0_45] : memref<1x128xbf16, #tpu.memory_space<vmem>>, vector<1x128xbf16>
      tpu.vector_store %arg7[%c0_44, %c0_45], %91 {strides = array<i32>} : memref<1x128xbf16, #tpu.memory_space<vmem>>, vector<1x128xbf16>,
      %cst_46 = arith.constant 0xFF800000 : f32
      %93 = vector.broadcast %cst_46 : f32 to vector<1x1xf32>
      %c0_47 = arith.constant 0 : index
      %c0_48 = arith.constant 0 : index
      %94 = vector.load %arg8[%c0_47, %c0_48] : memref<1x1xf32, #tpu.memory_space<vmem>>, vector<1x1xf32>
      tpu.vector_store %arg8[%c0_47, %c0_48], %93 {strides = array<i32>} : memref<1x1xf32, #tpu.memory_space<vmem>>, vector<1x1xf32>,
      %cst_49 = arith.constant 0.000000e+00 : f32
      %95 = vector.broadcast %cst_49 : f32 to vector<1x1xf32>
      %c0_50 = arith.constant 0 : index
      %c0_51 = arith.constant 0 : index
      %96 = vector.load %arg9[%c0_50, %c0_51] : memref<1x1xf32, #tpu.memory_space<vmem>>, vector<1x1xf32>
      tpu.vector_store %arg9[%c0_50, %c0_51], %95 {strides = array<i32>} : memref<1x1xf32, #tpu.memory_space<vmem>>, vector<1x1xf32>,
      %cst_52 = arith.constant 0.000000e+00 : f32
      %97 = vector.broadcast %cst_52 : f32 to vector<1x2xf32>
      %c0_53 = arith.constant 0 : index
      %c0_54 = arith.constant 0 : index
      %98 = vector.load %arg10[%c0_53, %c0_54] : memref<1x2xf32, #tpu.memory_space<vmem>>, vector<1x2xf32>
      tpu.vector_store %arg10[%c0_53, %c0_54], %97 {strides = array<i32>} : memref<1x2xf32, #tpu.memory_space<vmem>>, vector<1x2xf32>,
    } else {
    }
    %c0 = arith.constant 0 : index
    %c0_1 = arith.constant 0 : index
    %3 = vector.load %arg7[%c0, %c0_1] : memref<1x128xbf16, #tpu.memory_space<vmem>>, vector<1x128xbf16>
    %c0_2 = arith.constant 0 : index
    %c0_3 = arith.constant 0 : index
    %4 = vector.load %arg5[%c0_2, %c0_3] : memref<2048x128xbf16, #tpu.memory_space<vmem>>, vector<2048x128xbf16>
    %cst = arith.constant dense<0.000000e+00> : vector<1x2048xf32>
    %5 = tpu.matmul %3, %4, %cst {dimension_numbers = #tpu.dot_dimension_numbers<[1], [1], [0], [0], [0, 0, 1, 0], [], []>} : vector<1x128xbf16>, vector<2048x128xbf16>, vector<1x2048xf32> -> vector<1x2048xf32>
    %6 = tpu.iota {dimensions = array<i32: 1>} : vector<1x2048xi32>
    %c2048_i32 = arith.constant 2048 : i32
    %7 = arith.muli %arg0, %c2048_i32 : i32
    %8 = vector.broadcast %7 : i32 to vector<1x2048xi32>
    %9 = arith.addi %6, %8 : vector<1x2048xi32>
    %c4000_i32 = arith.constant 4000 : i32
    %10 = vector.broadcast %c4000_i32 : i32 to vector<1x2048xi32>
    %11 = arith.cmpi slt, %9, %10 : vector<1x2048xi32>
    %cst_4 = arith.constant -1.000000e+30 : f32
    %12 = vector.broadcast %cst_4 : f32 to vector<1x2048xf32>
    %13 = arith.select %11, %5, %12 : vector<1x2048xi1>, vector<1x2048xf32>
    %c0_5 = arith.constant 0 : index
    %c0_6 = arith.constant 0 : index
    %14 = vector.load %arg8[%c0_5, %c0_6] : memref<1x1xf32, #tpu.memory_space<vmem>>, vector<1x1xf32>
    %cst_7 = arith.constant dense<0xFF800000> : vector<1xf32>
    %15 = vector.multi_reduction <maximumf>, %13, %cst_7 [1] : vector<1x2048xf32> to vector<1xf32>
    %16 = vector.shape_cast %15 : vector<1xf32> to vector<1x1xf32>
    %17 = arith.maximumf %14, %16 : vector<1x1xf32>
    %c0_8 = arith.constant 0 : index
    %c0_9 = arith.constant 0 : index
    %18 = vector.load %arg9[%c0_8, %c0_9] : memref<1x1xf32, #tpu.memory_space<vmem>>, vector<1x1xf32>
    %19 = arith.subf %14, %17 : vector<1x1xf32>
    %20 = math.exp %19 : vector<1x1xf32>
    %21 = arith.mulf %18, %20 : vector<1x1xf32>
    %22 = vector.broadcast %17 : vector<1x1xf32> to vector<1x2048xf32>
    %23 = arith.subf %13, %22 : vector<1x2048xf32>
    %24 = math.exp %23 : vector<1x2048xf32>
    %cst_10 = arith.constant dense<0.000000e+00> : vector<1xf32>
    %25 = vector.multi_reduction <add>, %24, %cst_10 [1] : vector<1x2048xf32> to vector<1xf32>
    %26 = vector.shape_cast %25 : vector<1xf32> to vector<1x1xf32>
    %27 = arith.addf %21, %26 : vector<1x1xf32>
    %c0_11 = arith.constant 0 : index
    %c0_12 = arith.constant 0 : index
    %28 = vector.load %arg9[%c0_11, %c0_12] : memref<1x1xf32, #tpu.memory_space<vmem>>, vector<1x1xf32>
    tpu.vector_store %arg9[%c0_11, %c0_12], %27 {strides = array<i32>} : memref<1x1xf32, #tpu.memory_space<vmem>>, vector<1x1xf32>,
    %c0_13 = arith.constant 0 : index
    %c0_14 = arith.constant 0 : index
    %29 = vector.load %arg8[%c0_13, %c0_14] : memref<1x1xf32, #tpu.memory_space<vmem>>, vector<1x1xf32>
    tpu.vector_store %arg8[%c0_13, %c0_14], %17 {strides = array<i32>} : memref<1x1xf32, #tpu.memory_space<vmem>>, vector<1x1xf32>,
    %30 = tpu.iota {dimensions = array<i32: 1>} : vector<1x2xi32>
    %c0_15 = arith.constant 0 : index
    %31 = memref.load %arg1[%c0_15] : memref<2xi32, #tpu.memory_space<smem>>
    %32 = vector.broadcast %31 : i32 to vector<1x2048xi32>
    %33 = arith.cmpi eq, %9, %32 : vector<1x2048xi32>
    %cst_16 = arith.constant 0.000000e+00 : f32
    %34 = vector.broadcast %cst_16 : f32 to vector<1x2048xf32>
    %35 = arith.select %33, %13, %34 : vector<1x2048xi1>, vector<1x2048xf32>
    %36 = vector.shape_cast %35 : vector<1x2048xf32> to vector<1x1x2048xf32>
    %cst_17 = arith.constant dense<0.000000e+00> : vector<1xf32>
    %37 = vector.multi_reduction <add>, %36, %cst_17 [1, 2] : vector<1x1x2048xf32> to vector<1xf32>
    %38 = vector.shape_cast %37 : vector<1xf32> to vector<1x1x1xf32>
    %39 = vector.extract %38[0, 0, 0] : f32 from vector<1x1x1xf32>
    %c0_18 = arith.constant 0 : index
    %c0_19 = arith.constant 0 : index
    %40 = vector.load %arg10[%c0_18, %c0_19] : memref<1x2xf32, #tpu.memory_space<vmem>>, vector<1x2xf32>
    %c0_i32_20 = arith.constant 0 : i32
    %41 = vector.broadcast %c0_i32_20 : i32 to vector<1x2xi32>
    %42 = arith.cmpi eq, %30, %41 : vector<1x2xi32>
    %cst_21 = arith.constant 0.000000e+00 : f32
    %43 = vector.broadcast %39 : f32 to vector<1x2xf32>
    %44 = vector.broadcast %cst_21 : f32 to vector<1x2xf32>
    %45 = arith.select %42, %43, %44 : vector<1x2xi1>, vector<1x2xf32>
    %46 = arith.addf %40, %45 : vector<1x2xf32>
    %c0_22 = arith.constant 0 : index
    %c0_23 = arith.constant 0 : index
    %47 = vector.load %arg10[%c0_22, %c0_23] : memref<1x2xf32, #tpu.memory_space<vmem>>, vector<1x2xf32>
    tpu.vector_store %arg10[%c0_22, %c0_23], %46 {strides = array<i32>} : memref<1x2xf32, #tpu.memory_space<vmem>>, vector<1x2xf32>,
    %c1 = arith.constant 1 : index
    %48 = memref.load %arg1[%c1] : memref<2xi32, #tpu.memory_space<smem>>
    %49 = vector.broadcast %48 : i32 to vector<1x2048xi32>
    %50 = arith.cmpi eq, %9, %49 : vector<1x2048xi32>
    %cst_24 = arith.constant 0.000000e+00 : f32
    %51 = vector.broadcast %cst_24 : f32 to vector<1x2048xf32>
    %52 = arith.select %50, %13, %51 : vector<1x2048xi1>, vector<1x2048xf32>
    %53 = vector.shape_cast %52 : vector<1x2048xf32> to vector<1x1x2048xf32>
    %cst_25 = arith.constant dense<0.000000e+00> : vector<1xf32>
    %54 = vector.multi_reduction <add>, %53, %cst_25 [1, 2] : vector<1x1x2048xf32> to vector<1xf32>
    %55 = vector.shape_cast %54 : vector<1xf32> to vector<1x1x1xf32>
    %56 = vector.extract %55[0, 0, 0] : f32 from vector<1x1x1xf32>
    %c0_26 = arith.constant 0 : index
    %c0_27 = arith.constant 0 : index
    %57 = vector.load %arg10[%c0_26, %c0_27] : memref<1x2xf32, #tpu.memory_space<vmem>>, vector<1x2xf32>
    %c1_i32 = arith.constant 1 : i32
    %58 = vector.broadcast %c1_i32 : i32 to vector<1x2xi32>
    %59 = arith.cmpi eq, %30, %58 : vector<1x2xi32>
    %cst_28 = arith.constant 0.000000e+00 : f32
    %60 = vector.broadcast %56 : f32 to vector<1x2xf32>
    %61 = vector.broadcast %cst_28 : f32 to vector<1x2xf32>
    %62 = arith.select %59, %60, %61 : vector<1x2xi1>, vector<1x2xf32>
    %63 = arith.addf %57, %62 : vector<1x2xf32>
    %c0_29 = arith.constant 0 : index
    %c0_30 = arith.constant 0 : index
    %64 = vector.load %arg10[%c0_29, %c0_30] : memref<1x2xf32, #tpu.memory_space<vmem>>, vector<1x2xf32>
    tpu.vector_store %arg10[%c0_29, %c0_30], %63 {strides = array<i32>} : memref<1x2xf32, #tpu.memory_space<vmem>>, vector<1x2xf32>,
    %c1_i32_31 = arith.constant 1 : i32
    %65 = arith.cmpi eq, %arg0, %c1_i32_31 : i32
    %66 = arith.extui %65 : i1 to i32
    %c0_i32_32 = arith.constant 0 : i32
    %67 = arith.cmpi ne, %66, %c0_i32_32 : i32
    scf.if %67 {
      %c0_33 = arith.constant 0 : index
      %c0_34 = arith.constant 0 : index
      %68 = vector.load %arg10[%c0_33, %c0_34] : memref<1x2xf32, #tpu.memory_space<vmem>>, vector<1x2xf32>
      %c0_35 = arith.constant 0 : index
      %c0_36 = arith.constant 0 : index
      %69 = vector.load %arg8[%c0_35, %c0_36] : memref<1x1xf32, #tpu.memory_space<vmem>>, vector<1x1xf32>
      %c0_37 = arith.constant 0 : index
      %c0_38 = arith.constant 0 : index
      %70 = vector.load %arg9[%c0_37, %c0_38] : memref<1x1xf32, #tpu.memory_space<vmem>>, vector<1x1xf32>
      %71 = math.log %70 : vector<1x1xf32>
      %72 = arith.addf %69, %71 : vector<1x1xf32>
      %73 = vector.broadcast %72 : vector<1x1xf32> to vector<1x2xf32>
      %74 = arith.subf %68, %73 : vector<1x2xf32>
      %c0_39 = arith.constant 0 : index
      %c0_40 = arith.constant 0 : index
      %75 = vector.load %arg6[%c0_39, %c0_40] : memref<1x2xf32, #tpu.memory_space<vmem>>, vector<1x2xf32>
      tpu.vector_store %arg6[%c0_39, %c0_40], %74 {strides = array<i32>} : memref<1x2xf32, #tpu.memory_space<vmem>>, vector<1x2xf32>,
    } else {
    }
    return
  }
  func.func @transform_0(%arg0: i32, %arg1: memref<2xi32, #tpu.memory_space<smem>>) -> (i32, i32) {
    %c0_i32 = arith.constant 0 : i32
    %c0_i32_0 = arith.constant 0 : i32
    %c0_i32_1 = arith.constant 0 : i32
    return %c0_i32, %c0_i32_0 : i32, i32
  }
  func.func @transform_1(%arg0: i32, %arg1: memref<2xi32, #tpu.memory_space<smem>>) -> (i32, i32) {
    %c0_i32 = arith.constant 0 : i32
    %c0_i32_0 = arith.constant 0 : i32
    %c0_i32_1 = arith.constant 0 : i32
    return %c0_i32, %c0_i32_0 : i32, i32
  }
  func.func @transform_2(%arg0: i32, %arg1: memref<2xi32, #tpu.memory_space<smem>>) -> (i32, i32) {
    %c0_i32 = arith.constant 0 : i32
    %c0_i32_0 = arith.constant 0 : i32
    %c0_i32_1 = arith.constant 0 : i32
    return %c0_i32, %c0_i32_0 : i32, i32
  }
  func.func @transform_3(%arg0: i32, %arg1: memref<2xi32, #tpu.memory_space<smem>>) -> (i32, i32) {
    %c0_i32 = arith.constant 0 : i32
    %c0_i32_0 = arith.constant 0 : i32
    return %arg0, %c0_i32 : i32, i32
  }
  func.func @transform_4(%arg0: i32, %arg1: memref<2xi32, #tpu.memory_space<smem>>) -> (i32, i32) {
    %c0_i32 = arith.constant 0 : i32
    %c0_i32_0 = arith.constant 0 : i32
    %c0_i32_1 = arith.constant 0 : i32
    return %c0_i32, %c0_i32_0 : i32, i32
  }
}

module attributes {stable_mosaic.version = 11 : i64} {
  func.func @_layers_kernel(%arg0: i32, %arg1: memref<16x128xf32, #tpu.memory_space<vmem>>, %arg2: memref<1x1x128xf32, #tpu.memory_space<vmem>>, %arg3: memref<1x1x128xf32, #tpu.memory_space<vmem>>, %arg4: memref<1x128x384xbf16, #tpu.memory_space<vmem>>, %arg5: memref<1x1x384xf32, #tpu.memory_space<vmem>>, %arg6: memref<1x128x128xbf16, #tpu.memory_space<vmem>>, %arg7: memref<1x1x128xf32, #tpu.memory_space<vmem>>, %arg8: memref<1x1x128xf32, #tpu.memory_space<vmem>>, %arg9: memref<1x1x128xf32, #tpu.memory_space<vmem>>, %arg10: memref<1x128x512xbf16, #tpu.memory_space<vmem>>, %arg11: memref<1x1x512xf32, #tpu.memory_space<vmem>>, %arg12: memref<1x512x128xbf16, #tpu.memory_space<vmem>>, %arg13: memref<1x1x128xf32, #tpu.memory_space<vmem>>, %arg14: memref<16x128xf32, #tpu.memory_space<vmem>>, %arg15: memref<16x128xf32, #tpu.memory_space<vmem>>) attributes {dimension_semantics = [#tpu.dimension_semantics<arbitrary>], iteration_bounds = array<i64: 2>, scalar_prefetch = 0 : i64, scratch_operands = 1 : i64, tpu.core_type = #tpu.core_type<tc>, window_params = [{pipeline_mode = #tpu.pipeline_mode<synchronous>, transform_indices = @transform_0, window_bounds = array<i64: 16, 128>}, {transform_indices = @transform_1, window_bounds = array<i64: 1, 1, 128>}, {transform_indices = @transform_2, window_bounds = array<i64: 1, 1, 128>}, {transform_indices = @transform_3, window_bounds = array<i64: 1, 128, 384>}, {transform_indices = @transform_4, window_bounds = array<i64: 1, 1, 384>}, {transform_indices = @transform_5, window_bounds = array<i64: 1, 128, 128>}, {transform_indices = @transform_6, window_bounds = array<i64: 1, 1, 128>}, {transform_indices = @transform_7, window_bounds = array<i64: 1, 1, 128>}, {transform_indices = @transform_8, window_bounds = array<i64: 1, 1, 128>}, {transform_indices = @transform_9, window_bounds = array<i64: 1, 128, 512>}, {transform_indices = @transform_10, window_bounds = array<i64: 1, 1, 512>}, {transform_indices = @transform_11, window_bounds = array<i64: 1, 512, 128>}, {transform_indices = @transform_12, window_bounds = array<i64: 1, 1, 128>}, {pipeline_mode = #tpu.pipeline_mode<synchronous>, transform_indices = @transform_13, window_bounds = array<i64: 16, 128>}]} {
    %c0_i32 = arith.constant 0 : i32
    %0 = arith.cmpi eq, %arg0, %c0_i32 : i32
    %1 = arith.extui %0 : i1 to i32
    %c0_i32_0 = arith.constant 0 : i32
    %2 = arith.cmpi ne, %1, %c0_i32_0 : i32
    scf.if %2 {
      %c0_90 = arith.constant 0 : index
      %c0_91 = arith.constant 0 : index
      %214 = vector.load %arg1[%c0_90, %c0_91] : memref<16x128xf32, #tpu.memory_space<vmem>>, vector<16x128xf32>
      %c0_92 = arith.constant 0 : index
      %c0_93 = arith.constant 0 : index
      %215 = vector.load %arg15[%c0_92, %c0_93] : memref<16x128xf32, #tpu.memory_space<vmem>>, vector<16x128xf32>
      tpu.vector_store %arg15[%c0_92, %c0_93], %214 {strides = array<i32>} : memref<16x128xf32, #tpu.memory_space<vmem>>, vector<16x128xf32>,
    } else {
    }
    %c0 = arith.constant 0 : index
    %c0_1 = arith.constant 0 : index
    %3 = vector.load %arg15[%c0, %c0_1] : memref<16x128xf32, #tpu.memory_space<vmem>>, vector<16x128xf32>
    %c0_2 = arith.constant 0 : index
    %c0_3 = arith.constant 0 : index
    %c0_4 = arith.constant 0 : index
    %4 = vector.load %arg2[%c0_2, %c0_3, %c0_4] : memref<1x1x128xf32, #tpu.memory_space<vmem>>, vector<1x1x128xf32>
    %5 = vector.shape_cast %4 : vector<1x1x128xf32> to vector<1x128xf32>
    %c0_5 = arith.constant 0 : index
    %c0_6 = arith.constant 0 : index
    %c0_7 = arith.constant 0 : index
    %6 = vector.load %arg3[%c0_5, %c0_6, %c0_7] : memref<1x1x128xf32, #tpu.memory_space<vmem>>, vector<1x1x128xf32>
    %7 = vector.shape_cast %6 : vector<1x1x128xf32> to vector<1x128xf32>
    %cst = arith.constant dense<0.000000e+00> : vector<16xf32>
    %8 = vector.multi_reduction <add>, %3, %cst [1] : vector<16x128xf32> to vector<16xf32>
    %9 = vector.shape_cast %8 : vector<16xf32> to vector<16x1xf32>
    %cst_8 = arith.constant 1.280000e+02 : f32
    %10 = vector.broadcast %cst_8 : f32 to vector<16x1xf32>
    %11 = arith.divf %9, %10 : vector<16x1xf32>
    %12 = vector.broadcast %11 : vector<16x1xf32> to vector<16x128xf32>
    %13 = arith.subf %3, %12 : vector<16x128xf32>
    %14 = arith.mulf %13, %13 : vector<16x128xf32>
    %cst_9 = arith.constant dense<0.000000e+00> : vector<16xf32>
    %15 = vector.multi_reduction <add>, %14, %cst_9 [1] : vector<16x128xf32> to vector<16xf32>
    %16 = vector.shape_cast %15 : vector<16xf32> to vector<16x1xf32>
    %cst_10 = arith.constant 1.280000e+02 : f32
    %17 = vector.broadcast %cst_10 : f32 to vector<16x1xf32>
    %18 = arith.divf %16, %17 : vector<16x1xf32>
    %19 = vector.broadcast %11 : vector<16x1xf32> to vector<16x128xf32>
    %20 = arith.subf %3, %19 : vector<16x128xf32>
    %cst_11 = arith.constant 9.99999974E-6 : f32
    %21 = vector.broadcast %cst_11 : f32 to vector<16x1xf32>
    %22 = arith.addf %18, %21 : vector<16x1xf32>
    %23 = math.rsqrt %22 : vector<16x1xf32>
    %24 = vector.broadcast %23 : vector<16x1xf32> to vector<16x128xf32>
    %25 = arith.mulf %20, %24 : vector<16x128xf32>
    %26 = vector.broadcast %5 : vector<1x128xf32> to vector<16x128xf32>
    %27 = arith.mulf %25, %26 : vector<16x128xf32>
    %28 = vector.broadcast %7 : vector<1x128xf32> to vector<16x128xf32>
    %29 = arith.addf %27, %28 : vector<16x128xf32>
    %30 = arith.truncf %29 : vector<16x128xf32> to vector<16x128xbf16>
    %c0_12 = arith.constant 0 : index
    %c0_13 = arith.constant 0 : index
    %c0_14 = arith.constant 0 : index
    %31 = vector.load %arg4[%c0_12, %c0_13, %c0_14] : memref<1x128x384xbf16, #tpu.memory_space<vmem>>, vector<1x128x384xbf16>
    %32 = vector.shape_cast %31 : vector<1x128x384xbf16> to vector<128x384xbf16>
    %cst_15 = arith.constant dense<0.000000e+00> : vector<16x384xf32>
    %33 = tpu.matmul %30, %32, %cst_15 {dimension_numbers = #tpu.dot_dimension_numbers<[1], [0], [0], [1], [0, 0, 1, 1], [], []>} : vector<16x128xbf16>, vector<128x384xbf16>, vector<16x384xf32> -> vector<16x384xf32>
    %c0_16 = arith.constant 0 : index
    %c0_17 = arith.constant 0 : index
    %c0_18 = arith.constant 0 : index
    %34 = vector.load %arg5[%c0_16, %c0_17, %c0_18] : memref<1x1x384xf32, #tpu.memory_space<vmem>>, vector<1x1x384xf32>
    %35 = vector.shape_cast %34 : vector<1x1x384xf32> to vector<1x384xf32>
    %36 = vector.broadcast %35 : vector<1x384xf32> to vector<16x384xf32>
    %37 = arith.addf %33, %36 : vector<16x384xf32>
    %38 = vector.extract_strided_slice %37 {offsets = [0, 0], sizes = [16, 128], strides = [1, 1]} : vector<16x384xf32> to vector<16x128xf32>
    %cst_19 = arith.constant 0.176776692 : f32
    %39 = vector.broadcast %cst_19 : f32 to vector<16x128xf32>
    %40 = arith.mulf %38, %39 : vector<16x128xf32>
    %41 = vector.extract_strided_slice %37 {offsets = [0, 128], sizes = [16, 128], strides = [1, 1]} : vector<16x384xf32> to vector<16x128xf32>
    %42 = vector.extract_strided_slice %37 {offsets = [0, 256], sizes = [16, 128], strides = [1, 1]} : vector<16x384xf32> to vector<16x128xf32>
    %43 = tpu.iota {dimensions = array<i32: 0>} : vector<16x16xi32>
    %44 = tpu.iota {dimensions = array<i32: 1>} : vector<16x16xi32>
    %45 = arith.cmpi sle, %44, %43 : vector<16x16xi32>
    %cst_20 = arith.constant 0.000000e+00 : f32
    %46 = vector.broadcast %cst_20 : f32 to vector<16x128xf32>
    %47 = vector.extract_strided_slice %40 {offsets = [0, 0], sizes = [16, 32], strides = [1, 1]} : vector<16x128xf32> to vector<16x32xf32>
    %48 = arith.truncf %47 : vector<16x32xf32> to vector<16x32xbf16>
    %49 = vector.extract_strided_slice %41 {offsets = [0, 0], sizes = [16, 32], strides = [1, 1]} : vector<16x128xf32> to vector<16x32xf32>
    %50 = arith.truncf %49 : vector<16x32xf32> to vector<16x32xbf16>
    %51 = vector.extract_strided_slice %42 {offsets = [0, 0], sizes = [16, 32], strides = [1, 1]} : vector<16x128xf32> to vector<16x32xf32>
    %52 = arith.truncf %51 : vector<16x32xf32> to vector<16x32xbf16>
    %cst_21 = arith.constant dense<0.000000e+00> : vector<16x16xf32>
    %53 = tpu.matmul %48, %50, %cst_21 {dimension_numbers = #tpu.dot_dimension_numbers<[1], [1], [0], [0], [0, 0, 1, 0], [], []>} : vector<16x32xbf16>, vector<16x32xbf16>, vector<16x16xf32> -> vector<16x16xf32>
    %cst_22 = arith.constant -1.000000e+30 : f32
    %54 = vector.broadcast %cst_22 : f32 to vector<16x16xf32>
    %55 = arith.select %45, %53, %54 : vector<16x16xi1>, vector<16x16xf32>
    %cst_23 = arith.constant dense<0xFF800000> : vector<16xf32>
    %56 = vector.multi_reduction <maximumf>, %55, %cst_23 [1] : vector<16x16xf32> to vector<16xf32>
    %57 = vector.shape_cast %56 : vector<16xf32> to vector<16x1xf32>
    %58 = vector.broadcast %57 : vector<16x1xf32> to vector<16x16xf32>
    %59 = arith.subf %55, %58 : vector<16x16xf32>
    %60 = math.exp %59 : vector<16x16xf32>
    %cst_24 = arith.constant dense<0.000000e+00> : vector<16xf32>
    %61 = vector.multi_reduction <add>, %60, %cst_24 [1] : vector<16x16xf32> to vector<16xf32>
    %62 = vector.shape_cast %61 : vector<16xf32> to vector<16x1xf32>
    %63 = tpu.reciprocal %62 {approx = true} : vector<16x1xf32> -> vector<16x1xf32>
    %64 = vector.broadcast %63 : vector<16x1xf32> to vector<16x16xf32>
    %65 = arith.mulf %60, %64 : vector<16x16xf32>
    %66 = arith.truncf %65 : vector<16x16xf32> to vector<16x16xbf16>
    %cst_25 = arith.constant dense<0.000000e+00> : vector<16x32xf32>
    %67 = tpu.matmul %66, %52, %cst_25 {dimension_numbers = #tpu.dot_dimension_numbers<[1], [0], [0], [1], [0, 0, 1, 1], [], []>} : vector<16x16xbf16>, vector<16x32xbf16>, vector<16x32xf32> -> vector<16x32xf32>
    %68 = arith.truncf %67 : vector<16x32xf32> to vector<16x32xbf16>
    %c0_26 = arith.constant 0 : index
    %c0_27 = arith.constant 0 : index
    %c0_28 = arith.constant 0 : index
    %69 = vector.load %arg6[%c0_26, %c0_27, %c0_28] : memref<1x128x128xbf16, #tpu.memory_space<vmem>>, vector<1x32x128xbf16>
    %70 = vector.shape_cast %69 : vector<1x32x128xbf16> to vector<32x128xbf16>
    %cst_29 = arith.constant dense<0.000000e+00> : vector<16x128xf32>
    %71 = tpu.matmul %68, %70, %cst_29 {dimension_numbers = #tpu.dot_dimension_numbers<[1], [0], [0], [1], [0, 0, 1, 1], [], []>} : vector<16x32xbf16>, vector<32x128xbf16>, vector<16x128xf32> -> vector<16x128xf32>
    %72 = arith.addf %46, %71 : vector<16x128xf32>
    %73 = vector.extract_strided_slice %40 {offsets = [0, 32], sizes = [16, 32], strides = [1, 1]} : vector<16x128xf32> to vector<16x32xf32>
    %74 = arith.truncf %73 : vector<16x32xf32> to vector<16x32xbf16>
    %75 = vector.extract_strided_slice %41 {offsets = [0, 32], sizes = [16, 32], strides = [1, 1]} : vector<16x128xf32> to vector<16x32xf32>
    %76 = arith.truncf %75 : vector<16x32xf32> to vector<16x32xbf16>
    %77 = vector.extract_strided_slice %42 {offsets = [0, 32], sizes = [16, 32], strides = [1, 1]} : vector<16x128xf32> to vector<16x32xf32>
    %78 = arith.truncf %77 : vector<16x32xf32> to vector<16x32xbf16>
    %cst_30 = arith.constant dense<0.000000e+00> : vector<16x16xf32>
    %79 = tpu.matmul %74, %76, %cst_30 {dimension_numbers = #tpu.dot_dimension_numbers<[1], [1], [0], [0], [0, 0, 1, 0], [], []>} : vector<16x32xbf16>, vector<16x32xbf16>, vector<16x16xf32> -> vector<16x16xf32>
    %cst_31 = arith.constant -1.000000e+30 : f32
    %80 = vector.broadcast %cst_31 : f32 to vector<16x16xf32>
    %81 = arith.select %45, %79, %80 : vector<16x16xi1>, vector<16x16xf32>
    %cst_32 = arith.constant dense<0xFF800000> : vector<16xf32>
    %82 = vector.multi_reduction <maximumf>, %81, %cst_32 [1] : vector<16x16xf32> to vector<16xf32>
    %83 = vector.shape_cast %82 : vector<16xf32> to vector<16x1xf32>
    %84 = vector.broadcast %83 : vector<16x1xf32> to vector<16x16xf32>
    %85 = arith.subf %81, %84 : vector<16x16xf32>
    %86 = math.exp %85 : vector<16x16xf32>
    %cst_33 = arith.constant dense<0.000000e+00> : vector<16xf32>
    %87 = vector.multi_reduction <add>, %86, %cst_33 [1] : vector<16x16xf32> to vector<16xf32>
    %88 = vector.shape_cast %87 : vector<16xf32> to vector<16x1xf32>
    %89 = tpu.reciprocal %88 {approx = true} : vector<16x1xf32> -> vector<16x1xf32>
    %90 = vector.broadcast %89 : vector<16x1xf32> to vector<16x16xf32>
    %91 = arith.mulf %86, %90 : vector<16x16xf32>
    %92 = arith.truncf %91 : vector<16x16xf32> to vector<16x16xbf16>
    %cst_34 = arith.constant dense<0.000000e+00> : vector<16x32xf32>
    %93 = tpu.matmul %92, %78, %cst_34 {dimension_numbers = #tpu.dot_dimension_numbers<[1], [0], [0], [1], [0, 0, 1, 1], [], []>} : vector<16x16xbf16>, vector<16x32xbf16>, vector<16x32xf32> -> vector<16x32xf32>
    %94 = arith.truncf %93 : vector<16x32xf32> to vector<16x32xbf16>
    %c0_35 = arith.constant 0 : index
    %c32 = arith.constant 32 : index
    %c0_36 = arith.constant 0 : index
    %95 = vector.load %arg6[%c0_35, %c32, %c0_36] : memref<1x128x128xbf16, #tpu.memory_space<vmem>>, vector<1x32x128xbf16>
    %96 = vector.shape_cast %95 : vector<1x32x128xbf16> to vector<32x128xbf16>
    %cst_37 = arith.constant dense<0.000000e+00> : vector<16x128xf32>
    %97 = tpu.matmul %94, %96, %cst_37 {dimension_numbers = #tpu.dot_dimension_numbers<[1], [0], [0], [1], [0, 0, 1, 1], [], []>} : vector<16x32xbf16>, vector<32x128xbf16>, vector<16x128xf32> -> vector<16x128xf32>
    %98 = arith.addf %72, %97 : vector<16x128xf32>
    %99 = vector.extract_strided_slice %40 {offsets = [0, 64], sizes = [16, 32], strides = [1, 1]} : vector<16x128xf32> to vector<16x32xf32>
    %100 = arith.truncf %99 : vector<16x32xf32> to vector<16x32xbf16>
    %101 = vector.extract_strided_slice %41 {offsets = [0, 64], sizes = [16, 32], strides = [1, 1]} : vector<16x128xf32> to vector<16x32xf32>
    %102 = arith.truncf %101 : vector<16x32xf32> to vector<16x32xbf16>
    %103 = vector.extract_strided_slice %42 {offsets = [0, 64], sizes = [16, 32], strides = [1, 1]} : vector<16x128xf32> to vector<16x32xf32>
    %104 = arith.truncf %103 : vector<16x32xf32> to vector<16x32xbf16>
    %cst_38 = arith.constant dense<0.000000e+00> : vector<16x16xf32>
    %105 = tpu.matmul %100, %102, %cst_38 {dimension_numbers = #tpu.dot_dimension_numbers<[1], [1], [0], [0], [0, 0, 1, 0], [], []>} : vector<16x32xbf16>, vector<16x32xbf16>, vector<16x16xf32> -> vector<16x16xf32>
    %cst_39 = arith.constant -1.000000e+30 : f32
    %106 = vector.broadcast %cst_39 : f32 to vector<16x16xf32>
    %107 = arith.select %45, %105, %106 : vector<16x16xi1>, vector<16x16xf32>
    %cst_40 = arith.constant dense<0xFF800000> : vector<16xf32>
    %108 = vector.multi_reduction <maximumf>, %107, %cst_40 [1] : vector<16x16xf32> to vector<16xf32>
    %109 = vector.shape_cast %108 : vector<16xf32> to vector<16x1xf32>
    %110 = vector.broadcast %109 : vector<16x1xf32> to vector<16x16xf32>
    %111 = arith.subf %107, %110 : vector<16x16xf32>
    %112 = math.exp %111 : vector<16x16xf32>
    %cst_41 = arith.constant dense<0.000000e+00> : vector<16xf32>
    %113 = vector.multi_reduction <add>, %112, %cst_41 [1] : vector<16x16xf32> to vector<16xf32>
    %114 = vector.shape_cast %113 : vector<16xf32> to vector<16x1xf32>
    %115 = tpu.reciprocal %114 {approx = true} : vector<16x1xf32> -> vector<16x1xf32>
    %116 = vector.broadcast %115 : vector<16x1xf32> to vector<16x16xf32>
    %117 = arith.mulf %112, %116 : vector<16x16xf32>
    %118 = arith.truncf %117 : vector<16x16xf32> to vector<16x16xbf16>
    %cst_42 = arith.constant dense<0.000000e+00> : vector<16x32xf32>
    %119 = tpu.matmul %118, %104, %cst_42 {dimension_numbers = #tpu.dot_dimension_numbers<[1], [0], [0], [1], [0, 0, 1, 1], [], []>} : vector<16x16xbf16>, vector<16x32xbf16>, vector<16x32xf32> -> vector<16x32xf32>
    %120 = arith.truncf %119 : vector<16x32xf32> to vector<16x32xbf16>
    %c0_43 = arith.constant 0 : index
    %c64 = arith.constant 64 : index
    %c0_44 = arith.constant 0 : index
    %121 = vector.load %arg6[%c0_43, %c64, %c0_44] : memref<1x128x128xbf16, #tpu.memory_space<vmem>>, vector<1x32x128xbf16>
    %122 = vector.shape_cast %121 : vector<1x32x128xbf16> to vector<32x128xbf16>
    %cst_45 = arith.constant dense<0.000000e+00> : vector<16x128xf32>
    %123 = tpu.matmul %120, %122, %cst_45 {dimension_numbers = #tpu.dot_dimension_numbers<[1], [0], [0], [1], [0, 0, 1, 1], [], []>} : vector<16x32xbf16>, vector<32x128xbf16>, vector<16x128xf32> -> vector<16x128xf32>
    %124 = arith.addf %98, %123 : vector<16x128xf32>
    %125 = vector.extract_strided_slice %40 {offsets = [0, 96], sizes = [16, 32], strides = [1, 1]} : vector<16x128xf32> to vector<16x32xf32>
    %126 = arith.truncf %125 : vector<16x32xf32> to vector<16x32xbf16>
    %127 = vector.extract_strided_slice %41 {offsets = [0, 96], sizes = [16, 32], strides = [1, 1]} : vector<16x128xf32> to vector<16x32xf32>
    %128 = arith.truncf %127 : vector<16x32xf32> to vector<16x32xbf16>
    %129 = vector.extract_strided_slice %42 {offsets = [0, 96], sizes = [16, 32], strides = [1, 1]} : vector<16x128xf32> to vector<16x32xf32>
    %130 = arith.truncf %129 : vector<16x32xf32> to vector<16x32xbf16>
    %cst_46 = arith.constant dense<0.000000e+00> : vector<16x16xf32>
    %131 = tpu.matmul %126, %128, %cst_46 {dimension_numbers = #tpu.dot_dimension_numbers<[1], [1], [0], [0], [0, 0, 1, 0], [], []>} : vector<16x32xbf16>, vector<16x32xbf16>, vector<16x16xf32> -> vector<16x16xf32>
    %cst_47 = arith.constant -1.000000e+30 : f32
    %132 = vector.broadcast %cst_47 : f32 to vector<16x16xf32>
    %133 = arith.select %45, %131, %132 : vector<16x16xi1>, vector<16x16xf32>
    %cst_48 = arith.constant dense<0xFF800000> : vector<16xf32>
    %134 = vector.multi_reduction <maximumf>, %133, %cst_48 [1] : vector<16x16xf32> to vector<16xf32>
    %135 = vector.shape_cast %134 : vector<16xf32> to vector<16x1xf32>
    %136 = vector.broadcast %135 : vector<16x1xf32> to vector<16x16xf32>
    %137 = arith.subf %133, %136 : vector<16x16xf32>
    %138 = math.exp %137 : vector<16x16xf32>
    %cst_49 = arith.constant dense<0.000000e+00> : vector<16xf32>
    %139 = vector.multi_reduction <add>, %138, %cst_49 [1] : vector<16x16xf32> to vector<16xf32>
    %140 = vector.shape_cast %139 : vector<16xf32> to vector<16x1xf32>
    %141 = tpu.reciprocal %140 {approx = true} : vector<16x1xf32> -> vector<16x1xf32>
    %142 = vector.broadcast %141 : vector<16x1xf32> to vector<16x16xf32>
    %143 = arith.mulf %138, %142 : vector<16x16xf32>
    %144 = arith.truncf %143 : vector<16x16xf32> to vector<16x16xbf16>
    %cst_50 = arith.constant dense<0.000000e+00> : vector<16x32xf32>
    %145 = tpu.matmul %144, %130, %cst_50 {dimension_numbers = #tpu.dot_dimension_numbers<[1], [0], [0], [1], [0, 0, 1, 1], [], []>} : vector<16x16xbf16>, vector<16x32xbf16>, vector<16x32xf32> -> vector<16x32xf32>
    %146 = arith.truncf %145 : vector<16x32xf32> to vector<16x32xbf16>
    %c0_51 = arith.constant 0 : index
    %c96 = arith.constant 96 : index
    %c0_52 = arith.constant 0 : index
    %147 = vector.load %arg6[%c0_51, %c96, %c0_52] : memref<1x128x128xbf16, #tpu.memory_space<vmem>>, vector<1x32x128xbf16>
    %148 = vector.shape_cast %147 : vector<1x32x128xbf16> to vector<32x128xbf16>
    %cst_53 = arith.constant dense<0.000000e+00> : vector<16x128xf32>
    %149 = tpu.matmul %146, %148, %cst_53 {dimension_numbers = #tpu.dot_dimension_numbers<[1], [0], [0], [1], [0, 0, 1, 1], [], []>} : vector<16x32xbf16>, vector<32x128xbf16>, vector<16x128xf32> -> vector<16x128xf32>
    %150 = arith.addf %124, %149 : vector<16x128xf32>
    %151 = arith.addf %3, %150 : vector<16x128xf32>
    %c0_54 = arith.constant 0 : index
    %c0_55 = arith.constant 0 : index
    %c0_56 = arith.constant 0 : index
    %152 = vector.load %arg7[%c0_54, %c0_55, %c0_56] : memref<1x1x128xf32, #tpu.memory_space<vmem>>, vector<1x1x128xf32>
    %153 = vector.shape_cast %152 : vector<1x1x128xf32> to vector<1x128xf32>
    %154 = vector.broadcast %153 : vector<1x128xf32> to vector<16x128xf32>
    %155 = arith.addf %151, %154 : vector<16x128xf32>
    %c0_57 = arith.constant 0 : index
    %c0_58 = arith.constant 0 : index
    %c0_59 = arith.constant 0 : index
    %156 = vector.load %arg8[%c0_57, %c0_58, %c0_59] : memref<1x1x128xf32, #tpu.memory_space<vmem>>, vector<1x1x128xf32>
    %157 = vector.shape_cast %156 : vector<1x1x128xf32> to vector<1x128xf32>
    %c0_60 = arith.constant 0 : index
    %c0_61 = arith.constant 0 : index
    %c0_62 = arith.constant 0 : index
    %158 = vector.load %arg9[%c0_60, %c0_61, %c0_62] : memref<1x1x128xf32, #tpu.memory_space<vmem>>, vector<1x1x128xf32>
    %159 = vector.shape_cast %158 : vector<1x1x128xf32> to vector<1x128xf32>
    %cst_63 = arith.constant dense<0.000000e+00> : vector<16xf32>
    %160 = vector.multi_reduction <add>, %155, %cst_63 [1] : vector<16x128xf32> to vector<16xf32>
    %161 = vector.shape_cast %160 : vector<16xf32> to vector<16x1xf32>
    %cst_64 = arith.constant 1.280000e+02 : f32
    %162 = vector.broadcast %cst_64 : f32 to vector<16x1xf32>
    %163 = arith.divf %161, %162 : vector<16x1xf32>
    %164 = vector.broadcast %163 : vector<16x1xf32> to vector<16x128xf32>
    %165 = arith.subf %155, %164 : vector<16x128xf32>
    %166 = arith.mulf %165, %165 : vector<16x128xf32>
    %cst_65 = arith.constant dense<0.000000e+00> : vector<16xf32>
    %167 = vector.multi_reduction <add>, %166, %cst_65 [1] : vector<16x128xf32> to vector<16xf32>
    %168 = vector.shape_cast %167 : vector<16xf32> to vector<16x1xf32>
    %cst_66 = arith.constant 1.280000e+02 : f32
    %169 = vector.broadcast %cst_66 : f32 to vector<16x1xf32>
    %170 = arith.divf %168, %169 : vector<16x1xf32>
    %171 = vector.broadcast %163 : vector<16x1xf32> to vector<16x128xf32>
    %172 = arith.subf %155, %171 : vector<16x128xf32>
    %cst_67 = arith.constant 9.99999974E-6 : f32
    %173 = vector.broadcast %cst_67 : f32 to vector<16x1xf32>
    %174 = arith.addf %170, %173 : vector<16x1xf32>
    %175 = math.rsqrt %174 : vector<16x1xf32>
    %176 = vector.broadcast %175 : vector<16x1xf32> to vector<16x128xf32>
    %177 = arith.mulf %172, %176 : vector<16x128xf32>
    %178 = vector.broadcast %157 : vector<1x128xf32> to vector<16x128xf32>
    %179 = arith.mulf %177, %178 : vector<16x128xf32>
    %180 = vector.broadcast %159 : vector<1x128xf32> to vector<16x128xf32>
    %181 = arith.addf %179, %180 : vector<16x128xf32>
    %182 = arith.truncf %181 : vector<16x128xf32> to vector<16x128xbf16>
    %c0_68 = arith.constant 0 : index
    %c0_69 = arith.constant 0 : index
    %c0_70 = arith.constant 0 : index
    %183 = vector.load %arg10[%c0_68, %c0_69, %c0_70] : memref<1x128x512xbf16, #tpu.memory_space<vmem>>, vector<1x128x512xbf16>
    %184 = vector.shape_cast %183 : vector<1x128x512xbf16> to vector<128x512xbf16>
    %cst_71 = arith.constant dense<0.000000e+00> : vector<16x512xf32>
    %185 = tpu.matmul %182, %184, %cst_71 {dimension_numbers = #tpu.dot_dimension_numbers<[1], [0], [0], [1], [0, 0, 1, 1], [], []>} : vector<16x128xbf16>, vector<128x512xbf16>, vector<16x512xf32> -> vector<16x512xf32>
    %c0_72 = arith.constant 0 : index
    %c0_73 = arith.constant 0 : index
    %c0_74 = arith.constant 0 : index
    %186 = vector.load %arg11[%c0_72, %c0_73, %c0_74] : memref<1x1x512xf32, #tpu.memory_space<vmem>>, vector<1x1x512xf32>
    %187 = vector.shape_cast %186 : vector<1x1x512xf32> to vector<1x512xf32>
    %188 = vector.broadcast %187 : vector<1x512xf32> to vector<16x512xf32>
    %189 = arith.addf %185, %188 : vector<16x512xf32>
    %190 = arith.truncf %189 : vector<16x512xf32> to vector<16x512xbf16>
    %cst_75 = arith.constant 5.000000e-01 : bf16
    %191 = vector.broadcast %cst_75 : bf16 to vector<16x512xbf16>
    %192 = arith.mulf %191, %190 : vector<16x512xbf16>
    %cst_76 = arith.constant 4.467770e-02 : bf16
    %193 = vector.broadcast %cst_76 : bf16 to vector<16x512xbf16>
    %194 = arith.mulf %193, %190 : vector<16x512xbf16>
    %195 = arith.mulf %194, %190 : vector<16x512xbf16>
    %196 = arith.mulf %195, %190 : vector<16x512xbf16>
    %197 = arith.addf %190, %196 : vector<16x512xbf16>
    %cst_77 = arith.constant 7.968750e-01 : bf16
    %198 = vector.broadcast %cst_77 : bf16 to vector<16x512xbf16>
    %199 = arith.mulf %198, %197 : vector<16x512xbf16>
    %200 = math.tanh %199 : vector<16x512xbf16>
    %cst_78 = arith.constant 1.000000e+00 : bf16
    %201 = vector.broadcast %cst_78 : bf16 to vector<16x512xbf16>
    %202 = arith.addf %201, %200 : vector<16x512xbf16>
    %203 = arith.mulf %192, %202 : vector<16x512xbf16>
    %c0_79 = arith.constant 0 : index
    %c0_80 = arith.constant 0 : index
    %c0_81 = arith.constant 0 : index
    %204 = vector.load %arg12[%c0_79, %c0_80, %c0_81] : memref<1x512x128xbf16, #tpu.memory_space<vmem>>, vector<1x512x128xbf16>
    %205 = vector.shape_cast %204 : vector<1x512x128xbf16> to vector<512x128xbf16>
    %cst_82 = arith.constant dense<0.000000e+00> : vector<16x128xf32>
    %206 = tpu.matmul %203, %205, %cst_82 {dimension_numbers = #tpu.dot_dimension_numbers<[1], [0], [0], [1], [0, 0, 1, 1], [], []>} : vector<16x512xbf16>, vector<512x128xbf16>, vector<16x128xf32> -> vector<16x128xf32>
    %207 = arith.addf %155, %206 : vector<16x128xf32>
    %c0_83 = arith.constant 0 : index
    %c0_84 = arith.constant 0 : index
    %c0_85 = arith.constant 0 : index
    %208 = vector.load %arg13[%c0_83, %c0_84, %c0_85] : memref<1x1x128xf32, #tpu.memory_space<vmem>>, vector<1x1x128xf32>
    %209 = vector.shape_cast %208 : vector<1x1x128xf32> to vector<1x128xf32>
    %210 = vector.broadcast %209 : vector<1x128xf32> to vector<16x128xf32>
    %211 = arith.addf %207, %210 : vector<16x128xf32>
    %c0_86 = arith.constant 0 : index
    %c0_87 = arith.constant 0 : index
    %212 = vector.load %arg15[%c0_86, %c0_87] : memref<16x128xf32, #tpu.memory_space<vmem>>, vector<16x128xf32>
    tpu.vector_store %arg15[%c0_86, %c0_87], %211 {strides = array<i32>} : memref<16x128xf32, #tpu.memory_space<vmem>>, vector<16x128xf32>,
    %c0_88 = arith.constant 0 : index
    %c0_89 = arith.constant 0 : index
    %213 = vector.load %arg14[%c0_88, %c0_89] : memref<16x128xf32, #tpu.memory_space<vmem>>, vector<16x128xf32>
    tpu.vector_store %arg14[%c0_88, %c0_89], %211 {strides = array<i32>} : memref<16x128xf32, #tpu.memory_space<vmem>>, vector<16x128xf32>,
    return
  }
  func.func @transform_0(%arg0: i32) -> (i32, i32) {
    %c0_i32 = arith.constant 0 : i32
    %c0_i32_0 = arith.constant 0 : i32
    %c0_i32_1 = arith.constant 0 : i32
    return %c0_i32, %c0_i32_0 : i32, i32
  }
  func.func @transform_1(%arg0: i32) -> (i32, i32, i32) {
    %c0_i32 = arith.constant 0 : i32
    %c0_i32_0 = arith.constant 0 : i32
    %c0_i32_1 = arith.constant 0 : i32
    return %arg0, %c0_i32, %c0_i32_0 : i32, i32, i32
  }
  func.func @transform_2(%arg0: i32) -> (i32, i32, i32) {
    %c0_i32 = arith.constant 0 : i32
    %c0_i32_0 = arith.constant 0 : i32
    %c0_i32_1 = arith.constant 0 : i32
    return %arg0, %c0_i32, %c0_i32_0 : i32, i32, i32
  }
  func.func @transform_3(%arg0: i32) -> (i32, i32, i32) {
    %c0_i32 = arith.constant 0 : i32
    %c0_i32_0 = arith.constant 0 : i32
    %c0_i32_1 = arith.constant 0 : i32
    return %arg0, %c0_i32, %c0_i32_0 : i32, i32, i32
  }
  func.func @transform_4(%arg0: i32) -> (i32, i32, i32) {
    %c0_i32 = arith.constant 0 : i32
    %c0_i32_0 = arith.constant 0 : i32
    %c0_i32_1 = arith.constant 0 : i32
    return %arg0, %c0_i32, %c0_i32_0 : i32, i32, i32
  }
  func.func @transform_5(%arg0: i32) -> (i32, i32, i32) {
    %c0_i32 = arith.constant 0 : i32
    %c0_i32_0 = arith.constant 0 : i32
    %c0_i32_1 = arith.constant 0 : i32
    return %arg0, %c0_i32, %c0_i32_0 : i32, i32, i32
  }
  func.func @transform_6(%arg0: i32) -> (i32, i32, i32) {
    %c0_i32 = arith.constant 0 : i32
    %c0_i32_0 = arith.constant 0 : i32
    %c0_i32_1 = arith.constant 0 : i32
    return %arg0, %c0_i32, %c0_i32_0 : i32, i32, i32
  }
  func.func @transform_7(%arg0: i32) -> (i32, i32, i32) {
    %c0_i32 = arith.constant 0 : i32
    %c0_i32_0 = arith.constant 0 : i32
    %c0_i32_1 = arith.constant 0 : i32
    return %arg0, %c0_i32, %c0_i32_0 : i32, i32, i32
  }
  func.func @transform_8(%arg0: i32) -> (i32, i32, i32) {
    %c0_i32 = arith.constant 0 : i32
    %c0_i32_0 = arith.constant 0 : i32
    %c0_i32_1 = arith.constant 0 : i32
    return %arg0, %c0_i32, %c0_i32_0 : i32, i32, i32
  }
  func.func @transform_9(%arg0: i32) -> (i32, i32, i32) {
    %c0_i32 = arith.constant 0 : i32
    %c0_i32_0 = arith.constant 0 : i32
    %c0_i32_1 = arith.constant 0 : i32
    return %arg0, %c0_i32, %c0_i32_0 : i32, i32, i32
  }
  func.func @transform_10(%arg0: i32) -> (i32, i32, i32) {
    %c0_i32 = arith.constant 0 : i32
    %c0_i32_0 = arith.constant 0 : i32
    %c0_i32_1 = arith.constant 0 : i32
    return %arg0, %c0_i32, %c0_i32_0 : i32, i32, i32
  }
  func.func @transform_11(%arg0: i32) -> (i32, i32, i32) {
    %c0_i32 = arith.constant 0 : i32
    %c0_i32_0 = arith.constant 0 : i32
    %c0_i32_1 = arith.constant 0 : i32
    return %arg0, %c0_i32, %c0_i32_0 : i32, i32, i32
  }
  func.func @transform_12(%arg0: i32) -> (i32, i32, i32) {
    %c0_i32 = arith.constant 0 : i32
    %c0_i32_0 = arith.constant 0 : i32
    %c0_i32_1 = arith.constant 0 : i32
    return %arg0, %c0_i32, %c0_i32_0 : i32, i32, i32
  }
  func.func @transform_13(%arg0: i32) -> (i32, i32) {
    %c0_i32 = arith.constant 0 : i32
    %c0_i32_0 = arith.constant 0 : i32
    %c0_i32_1 = arith.constant 0 : i32
    return %c0_i32, %c0_i32_0 : i32, i32
  }
}

</mosaic_0001>

<bundles_post_ra>
// kernel: gpt2_wrapper_forward.2
= control target key start
LH: loop header
LB: loop body
LE: loop exit
PB: predicated region body
PF: predicated region fallthrough
CT: control target
= control target key end

     0   :  { %s3993_s0 = inlined_call_operand.vmem [shape: f32[16,128], index: 0, kind: input, shape index: {}]   ;;  %s3994_s1 = inlined_call_operand.vmem [shape: f32[2,1,128], index: 1, kind: input, shape index: {}]   ;;  %s3995_s2 = inlined_call_operand.vmem [shape: f32[2,1,128], index: 2, kind: input, shape index: {}]   ;;  %s3996_s3 = inlined_call_operand.hbm [shape: bf16[2,128,384], index: 3, kind: input, shape index: {}]   ;;  %s3997_s4 = inlined_call_operand.vmem [shape: f32[2,1,384], index: 4, kind: input, shape index: {}]   ;;  %s3998_s5 = inlined_call_operand.vmem [shape: bf16[2,128,128], index: 5, kind: input, shape index: {}]   ;;  %s3999_s6 = inlined_call_operand.vmem [shape: f32[2,1,128], index: 6, kind: input, shape index: {}]   ;;  %s4000_s7 = inlined_call_operand.vmem [shape: f32[2,1,128], index: 7, kind: input, shape index: {}]   ;;  %s4001_s8 = inlined_call_operand.vmem [shape: f32[2,1,128], index: 8, kind: input, shape index: {}]   ;;  %s4002_s9 = inlined_call_operand.hbm [shape: bf16[2,128,512], index: 9, kind: input, shape index: {}]   ;;  %s4003_s10 = inlined_call_operand.vmem [shape: f32[2,1,512], index: 10, kind: input, shape index: {}]   ;;  %s4004_s11 = inlined_call_operand.hbm [shape: bf16[2,512,128], index: 11, kind: input, shape index: {}]   ;;  %s4005_s12 = inlined_call_operand.vmem [shape: f32[2,1,128], index: 12, kind: input, shape index: {}]   ;;  %s4006_s13 = inlined_call_operand.vmem [shape: f32[16,128], index: 13, kind: output, shape index: {}]  }
   0x1   :  { %4015 = sst [smem:[#allocation13_spill]] %s3993_s0 }
   0x2   :  { %4016 = sst [smem:[#allocation14_spill]] %s3996_s3 }
   0x3   :  { %4017 = sst [smem:[#allocation15_spill]] %s3998_s5 }
   0x4   :  { %4018 = sst [smem:[#allocation16_spill]] %s4002_s9 }
   0x5   :  { %4019 = sst [smem:[#allocation17_spill]] %s4004_s11 }
   0x6   :  { %4020 = sst [smem:[#allocation18_spill]] %s4005_s12 }
   0x7   :  { %4021 = sst [smem:[#allocation19_spill]] %s4006_s13 }
   0x8   :  { %18 = vsyncpa [#allocation4], 0 }
   0x9   :  { %20 = vsyncpa [#allocation4 + $0x1], 0 }
   0xa   :  { %21 = vsyncpa [#allocation6], 0 }
   0xb   :  { %23 = vsyncpa [#allocation6 + $0x1], 0  ;;  %s3413_s25 = smov 0   ;;  %s3415_s26 = smov 0  }
   0xc   :  { %s3417_s27 = smov 0   ;;  %s3419_s28 = smov 0  }
   0xd LB: > { %4022 = sst [smem:[#allocation10_spill]] %s3322_s27  ;;  %s3432_s29 = sadd.s32 4294967295, %s3326_s28   ;;  %s3326_s28 = sphi %s3419_s28, %s4046_s28   ;;  %s3322_s27 = sphi %s3417_s27, %s4048_s27   ;;  %s3318_s26 = sphi %s3415_s26, %s4050_s26   ;;  %s3314_s25 = sphi %s3413_s25, %s4049_s25  }
   0xe   : > { %s3435_s30 = sadd.s32 1, %s3326_s28   ;;  %s109_s15 = sadd.s32 1, %s3322_s27 }
   0xf   : > { %4023 = sst [smem:[#allocation11_spill]] %s3435_s30  ;;  %s106_s14 = ssub.s32 %s3326_s28, %s3435_s30 }
  0x10   : > { %p107_p0 = scmp.eq.s32.totalorder %s106_s14, 0  ;;  %p116_p1 = scmp.ne.s32.totalorder %s3322_s27, %s3318_s26 }
  0x11   : > { %p117_p2 = scmp.eq.s32.totalorder %s3326_s28, 0  ;;  %p122_p3 = scmp.ne.s32.totalorder %s3318_s26, %s3314_s25 }
  0x12   : > { %s3445_s16 = scalar_select %p107_p0, %s3322_s27, %s109_s15  }
  0x13   : > { %p118_p4 = por %p117_p2, %p116_p1  ;;  %p123_p5 = scmp.eq.s32.totalorder %s3432_s29, 0 }
  0x14   : > { %4024 = sst [smem:[#allocation12_spill]] %s3445_s16  ;;  %p2983_p6 = scmp.lt.s32.totalorder %s3326_s28, 2 }
  0x15   : > { %p3449_p7 = por %p123_p5, %p122_p3  ;;  %s3454_s18 = sand.u32 1, %s3322_s27  }
  0x16   : > { %p3456_p8 = pnand %p2983_p6, %p118_p4  ;;  %s470_s20 = sand.u32 1, %s3326_s28  }
  0x17   : > { %s4025_s17 = scalar_select %p3449_p7, 1, 0 }
  0x18   : > { %s4008_s21 = sshll.u32 %s3454_s18, 8  ;;  %s4009_s22 = sshll.u32 %s3326_s28, 12 }
  0x19   : > { %s474_s23 = scalar_lea.vmem [#allocation5], %s4008_s21  ;;  %s4027_s9 = sld [smem:[#allocation16_spill]] }
  0x1a   : > { %s481_s24 = sshll.u32 %s474_s23, 4  ;;  %s3474_s16 = scalar_lea.sflag [#allocation6], %s470_s20  ;;  %s3472_s24 = int_to_ptr.vmem [resolvable:$true] %s481_s24 }
  0x1b   : > { %p3480_p10 = pneg %p3456_p8 }
  0x1f   : > { %s3470_s15 = scalar_lea.hbm %s4027_s9, %s4009_s22  ;;  %s3203_s14 = scalar_lea.hbm %s4027_s9, 8192 }
  0x20   : > { %s3198_s27 = scalar_lea.hbm %s3470_s15, 4096  ;;  %p3204_p13 = scmp.lt.u32.totalorder %s3470_s15, %s4027_s9 }
  0x21   : > { %p3199_p9 = scmp.ne.s32.totalorder %s3470_s15, %s3198_s27  ;;  %p3205_p0 = scmp.lt.u32.totalorder %s3203_s14, %s3198_s27 }
  0x22   : > { %p3207_p2 = scmp.lt.u32.totalorder %s3198_s27, %s3470_s15 }
  0x23   : > { %p3201_p11 = pnand %p3480_p10, %p3199_p9  ;;  %p3206_p1 = por %p3205_p0, %p3204_p13 }
  0x25   : > { %p3202_p12 = pneg %p3201_p11  ;;  %p3208_p3 = por %p3207_p2, %p3206_p1 }
  0x27   : > { %p3209_p4 = pnand %p3208_p3, %p3202_p12 }
  0x29   : > { %3212 = shalt.err (!%p3209_p4)
}
  0x2a   : > { %s3213_s20 = scalar_lea.vmem %s3472_s24, 4096  ;;  %s3328_s23 = smov [#allocation5]  }
  0x2b   : > { %p3214_p5 = scmp.ne.s32.totalorder %s3472_s24, %s3213_s20  ;;  %s3218_s25 = sshll.u32 %s3328_s23, 4  ;;  %s3219_s25 = int_to_ptr.vmem [resolvable:$false] %s3218_s25 }
  0x2c   : > { %s3220_s30 = scalar_lea.vmem %s3219_s25, 8192  ;;  %p3221_p11 = scmp.lt.s32.totalorder %s3472_s24, %s3219_s25 }
  0x2d   : > { %p3216_p6 = pnand %p3214_p5, %p3480_p10  ;;  %p3222_p7 = scmp.lt.s32.totalorder %s3220_s30, %s3213_s20 }
  0x2f   : > { %p3217_p9 = pneg %p3216_p6  ;;  %p3223_p13 = por %p3222_p7, %p3221_p11 }
  0x31   : > { %p3224_p0 = pnand %p3223_p13, %p3217_p9 }
  0x33   : > { %3227 = shalt.err (!%p3224_p0)
}
  0x34   : > { %s3329_s27 = smov 256   ;;  %s3330_s22 = smov 16  }
  0x35   : > { %2979 = dma.hbm_to_vmem [thread:$0]  (!%p3456_p8), %s3470_s15, 4096, %s3472_s24, %s3474_s16, %s3329_s27, %s3329_s27, %s3330_s22  }
  0x36   : > { %s4029_s14 = sshll.u32 %s3326_s28, 12  ;;  %s4030_s11 = sld [smem:[#allocation17_spill]] }
  0x37   : > { %s4031_s30 = sshll.u32 %s3454_s18, 8  ;;  %p2656_p7 = scmp.ge.s32.totalorder %s3326_s28, 1 }
  0x38   : > { %s502_s9 = scalar_lea.vmem [#allocation7], %s4031_s30  ;;  %p523_p12 = scmp.lt.s32.totalorder %s3326_s28, 3 }
  0x39   : > { %s509_s13 = sshll.u32 %s502_s9, 4  ;;  %s2963_s0 = smul.u32 192, %s3454_s18  ;;  %s3514_s13 = int_to_ptr.vmem [resolvable:$true] %s509_s13 }
  0x3a   : > { %p3518_p1 = pnand %p2656_p7, %p523_p12  ;;  %s2964_s24 = smul.u32 3072, %s3326_s28 }
  0x3b   : > { %s4033_s3 = sld [smem:[#allocation14_spill]]  ;;  %s420_s9 = scalar_lea.vmem [#allocation3], %s2963_s0 }
  0x3c   : > { %s3509_s25 = scalar_lea.hbm %s4030_s11, %s4029_s14  ;;  %s427_s14 = sshll.u32 %s420_s9, 4  ;;  %s3528_s14 = int_to_ptr.vmem [resolvable:$true] %s427_s14 }
  0x3d   : > { %s4032_s12 = scalar_select %p3518_p1, 1, 0 }
  0x3e   : > { %s417_s20 = scalar_lea.sflag [#allocation4], %s3454_s18 }
  0x41   : > { %s3526_s22 = scalar_lea.hbm %s4033_s3, %s2964_s24  ;;  %s3233_s15 = scalar_lea.hbm %s4033_s3, 6144 }
  0x42   : > { %s3228_s23 = scalar_lea.hbm %s3526_s22, 3072  ;;  %p3234_p5 = scmp.lt.u32.totalorder %s3526_s22, %s4033_s3 }
  0x43   : > { %p3229_p2 = scmp.ne.s32.totalorder %s3526_s22, %s3228_s23  ;;  %p3235_p6 = scmp.lt.u32.totalorder %s3233_s15, %s3228_s23 }
  0x44   : > { %p3237_p11 = scmp.lt.u32.totalorder %s3228_s23, %s3526_s22 }
  0x45   : > { %p3231_p3 = pnand %p3229_p2, %p3480_p10  ;;  %p3236_p9 = por %p3235_p6, %p3234_p5 }
  0x47   : > { %p3232_p4 = pneg %p3231_p3  ;;  %p3238_p13 = por %p3237_p11, %p3236_p9 }
  0x49   : > { %p3239_p0 = pnand %p3238_p13, %p3232_p4 }
  0x4b   : > { %3242 = shalt.err (!%p3239_p0)
}
  0x4c   : > { %s3243_s0 = scalar_lea.vmem %s3528_s14, 3072  ;;  %s3331_s9 = smov [#allocation3]  }
  0x4d   : > { %p3244_p7 = scmp.ne.s32.totalorder %s3528_s14, %s3243_s0  ;;  %s3248_s28 = sshll.u32 %s3331_s9, 4  ;;  %s3249_s28 = int_to_ptr.vmem [resolvable:$false] %s3248_s28 }
  0x4e   : > { %s3250_s30 = scalar_lea.vmem %s3249_s28, 6144  ;;  %p3251_p3 = scmp.lt.s32.totalorder %s3528_s14, %s3249_s28 }
  0x4f   : > { %p3246_p12 = pnand %p3244_p7, %p3480_p10  ;;  %p3252_p1 = scmp.lt.s32.totalorder %s3250_s30, %s3243_s0 }
  0x51   : > { %p3247_p2 = pneg %p3246_p12  ;;  %p3253_p5 = por %p3252_p1, %p3251_p3 }
  0x53   : > { %p3254_p6 = pnand %p3253_p5, %p3247_p2 }
  0x55   : > { %3257 = shalt.err (!%p3254_p6)
}
  0x56   : > { %s3332_s23 = smov 192   ;;  %s3333_s15 = smov 12  }
  0x57   : > { %2976 = dma.hbm_to_vmem [thread:$0]  (!%p3456_p8), %s3526_s22, 3072, %s3528_s14, %s417_s20, %s3332_s23, %s3332_s23, %s3333_s15  }
  0x58   : > { %s3258_s24 = scalar_lea.hbm %s3509_s25, 4096  ;;  %s3263_s9 = scalar_lea.hbm %s4030_s11, 8192 }
  0x59   : > { %p3259_p4 = scmp.ne.s32.totalorder %s3509_s25, %s3258_s24  ;;  %p3264_p11 = scmp.lt.u32.totalorder %s3509_s25, %s4030_s11 }
  0x5a   : > { %p3265_p13 = scmp.lt.u32.totalorder %s3263_s9, %s3258_s24  ;;  %p3267_p7 = scmp.lt.u32.totalorder %s3258_s24, %s3509_s25 }
  0x5b   : > { %p3261_p1 = pnand %p3259_p4, %p3480_p10 }
  0x5c   : > { %p3266_p0 = por %p3265_p13, %p3264_p11 }
  0x5d   : > { %p3262_p9 = pneg %p3261_p1 }
  0x5e   : > { %p3268_p12 = por %p3267_p7, %p3266_p0 }
  0x60   : > { %p3269_p2 = pnand %p3268_p12, %p3262_p9 }
  0x62   : > { %3272 = shalt.err (!%p3269_p2)
}
  0x63   : > { %s3273_s18 = scalar_lea.vmem %s3514_s13, 4096  ;;  %s3334_s22 = smov [#allocation7]  }
  0x64   : > { %p3274_p3 = scmp.ne.s32.totalorder %s3514_s13, %s3273_s18  ;;  %s3278_s14 = sshll.u32 %s3334_s22, 4  ;;  %s3279_s14 = int_to_ptr.vmem [resolvable:$false] %s3278_s14 }
  0x65   : > { %s3280_s20 = scalar_lea.vmem %s3279_s14, 8192  ;;  %p3281_p4 = scmp.lt.s32.totalorder %s3514_s13, %s3279_s14 }
  0x66   : > { %p3276_p5 = pnand %p3274_p3, %p3480_p10  ;;  %p3282_p1 = scmp.lt.s32.totalorder %s3280_s20, %s3273_s18 }
  0x68   : > { %p3277_p6 = pneg %p3276_p5  ;;  %p3283_p11 = por %p3282_p1, %p3281_p4 }
  0x6a   : > { %p3284_p13 = pnand %p3283_p11, %p3277_p6 }
  0x6c   : > { %3287 = shalt.err (!%p3284_p13)
}
  0x6d   : > { %s3335_s23 = smov 64   ;;  %s3336_s15 = smov 4  }
  0x6e   : > { %2982 = dma.hbm_to_vmem [thread:$0]  (!%p3456_p8), %s3509_s25, 4096, %s3514_s13, %s3474_s16, %s3335_s23, %s3335_s23, %s3336_s15  }
  0x6f   : > { %p4034_p10 = scmp.ne.s32.totalorder %s4032_s12, 0 }
  0x70   : > { %s529_s21 = sand.u32 (!%p4034_p10), 1, %s3318_s26   ;;  %p4035_p9 = scmp.ne.s32.totalorder (!%p4034_p10), %s4025_s17, 0 }
  0x71   : > { %527 = sbr.rel (%p4034_p10) target bundleno = 3852 (0xf0c), region = 72  ;;  %s530_s27 = scalar_lea.sflag (!%p4034_p10), [#allocation4], %s529_s21 }
  0x72   : > { %s2965_s24 = smul.u32 (!%p4034_p10), 192, %s529_s21 }
  0x74   : > { %s3579_s0 = scalar_lea.vmem (!%p4034_p10), [#allocation3], %s2965_s24 }
  0x78   : > { %3305 = dma.done.wait (%p4035_p9), %s530_s27, 3072  }
  0x79   : > { %3307 = vsyncadd (%p4035_p9), %s530_s27, 4294964224  ;;  %s538_s9 = sand.u32 1, %s3432_s29   ;;  %s2657_s19 = sshll.u32 %s529_s21, 8 }
  0x7a   : > { %s539_s13 = scalar_lea.sflag [#allocation6], %s538_s9  ;;  %s3586_s16 = scalar_lea.vmem [#allocation5], %s2657_s19 }
  0x7b   : > { %3309 = dma.done.wait (%p4035_p9), %s539_s13, 8192  }
  0x7c   : > { %3311 = vsyncadd (%p4035_p9), %s539_s13, 4294959104  ;;  %p630_p8 = scmp.lt.s32.totalorder %s3432_s29, 1  ;;  %s4036_s5 = sld [smem:[#allocation15_spill]] }
  0x7d   : > { %s4037_s9 = sld [smem:[#allocation18_spill]]  ;;  %p2662_p0 = scmp.ne.s32.totalorder %s3432_s29, 0 }
  0x7e   : > { %s3594_s12 = scalar_select %p630_p8, %s3432_s29, 1 }
  0x7f   : > { %669 = sbr.rel (%p2662_p0) target bundleno = 136 (0x88), region = 88  ;;  %s4038_s25 = sld [smem:[#allocation13_spill]] (!%p2662_p0) }
  0x80   : > { %s2966_s14 = smul.u32 3, %s3594_s12  ;;  %s2781_s20 = sshll.u32 %s3594_s12, 6 }
  0x81   : > { %s653_s11 = scalar_lea.vmem %s4001_s8, %s3594_s12  ;;  %s2661_s23 = sshll.u32 %s3594_s12, 2 }
  0x82   : > { %s3609_s21 = scalar_lea.vmem %s4036_s5, %s2781_s20  ;;  %s3618_s28 = scalar_lea.vmem %s3997_s4, %s2966_s14 }
  0x83   : > { %s3632_s5 = scalar_lea.vmem %s4003_s10, %s2661_s23  ;;  %s660_s13 = scalar_lea.vmem %s4037_s9, %s3594_s12 }
  0x84   : > { %s3638_s14 = scalar_lea.vmem [#allocation7], %s2657_s19 }
  0x85   : > { %s4039_s17 = smov (!%p2662_p0), %s4038_s25  ;;  %v670_v0 = vld [vmem:[%s4038_s25] sm:$0xff] (!%p2662_p0) }
  0x86   : > { %v671_v1 = vld [vmem:[%s4039_s17 + $0x8] sm:$0xff]  ;;  %672 = vst [vmem:[#allocation2] sm:$0xff] %v670_v0 }
  0x87   : > { %673 = vst [vmem:[#allocation2 + $0x8] sm:$0xff] %v671_v1 }
  0x88 PF: > { %v3028_v4 = vld [vmem:[%s3579_s0 + $0x4] ss:$12 sps:$4 sm:$0xff]   ;;  %v3030_v5 = vld [vmem:[%s3579_s0] ss:$12 sps:$4 sm:$0xff]   ;;  %v3337_v6 = vmov 0.0   ;;  %v3338_v32 = vmov 0   ;;  %s4040_s19 = scalar_lea.vmem %s3994_s1, %s3594_s12  ;;  %s4041_s20 = scalar_lea.vmem %s3995_s2, %s3594_s12  ;;  %v752_v55 = vlaneseq }
  0x89   : > { %2863 = vmatprep.subr.bf16.mxu1 %v3337_v6  ;;  %v3031_v7 = vld [vmem:[%s3579_s0 + $0x8] ss:$12 sps:$4 sm:$0xff]   ;;  %895 = vmatprep.subr.bf16.mxu0 %v3028_v4  ;;  %v3034_v17 = vld [vmem:[%s3579_s0 + $0x18] ss:$12 sps:$4 sm:$0xff]   ;;  %v3035_v18 = vld [vmem:[%s3579_s0 + $0x20] ss:$12 sps:$4 sm:$0xff]   ;;  %s4042_s3 = scalar_lea.vmem %s3999_s6, %s3594_s12  ;;  %s4043_s25 = scalar_lea.vmem %s4000_s7, %s3594_s12 }
  0x8a   : > { %v3032_v8 = vld [vmem:[%s3579_s0 + $0x1c] ss:$12 sps:$4 sm:$0xff]   ;;  %896 = vmatpush1.bf16.msra.mxu0 %v3030_v5  ;;  %2864 = vmatpush3.bf16.msra.mxu1 %v3031_v7  ;;  %v3036_v19 = vld [vmem:[%s3579_s0 + $0x34] ss:$12 sps:$4 sm:$0xff]   ;;  %v3039_v21 = vld [vmem:[%s3579_s0 + $0x38] ss:$12 sps:$4 sm:$0xff]  }
  0x8b   : > { %897 = vmatprep.subr.bf16.mxu0 %v3032_v8  ;;  %2865 = vmatprep.subr.bf16.mxu1 %v3337_v6  ;;  %v3038_v20 = vld [vmem:[%s3579_s0 + $0x30] ss:$12 sps:$4 sm:$0xff]   ;;  %v3040_v22 = vld [vmem:[%s3579_s0 + $0x4c] ss:$12 sps:$4 sm:$0xff]   ;;  %v3042_v23 = vld [vmem:[%s3579_s0 + $0x48] ss:$12 sps:$4 sm:$0xff]  }
  0x8c   : > { %v3043_v24 = vld [vmem:[%s3579_s0 + $0x50] ss:$12 sps:$4 sm:$0xff]   ;;  %v3046_v26 = vld [vmem:[%s3579_s0 + $0x60] ss:$12 sps:$4 sm:$0xff]   ;;  %v3047_v27 = vld [vmem:[%s3579_s0 + $0x68] ss:$12 sps:$4 sm:$0xff]   ;;  %927 = vmatprep.mubr.bf16.mxu0 %v3338_v32 }
  0x8d   : > { %v3044_v25 = vld [vmem:[%s3579_s0 + $0x64] ss:$12 sps:$4 sm:$0xff]   ;;  %v3048_v28 = vld [vmem:[%s3579_s0 + $0x7c] ss:$12 sps:$4 sm:$0xff]   ;;  %v3051_v30 = vld [vmem:[%s3579_s0 + $0x80] ss:$12 sps:$4 sm:$0xff]  }
  0x8e   : > { %v675_v3 = vld [vmem:[#allocation2 + $0x8] sm:$0xff]  ;;  %898 = vmatpush1.bf16.msra.mxu0 %v3034_v17  ;;  %2866 = vmatpush3.bf16.msra.mxu1 %v3035_v18  ;;  %v3052_v31 = vld [vmem:[%s3579_s0 + $0x94] ss:$12 sps:$4 sm:$0xff]   ;;  %vm3339_vm0 = vmmov 0   ;;  %v2663_v46 = vld [vmem:[%s4040_s19] ss:$0 sm:$0xff] }
  0x8f   : > { %v674_v2 = vld [vmem:[#allocation2] sm:$0xff]  ;;  %2867 = vmatprep.subr.bf16.mxu1 %v3337_v6  ;;  %899 = vmatprep.subr.bf16.mxu0 %v3036_v19  ;;  %v3050_v29 = vld [vmem:[%s3579_s0 + $0x78] ss:$12 sps:$4 sm:$0xff]   ;;  %v3708_v56 = vshrl.u32 %v752_v55, 7  ;;  %vm991_vm1 = vcmask 261120   ;;  %vm1041_vm3 = vcmask 130048  }
  0x90   : > { %678 = vadd.xlane.f32.xlu0 %v674_v2  ;;  %2879 = vmatprep.mubr.msk.bf16.mxu1 %vm3339_vm0, %v3337_v6  ;;  %v3054_v33 = vld [vmem:[%s3579_s0 + $0x90] ss:$12 sps:$4 sm:$0xff]   ;;  %v3055_v34 = vld [vmem:[%s3579_s0 + $0x98] ss:$12 sps:$4 sm:$0xff]   ;;  %v3058_v36 = vld [vmem:[%s3579_s0 + $0xa8] ss:$12 sps:$4 sm:$0xff]  }
  0x91   : > { %v3056_v35 = vld [vmem:[%s3579_s0 + $0xac] ss:$12 sps:$4 sm:$0xff]   ;;  %v3059_v37 = vld [vmem:[%s3579_s0 + $0xb0] ss:$12 sps:$4 sm:$0xff]   ;;  %v754_v57 = vsub.s32 0, %v3708_v56  ;;  %v762_v59 = vsub.s32 2, %v3708_v56 }
  0x92   : > { %900 = vmatpush1.bf16.msra.mxu0 %v3038_v20  ;;  %2868 = vmatpush3.bf16.msra.mxu1 %v3039_v21  ;;  %v2664_v50 = vld [vmem:[%s4041_s20] ss:$0 sm:$0xff]  ;;  %v758_v60 = vsub.s32 1, %v3708_v56  ;;  %s3341_s15 = smov 64   ;;  %s3342_s24 = smov 32  }
  0x93   : > { %2869 = vmatprep.subr.bf16.mxu1 %v3337_v6  ;;  %901 = vmatprep.subr.bf16.mxu0 %v3040_v22  ;;  %v750_v58 = vld [vmem:[%s3618_s28] sm:$0x7]  ;;  %s3340_s28 = smov 96   ;;  %s4045_s19 = sld [smem:[#allocation19_spill]] }
  0x94   : > { %680 = vadd.xlane.f32.xlu0 %v675_v3  ;;  %v755_v61 = vrot.slane %v750_v58, %v754_v57  ;;  %v763_v62 = vrot.slane %v750_v58, %v762_v59  ;;  %v759_v1 = vrot.slane %v750_v58, %v758_v60 }
  0x96   : > { %902 = vmatpush1.bf16.msra.mxu0 %v3042_v23  ;;  %2870 = vmatpush3.bf16.msra.mxu1 %v3043_v24  ;;  %v3744_v24 = vand.u32 127, %v752_v55 }
  0x97   : > { %2871 = vmatprep.subr.bf16.mxu1 %v3337_v6  ;;  %903 = vmatprep.subr.bf16.mxu0 %v3044_v25  ;;  %v3747_v25 = vadd.s32 8, %v3708_v56 }
  0x98   : > { %vm986_vm2 = vcmp.le.s32.totalorder %v3744_v24, %v3708_v56 }
  0x99   : > { %vm987_vm4 = vcmp.le.s32.totalorder %v3744_v24, %v3747_v25  ;;  %v3066_v25 = vld [vmem:[%s3609_s21 + $0x30] sm:$0xff]  }
  0x9a   : > { %904 = vmatpush1.bf16.msra.mxu0 %v3046_v26  ;;  %2872 = vmatpush3.bf16.msra.mxu1 %v3047_v27 }
  0x9b   : > { %905 = vmatprep.subr.bf16.mxu0 %v3048_v28  ;;  %2873 = vmatprep.subr.bf16.mxu1 %v3337_v6 }
  0x9e   : > { %906 = vmatpush1.bf16.msra.mxu0 %v3050_v29  ;;  %2874 = vmatpush3.bf16.msra.mxu1 %v3051_v30 }
  0x9f   : > { %907 = vmatprep.subr.bf16.mxu0 %v3052_v31  ;;  %2875 = vmatprep.subr.bf16.mxu1 %v3337_v6 }
  0xa2   : > { %908 = vmatpush1.bf16.msra.mxu0 %v3054_v33  ;;  %2876 = vmatpush3.bf16.msra.mxu1 %v3055_v34 }
  0xa3   : > { %909 = vmatprep.subr.bf16.mxu0 %v3056_v35  ;;  %2877 = vmatprep.subr.bf16.mxu1 %v3337_v6 }
  0xa6   : > { %910 = vmatpush1.bf16.msra.mxu0 %v3058_v36  ;;  %2878 = vmatpush3.bf16.msra.mxu1 %v3059_v37 }
  0xa7   : > { %2889 = vmatprep.subr.bf16.mxu1 %v3337_v6  ;;  %2883 = vmatprep.subr.bf16.mxu0 %v3337_v6 }
 0x11d   : > { %v679_v9 = vpop.xlane.xlu0 %678 }
 0x11e   : > { %v683_v10 = vmul.f32 0.0078125, %v679_v9 }
 0x120   : > { %v3653_v11 = vsub.f32 %v674_v2, %v683_v10 }
 0x121   : > { %v681_v12 = vpop.xlane.xlu0 %680 }
 0x122   : > { %v684_v13 = vmul.f32 0.0078125, %v681_v12  ;;  %v687_v14 = vmul.f32 %v3653_v11, %v3653_v11 }
 0x124   : > { %v3657_v15 = vsub.f32 %v675_v3, %v684_v13  ;;  %689 = vadd.xlane.f32.xlu1 %v687_v14 }
 0x126   : > { %v688_v16 = vmul.f32 %v3657_v15, %v3657_v15 }
 0x128   : > { %691 = vadd.xlane.f32.xlu1 %v688_v16 }
 0x1b1   : > { %v690_v38 = vpop.xlane.xlu1 %689 }
 0x1b2   : > { %v693_v39 = vmul.f32 0.0078125, %v690_v38 }
 0x1b4   : > { %v695_v40 = vadd.f32 1e-05, %v693_v39 }
 0x1b5   : > { %v692_v41 = vpop.xlane.xlu1 %691 }
 0x1b6   : > { %3148 = vrsqrt.f32 %v695_v40  ;;  %v694_v42 = vmul.f32 0.0078125, %v692_v41 }
 0x1b8   : > { %v696_v43 = vadd.f32 1e-05, %v694_v42 }
 0x1ba   : > { %3150 = vrsqrt.f32 %v696_v43 }
 0x1c0   : > { %v3149_v44 = vpop.eup %3148 }
 0x1c1   : > { %v699_v45 = vmul.f32 %v3149_v44, %v3653_v11 }
 0x1c3   : > { %v707_v49 = vmul.f32 %v2663_v46, %v699_v45 }
 0x1c4   : > { %v3151_v47 = vpop.eup %3150 }
 0x1c5   : > { %v700_v48 = vmul.f32 %v3151_v47, %v3657_v15  ;;  %v715_v52 = vadd.f32 %v2664_v50, %v707_v49 }
 0x1c7   : > { %v708_v51 = vmul.f32 %v2663_v46, %v700_v48 }
 0x1c9   : > { %v716_v53 = vadd.f32 %v2664_v50, %v708_v51 }
 0x1cb   : > { %v717_v54 = vpack.c.bf16 %v716_v53, %v715_v52 }
 0x1cd   : > { %928 = vmatmul.mubr.bf16.vlgmr.msra.gmra.mrb[0].mxu0 %v717_v54  ;;  %2880 = vmatmul.mubr.bf16.vlgmr.msra.gmra.mrb[0].mxu1 %v717_v54 }
 0x1ce   : > { %2885 = vmatprep.mubr.msk.bf16.mxu0 %vm3339_vm0, %v3337_v6  ;;  %2891 = vmatprep.mubr.msk.bf16.mxu1 %vm3339_vm0, %v3337_v6 }
 0x2a0   : > { %v929_v63 = vpop.f32.mrb[0].mxu0  ;;  %v972_v0 = vpop.f32.mrb[0].mxu1 }
 0x2a1   : > { %v930_v2 = vadd.f32 %v929_v63, %v755_v61  ;;  %v931_v3 = vpop.f32.mrb[1].mxu0  ;;  %v2881_v4 = vpop.f32.mrb[1].mxu1  ;;  %v973_v8 = vadd.f32 %v972_v0, %v763_v62 }
 0x2a2   : > { %v933_v5 = vpop.f32.mrb[2].mxu0  ;;  %v975_v7 = vpop.f32.mrb[2].mxu1  ;;  %v932_v13 = vadd.f32 %v931_v3, %v759_v1 }
 0x2a3   : > { %v934_v9 = vadd.f32 %v933_v5, %v755_v61  ;;  %v976_v10 = vadd.f32 %v975_v7, %v763_v62  ;;  %v935_v11 = vpop.f32.mrb[3].mxu0  ;;  %v2882_v12 = vpop.f32.mrb[3].mxu1  ;;  %v979_v15 = vmul.f32 0.17677669, %v930_v2 }
 0x2a4   : > { %v936_v14 = vadd.f32 %v935_v11, %v759_v1  ;;  %v3062_v11 = vld [vmem:[%s3609_s21 + $0x10] sm:$0xff]   ;;  %v3063_v12 = vld [vmem:[%s3609_s21 + $0x18] sm:$0xff]  }
 0x2a5   : > { %v980_v16 = vmul.f32 0.17677669, %v934_v9  ;;  %v3720_v17 = vpack.c.bf16 %v976_v10, %v973_v8 }
 0x2a6   : > { %v3722_v18 = vpack.c.bf16 %v936_v14, %v932_v13 }
 0x2a7   : > { %v3724_v19 = vpack.c.bf16 %v980_v16, %v979_v15  ;;  %2890 = vmatpush3.bf16.msra.mxu1 %v3720_v17 }
 0x2a8   : > { %1118 = vrot.lane.b32.xlu0 %v3722_v18, %s3340_s28  ;;  %v996_v20 = vsel %vm991_vm1, %v3722_v18, 0  ;;  %2901 = vmatprep.subr.bf16.mxu1 %v3337_v6 }
 0x2a9   : > { %2884 = vmatpush3.bf16.xpose.msra.mxu0 %v996_v20  ;;  %1115 = vrot.lane.b32.xlu1 %v3724_v19, %s3340_s28 }
 0x2aa   : > { %2895 = vmatprep.subr.bf16.mxu0 %v3337_v6 }
 0x2b0   : > { %2886 = vmatmul.mubr.msk.bf16.vlgmr.msra.gmra.mrb[4].mxu0 %vm991_vm1, %v3724_v19 }
 0x2b1   : > { %2897 = vmatprep.mubr.msk.bf16.mxu0 %vm3339_vm0, %v3337_v6 }
 0x31a   : > { %v1119_v21 = vpop.permute.xlu0 %1118 }
 0x31b   : > { %v1124_v22 = vsel %vm991_vm1, %v1119_v21, 0  ;;  %v1116_v23 = vpop.permute.xlu1 %1115 }
 0x31c   : > { %2896 = vmatpush3.bf16.xpose.msra.mxu0 %v1124_v22 }
 0x31d   : > { %2907 = vmatprep.subr.bf16.mxu0 %v3337_v6 }
 0x323   : > { %2898 = vmatmul.mubr.msk.bf16.vlgmr.msra.gmra.mrb[8].mxu0 %vm991_vm1, %v1116_v23  ;;  %v3060_v23 = vld [vmem:[%s3609_s21] sm:$0xff]  }
 0x324   : > { %2911 = vmatprep.mubr.msk.bf16.mxu0 %vm3339_vm0, %v3337_v6  ;;  %2908 = vmatpush3.bf16.msra.mxu0 %v3062_v11  ;;  %v3064_v11 = vld [vmem:[%s3609_s21 + $0x20] sm:$0xff]  }
 0x325   : > { %2909 = vmatprep.subr.bf16.mxu0 %v3337_v6 }
 0x328   : > { %2910 = vmatpush3.bf16.msra.mxu0 %v3063_v12 }
 0x329   : > { %2923 = vmatprep.subr.bf16.mxu0 %v3337_v6 }
 0x383   : > { %v1032_v26 = vpop.f32.mrb[4].mxu0 }
 0x384   : > { %v1039_v27 = vsel %vm986_vm2, %v1032_v26, -1e+30  ;;  %v2887_v28 = vpop.f32.mrb[5].mxu0 }
 0x385   : > { %v1035_v29 = vpop.f32.mrb[6].mxu0  ;;  %v1042_v30 = vsel %vm1041_vm3, %v1039_v27, -inf }
 0x386   : > { %v1040_v31 = vsel %vm987_vm4, %v1035_v29, -1e+30  ;;  %1043 = vmax.xlane.f32.xlu1 %v1042_v30  ;;  %v2888_v33 = vpop.f32.mrb[7].mxu0 }
 0x387   : > { %v1045_v34 = vsel %vm1041_vm3, %v1040_v31, -inf }
 0x388   : > { %1046 = vmax.xlane.f32.xlu0 %v1045_v34 }
 0x3f6   : > { %v1160_v35 = vpop.f32.mrb[8].mxu0 }
 0x3f7   : > { %v1167_v36 = vsel %vm986_vm2, %v1160_v35, -1e+30  ;;  %v2899_v37 = vpop.f32.mrb[9].mxu0 }
 0x3f8   : > { %v1163_v38 = vpop.f32.mrb[10].mxu0  ;;  %v1169_v39 = vsel %vm1041_vm3, %v1167_v36, -inf }
 0x3f9   : > { %v1168_v40 = vsel %vm987_vm4, %v1163_v38, -1e+30  ;;  %1170 = vmax.xlane.f32.xlu0 %v1169_v39  ;;  %v2900_v41 = vpop.f32.mrb[11].mxu0 }
 0x3fa   : > { %v1172_v42 = vsel %vm1041_vm3, %v1168_v40, -inf }
 0x3fb   : > { %1173 = vmax.xlane.f32.xlu1 %v1172_v42 }
 0x413   : > { %v1044_v43 = vpop.xlane.xlu1 %1043 }
 0x414   : > { %v1048_v44 = vsub.f32 %v1039_v27, %v1044_v43  ;;  %v3061_v27 = vld [vmem:[%s3609_s21 + $0x8] sm:$0xff]  }
 0x415   : > { %v1047_v45 = vpop.xlane.xlu0 %1046 }
 0x416   : > { %v1050_v46 = vmul.f32 1.442695, %v1048_v44  ;;  %v1049_v47 = vsub.f32 %v1040_v31, %v1047_v45 }
 0x418   : > { %3152 = vpow2.f32 %v1050_v46  ;;  %v1052_v48 = vmul.f32 1.442695, %v1049_v47 }
 0x41a   : > { %3154 = vpow2.f32 %v1052_v48 }
 0x422   : > { %v3153_v49 = vpop.eup %3152 }
 0x423   : > { %v1054_v50 = vsel %vm1041_vm3, %v3153_v49, 0.0 }
 0x424   : > { %v3155_v51 = vpop.eup %3154  ;;  %1055 = vadd.xlane.f32.xlu0 %v1054_v50 }
 0x425   : > { %v1057_v52 = vsel %vm1041_vm3, %v3155_v51, 0.0 }
 0x426   : > { %1058 = vadd.xlane.f32.xlu1 %v1057_v52 }
 0x486   : > { %v1171_v53 = vpop.xlane.xlu0 %1170 }
 0x487   : > { %v1175_v54 = vsub.f32 %v1167_v36, %v1171_v53 }
 0x488   : > { %v1174_v55 = vpop.xlane.xlu1 %1173 }
 0x489   : > { %v1177_v58 = vmul.f32 1.442695, %v1175_v54  ;;  %v1176_v61 = vsub.f32 %v1168_v40, %v1174_v55 }
 0x48b   : > { %3156 = vpow2.f32 %v1177_v58  ;;  %v1179_v62 = vmul.f32 1.442695, %v1176_v61 }
 0x48d   : > { %3158 = vpow2.f32 %v1179_v62 }
 0x495   : > { %v3157_v63 = vpop.eup %3156 }
 0x496   : > { %v1181_v0 = vsel %vm1041_vm3, %v3157_v63, 0.0 }
 0x497   : > { %v3159_v1 = vpop.eup %3158  ;;  %1182 = vadd.xlane.f32.xlu0 %v1181_v0 }
 0x498   : > { %v1184_v2 = vsel %vm1041_vm3, %v3159_v1, 0.0 }
 0x499   : > { %1185 = vadd.xlane.f32.xlu1 %v1184_v2 }
 0x4aa   : > { %1359 = vrot.lane.b32.xlu1 %v3722_v18, %s3341_s15 }
 0x4ad   : > { %1193 = vrot.lane.b32.xlu0 %v3720_v17, %s3340_s28 }
 0x4ae   : > { %1357 = vrot.lane.b32.xlu1 %v3724_v19, %s3341_s15 }
 0x4b1   : > { %v1056_v3 = vpop.xlane.xlu0 %1055 }
 0x4b2   : > { %3160 = vrcp.f32 %v1056_v3 }
 0x4b3   : > { %v1059_v4 = vpop.xlane.xlu1 %1058 }
 0x4b4   : > { %3162 = vrcp.f32 %v1059_v4 }
 0x4bc   : > { %v3161_v5 = vpop.eup %3160 }
 0x4bd   : > { %v1062_v8 = vmul.f32 %v3161_v5, %v3153_v49 }
 0x4be   : > { %v3163_v7 = vpop.eup %3162 }
 0x4bf   : > { %v1063_v9 = vmul.f32 %v3163_v7, %v3155_v51 }
 0x4c1   : > { %v1064_v10 = vpack.c.bf16 %v1063_v9, %v1062_v8 }
 0x4c3   : > { %2892 = vmatmul.mubr.msk.bf16.vlgmr.msra.gmra.mrb[4].mxu1 %vm1041_vm3, %v1064_v10 }
 0x4c4   : > { %2903 = vmatprep.mubr.msk.bf16.mxu1 %vm3339_vm0, %v3337_v6 }
 0x524   : > { %v1183_v13 = vpop.xlane.xlu0 %1182 }
 0x525   : > { %3164 = vrcp.f32 %v1183_v13 }
 0x526   : > { %v1186_v14 = vpop.xlane.xlu1 %1185 }
 0x527   : > { %3166 = vrcp.f32 %v1186_v14 }
 0x528   : > { %v1194_v15 = vpop.permute.xlu0 %1193 }
 0x529   : > { %2902 = vmatpush3.bf16.msra.mxu1 %v1194_v15 }
 0x52a   : > { %2915 = vmatprep.subr.bf16.mxu1 %v3337_v6  ;;  %v1360_v36 = vpop.permute.xlu1 %1359 }
 0x52b   : > { %v1365_v40 = vsel %vm991_vm1, %v1360_v36, 0 }
 0x52e   : > { %v1358_v41 = vpop.permute.xlu1 %1357 }
 0x52f   : > { %v3165_v16 = vpop.eup %3164 }
 0x530   : > { %v1189_v21 = vmul.f32 %v3165_v16, %v3157_v63 }
 0x531   : > { %v3167_v20 = vpop.eup %3166 }
 0x532   : > { %v1190_v22 = vmul.f32 %v3167_v20, %v3159_v1 }
 0x534   : > { %v1191_v26 = vpack.c.bf16 %v1190_v22, %v1189_v21 }
 0x536   : > { %2904 = vmatmul.mubr.msk.bf16.vlgmr.msra.gmra.mrb[8].mxu1 %vm1041_vm3, %v1191_v26  ;;  %v3065_v26 = vld [vmem:[%s3609_s21 + $0x28] sm:$0xff]  }
 0x537   : > { %2916 = vmatpush3.bf16.msra.mxu1 %v3060_v23  ;;  %2919 = vmatprep.mubr.msk.bf16.mxu1 %vm3339_vm0, %v3337_v6 }
 0x538   : > { %2917 = vmatprep.subr.bf16.mxu1 %v3337_v6 }
 0x53b   : > { %2918 = vmatpush3.bf16.msra.mxu1 %v3061_v27 }
 0x53c   : > { %2929 = vmatprep.subr.bf16.mxu1 %v3337_v6 }
 0x596   : > { %v1102_v28 = vpop.f32.mrb[4].mxu1 }
 0x597   : > { %v2893_v29 = vpop.f32.mrb[5].mxu1 }
 0x598   : > { %v1105_v30 = vpop.f32.mrb[6].mxu1 }
 0x599   : > { %v1109_v31 = vpack.c.bf16 %v1105_v30, %v1102_v28  ;;  %v2894_v33 = vpop.f32.mrb[7].mxu1 }
 0x59b   : > { %2920 = vmatmul.mubr.msk.bf16.vlgmr.msra.gmra.mrb[12].mxu1 %vm991_vm1, %v1109_v31 }
 0x59c   : > { %2931 = vmatprep.mubr.msk.bf16.mxu1 %vm3339_vm0, %v3337_v6 }
 0x609   : > { %v1233_v34 = vpop.f32.mrb[8].mxu1 }
 0x60a   : > { %v2905_v35 = vpop.f32.mrb[9].mxu1 }
 0x60b   : > { %v1236_v37 = vpop.f32.mrb[10].mxu1 }
 0x60c   : > { %v1240_v38 = vpack.c.bf16 %v1236_v37, %v1233_v34  ;;  %v2906_v39 = vpop.f32.mrb[11].mxu1 }
 0x60e   : > { %2912 = vmatmul.mubr.msk.bf16.vlgmr.msra.gmra.mrb[12].mxu0 %vm991_vm1, %v1240_v38 }
 0x60f   : > { %2924 = vmatpush3.bf16.xpose.msra.mxu0 %v1365_v40  ;;  %2925 = vmatprep.mubr.msk.bf16.mxu0 %vm3339_vm0, %v3337_v6 }
 0x610   : > { %2935 = vmatprep.subr.bf16.mxu0 %v3337_v6 }
 0x616   : > { %2926 = vmatmul.mubr.msk.bf16.vlgmr.msra.gmra.mrb[16].mxu0 %vm991_vm1, %v1358_v41 }
 0x617   : > { %2939 = vmatprep.mubr.msk.bf16.mxu0 %vm3339_vm0, %v3337_v6  ;;  %2936 = vmatpush3.bf16.msra.mxu0 %v3064_v11 }
 0x618   : > { %2937 = vmatprep.subr.bf16.mxu0 %v3337_v6 }
 0x61b   : > { %2938 = vmatpush3.bf16.msra.mxu0 %v3065_v26  ;;  %v3071_v26 = vld [vmem:[%s3586_s16 + $0x8] ss:$16 sps:$4 sm:$0xff]  }
 0x61c   : > { %2949 = vmatprep.subr.bf16.mxu0 %v3337_v6 }
 0x66e   : > { %v1350_v42 = vpop.f32.mrb[12].mxu1 }
 0x66f   : > { %v2921_v43 = vpop.f32.mrb[13].mxu1 }
 0x670   : > { %v1353_v44 = vpop.f32.mrb[14].mxu1 }
 0x671   : > { %v2922_v45 = vpop.f32.mrb[15].mxu1 }
 0x6e1   : > { %v1294_v46 = vpop.f32.mrb[12].mxu0 }
 0x6e2   : > { %v3805_v47 = vadd.f32 %v1350_v42, %v1294_v46  ;;  %v2913_v48 = vpop.f32.mrb[13].mxu0 }
 0x6e3   : > { %v1297_v49 = vpop.f32.mrb[14].mxu0 }
 0x6e4   : > { %v3807_v50 = vadd.f32 %v1353_v44, %v1297_v49  ;;  %v2914_v51 = vpop.f32.mrb[15].mxu0 }
 0x6e9   : > { %v1401_v52 = vpop.f32.mrb[16].mxu0 }
 0x6ea   : > { %v1408_v53 = vsel %vm986_vm2, %v1401_v52, -1e+30  ;;  %v2927_v54 = vpop.f32.mrb[17].mxu0 }
 0x6eb   : > { %v1404_v55 = vpop.f32.mrb[18].mxu0  ;;  %v1410_v58 = vsel %vm1041_vm3, %v1408_v53, -inf }
 0x6ec   : > { %v1409_v61 = vsel %vm987_vm4, %v1404_v55, -1e+30  ;;  %1411 = vmax.xlane.f32.xlu1 %v1410_v58  ;;  %v2928_v62 = vpop.f32.mrb[19].mxu0 }
 0x6ed   : > { %v1413_v63 = vsel %vm1041_vm3, %v1409_v61, -inf }
 0x6ee   : > { %1414 = vmax.xlane.f32.xlu0 %v1413_v63 }
 0x6fd   : > { %1433 = vrot.lane.b32.xlu1 %v3720_v17, %s3341_s15 }
 0x701   : > { %1543 = vrot.lane.b32.xlu1 %v3724_v19, %s3342_s24 }
 0x779   : > { %v1412_v0 = vpop.xlane.xlu1 %1411 }
 0x77a   : > { %v1416_v1 = vsub.f32 %v1408_v53, %v1412_v0 }
 0x77b   : > { %v1415_v2 = vpop.xlane.xlu0 %1414 }
 0x77c   : > { %v1418_v3 = vmul.f32 1.442695, %v1416_v1  ;;  %v1417_v4 = vsub.f32 %v1409_v61, %v1415_v2 }
 0x77d   : > { %v1434_v5 = vpop.permute.xlu1 %1433 }
 0x77e   : > { %3168 = vpow2.f32 %v1418_v3  ;;  %v1420_v7 = vmul.f32 1.442695, %v1417_v4  ;;  %2930 = vmatpush3.bf16.msra.mxu1 %v1434_v5 }
 0x77f   : > { %2943 = vmatprep.subr.bf16.mxu1 %v3337_v6 }
 0x780   : > { %3170 = vpow2.f32 %v1420_v7 }
 0x788   : > { %v3169_v8 = vpop.eup %3168 }
 0x789   : > { %v1422_v9 = vsel %vm1041_vm3, %v3169_v8, 0.0 }
 0x78a   : > { %v3171_v10 = vpop.eup %3170  ;;  %1423 = vadd.xlane.f32.xlu0 %v1422_v9 }
 0x78b   : > { %v1425_v19 = vsel %vm1041_vm3, %v3171_v10, 0.0 }
 0x78e   : > { %1426 = vadd.xlane.f32.xlu0 %v1425_v19 }
 0x7a4   : > { %1545 = vrot.lane.b32.xlu0 %v3722_v18, %s3342_s24  ;;  %v1544_v18 = vpop.permute.xlu1 %1543 }
 0x817   : > { %v1424_v12 = vpop.xlane.xlu0 %1423 }
 0x818   : > { %3172 = vrcp.f32 %v1424_v12  ;;  %v2709_v12 = vld [vmem:[%s4042_s3] ss:$0 sm:$0xff] }
 0x81b   : > { %v1427_v13 = vpop.xlane.xlu0 %1426 }
 0x81c   : > { %3174 = vrcp.f32 %v1427_v13  ;;  %v3196_v13 = vld [vmem:[#allocation2] sm:$0xff] }
 0x81f   : > { %v1546_v21 = vpop.permute.xlu0 %1545 }
 0x820   : > { %v1551_v23 = vsel %vm991_vm1, %v1546_v21, 0 }
 0x822   : > { %v3173_v14 = vpop.eup %3172 }
 0x823   : > { %v1430_v16 = vmul.f32 %v3173_v14, %v3169_v8 }
 0x826   : > { %v3175_v15 = vpop.eup %3174 }
 0x827   : > { %v1431_v20 = vmul.f32 %v3175_v15, %v3171_v10 }
 0x829   : > { %v1432_v22 = vpack.c.bf16 %v1431_v20, %v1430_v16 }
 0x82b   : > { %2932 = vmatmul.mubr.msk.bf16.vlgmr.msra.gmra.mrb[16].mxu1 %vm1041_vm3, %v1432_v22 }
 0x82c   : > { %2944 = vmatpush3.bf16.xpose.msra.mxu1 %v1551_v23  ;;  %2945 = vmatprep.mubr.msk.bf16.mxu1 %vm3339_vm0, %v3337_v6  ;;  %v3068_v23 = vld [vmem:[%s3586_s16] ss:$16 sps:$4 sm:$0xff]  }
 0x82d   : > { %2955 = vmatprep.subr.bf16.mxu1 %v3337_v6 }
 0x833   : > { %2946 = vmatmul.mubr.msk.bf16.vlgmr.msra.gmra.mrb[20].mxu1 %vm991_vm1, %v1544_v18  ;;  %v3070_v18 = vld [vmem:[%s3586_s16 + $0x4] ss:$16 sps:$4 sm:$0xff]  }
 0x834   : > { %2959 = vmatprep.mubr.msk.bf16.mxu1 %vm3339_vm0, %v3337_v6  ;;  %2956 = vmatpush3.bf16.msra.mxu1 %v3066_v25  ;;  %v3092_v25 = vld [vmem:[%s3586_s16 + $0x80] ss:$16 sps:$4 sm:$0xff]  }
 0x835   : > { %2957 = vmatprep.subr.bf16.mxu1 %v3337_v6 }
 0x8fe   : > { %v1473_v27 = vpop.f32.mrb[16].mxu1 }
 0x8ff   : > { %v2933_v28 = vpop.f32.mrb[17].mxu1 }
 0x900   : > { %v1476_v29 = vpop.f32.mrb[18].mxu1  ;;  %v3076_v28 = vld [vmem:[%s3586_s16 + $0x24] ss:$16 sps:$4 sm:$0xff]  }
 0x901   : > { %v1480_v30 = vpack.c.bf16 %v1476_v29, %v1473_v27  ;;  %v2934_v31 = vpop.f32.mrb[19].mxu1  ;;  %v3073_v27 = vld [vmem:[%s3586_s16 + $0xc] ss:$16 sps:$4 sm:$0xff]  }
 0x902   : > { %v3079_v29 = vld [vmem:[%s3586_s16 + $0x2c] ss:$16 sps:$4 sm:$0xff]   ;;  %v3077_v31 = vld [vmem:[%s3586_s16 + $0x28] ss:$16 sps:$4 sm:$0xff]  }
 0x903   : > { %2940 = vmatmul.mubr.msk.bf16.vlgmr.msra.gmra.mrb[20].mxu0 %vm991_vm1, %v1480_v30  ;;  %v3074_v30 = vld [vmem:[%s3586_s16 + $0x20] ss:$16 sps:$4 sm:$0xff]  }
 0x904   : > { %2951 = vmatprep.mubr.msk.bf16.mxu0 %vm3339_vm0, %v3337_v6 }
 0x906   : > { %v1587_v33 = vpop.f32.mrb[20].mxu1 }
 0x907   : > { %v1594_v34 = vsel %vm986_vm2, %v1587_v33, -1e+30  ;;  %v2947_v35 = vpop.f32.mrb[21].mxu1 }
 0x908   : > { %v1590_v36 = vpop.f32.mrb[22].mxu1  ;;  %v1596_v37 = vsel %vm1041_vm3, %v1594_v34, -inf }
 0x909   : > { %v1595_v38 = vsel %vm987_vm4, %v1590_v36, -1e+30  ;;  %1597 = vmax.xlane.f32.xlu1 %v1596_v37  ;;  %v2948_v39 = vpop.f32.mrb[23].mxu1 }
 0x90a   : > { %v1599_v40 = vsel %vm1041_vm3, %v1595_v38, -inf }
 0x90b   : > { %1600 = vmax.xlane.f32.xlu0 %v1599_v40 }
 0x996   : > { %v1598_v41 = vpop.xlane.xlu1 %1597 }
 0x997   : > { %v1602_v42 = vsub.f32 %v1594_v34, %v1598_v41  ;;  %v3082_v41 = vld [vmem:[%s3586_s16 + $0x44] ss:$16 sps:$4 sm:$0xff]  }
 0x998   : > { %v1601_v43 = vpop.xlane.xlu0 %1600 }
 0x999   : > { %v1604_v44 = vmul.f32 1.442695, %v1602_v42  ;;  %v1603_v45 = vsub.f32 %v1595_v38, %v1601_v43  ;;  %v3085_v42 = vld [vmem:[%s3586_s16 + $0x4c] ss:$16 sps:$4 sm:$0xff]   ;;  %v3080_v43 = vld [vmem:[%s3586_s16 + $0x40] ss:$16 sps:$4 sm:$0xff]  }
 0x99b   : > { %3176 = vpow2.f32 %v1604_v44  ;;  %v1606_v46 = vmul.f32 1.442695, %v1603_v45  ;;  %v3083_v44 = vld [vmem:[%s3586_s16 + $0x48] ss:$16 sps:$4 sm:$0xff]   ;;  %v3088_v45 = vld [vmem:[%s3586_s16 + $0x64] ss:$16 sps:$4 sm:$0xff]  }
 0x99d   : > { %3178 = vpow2.f32 %v1606_v46  ;;  %v3091_v46 = vld [vmem:[%s3586_s16 + $0x6c] ss:$16 sps:$4 sm:$0xff]  }
 0x9a5   : > { %v3177_v48 = vpop.eup %3176 }
 0x9a6   : > { %v1608_v49 = vsel %vm1041_vm3, %v3177_v48, 0.0 }
 0x9a7   : > { %v3179_v51 = vpop.eup %3178  ;;  %1609 = vadd.xlane.f32.xlu0 %v1608_v49  ;;  %v3089_v49 = vld [vmem:[%s3586_s16 + $0x68] ss:$16 sps:$4 sm:$0xff]  }
 0x9a8   : > { %v1611_v24 = vsel %vm1041_vm3, %v3179_v51, 0.0 }
 0x9a9   : > { %1612 = vadd.xlane.f32.xlu1 %v1611_v24  ;;  %v3097_v24 = vld [vmem:[%s3586_s16 + $0x8c] ss:$16 sps:$4 sm:$0xff]  }
 0x9bd   : > { %1619 = vrot.lane.b32.xlu0 %v3720_v17, %s3342_s24 }
 0x9d6   : > { %v1534_v52 = vpop.f32.mrb[20].mxu0 }
 0x9d7   : > { %v1541_v53 = vadd.f32 %v1534_v52, %v3805_v47  ;;  %v2941_v54 = vpop.f32.mrb[21].mxu0  ;;  %v3067_v47 = vld [vmem:[%s3609_s21 + $0x38] sm:$0xff]  }
 0x9d8   : > { %v1537_v55 = vpop.f32.mrb[22].mxu0  ;;  %2958 = vmatpush3.bf16.msra.mxu1 %v3067_v47  ;;  %v3095_v52 = vld [vmem:[%s3586_s16 + $0x88] ss:$16 sps:$4 sm:$0xff]   ;;  %v3103_v54 = vld [vmem:[%s3586_s16 + $0xac] ss:$16 sps:$4 sm:$0xff]  }
 0x9d9   : > { %v1542_v58 = vadd.f32 %v1537_v55, %v3807_v50  ;;  %v2942_v61 = vpop.f32.mrb[23].mxu0  ;;  %2038 = vmatprep.subr.bf16.mxu1 %v3073_v27  ;;  %v3098_v55 = vld [vmem:[%s3586_s16 + $0xa0] ss:$16 sps:$4 sm:$0xff]   ;;  %v3120_v27 = vld [vmem:[%s3638_s14 + $0x48] sm:$0xff]  }
 0x9da   : > { %v3106_v61 = vld [vmem:[%s3586_s16 + $0xc4] ss:$16 sps:$4 sm:$0xff]  }
 0xa34   : > { %v1610_v62 = vpop.xlane.xlu0 %1609 }
 0xa35   : > { %3180 = vrcp.f32 %v1610_v62  ;;  %v3109_v62 = vld [vmem:[%s3586_s16 + $0xcc] ss:$16 sps:$4 sm:$0xff]  }
 0xa36   : > { %v1613_v63 = vpop.xlane.xlu1 %1612 }
 0xa37   : > { %3182 = vrcp.f32 %v1613_v63  ;;  %v3104_v63 = vld [vmem:[%s3586_s16 + $0xc0] ss:$16 sps:$4 sm:$0xff]  }
 0xa38   : > { %v1620_v0 = vpop.permute.xlu0 %1619 }
 0xa39   : > { %2950 = vmatpush3.bf16.msra.mxu0 %v1620_v0  ;;  %v3107_v0 = vld [vmem:[%s3586_s16 + $0xc8] ss:$16 sps:$4 sm:$0xff]  }
 0xa3a   : > { %1995 = vmatprep.subr.bf16.mxu0 %v3070_v18  ;;  %v3118_v18 = vld [vmem:[%s3638_s14] sm:$0xff]  }
 0xa3f   : > { %v3181_v17 = vpop.eup %3180 }
 0xa40   : > { %v1616_v2 = vmul.f32 %v3181_v17, %v3177_v48  ;;  %v3086_v48 = vld [vmem:[%s3586_s16 + $0x60] ss:$16 sps:$4 sm:$0xff]   ;;  %v3112_v17 = vld [vmem:[%s3586_s16 + $0xe4] ss:$16 sps:$4 sm:$0xff]  }
 0xa41   : > { %v3183_v1 = vpop.eup %3182 }
 0xa42   : > { %v1617_v3 = vmul.f32 %v3183_v1, %v3179_v51  ;;  %v3094_v51 = vld [vmem:[%s3586_s16 + $0x84] ss:$16 sps:$4 sm:$0xff]   ;;  %v3115_v1 = vld [vmem:[%s3586_s16 + $0xec] ss:$16 sps:$4 sm:$0xff]  }
 0xa44   : > { %v1618_v6 = vpack.c.bf16 %v1617_v3, %v1616_v2  ;;  %v3110_v2 = vld [vmem:[%s3586_s16 + $0xe0] ss:$16 sps:$4 sm:$0xff]   ;;  %v3113_v3 = vld [vmem:[%s3586_s16 + $0xe8] ss:$16 sps:$4 sm:$0xff]  }
 0xa46   : > { %2952 = vmatmul.mubr.msk.bf16.vlgmr.msra.gmra.mrb[24].mxu0 %vm1041_vm3, %v1618_v6 }
 0xa47   : > { %2027 = vmatprep.mubr.bf16.mxu0 %v3338_v32  ;;  %1996 = vmatpush1.bf16.msra.mxu0 %v3068_v23  ;;  %v3117_v23 = vld [vmem:[%s3638_s14 + $0xc0] sm:$0xff]  }
 0xa48   : > { %1997 = vmatprep.subr.bf16.mxu0 %v3076_v28  ;;  %v3121_v28 = vld [vmem:[%s3638_s14 + $0xc8] sm:$0xff]  }
 0xa4b   : > { %1998 = vmatpush1.bf16.msra.mxu0 %v3074_v30  ;;  %v3123_v30 = vld [vmem:[%s3638_s14 + $0x88] sm:$0xff]  }
 0xa4c   : > { %1999 = vmatprep.subr.bf16.mxu0 %v3082_v41  ;;  %v3133_v41 = vld [vmem:[%s3638_s14 + $0xe0] sm:$0xff]  }
 0xa4f   : > { %2000 = vmatpush1.bf16.msra.mxu0 %v3080_v43  ;;  %v3135_v43 = vld [vmem:[%s3638_s14 + $0xa0] sm:$0xff]  }
 0xa50   : > { %2001 = vmatprep.subr.bf16.mxu0 %v3088_v45  ;;  %v3137_v45 = vld [vmem:[%s3638_s14 + $0xe8] sm:$0xff]  }
 0xa53   : > { %2002 = vmatpush1.bf16.msra.mxu0 %v3086_v48  ;;  %v3139_v48 = vld [vmem:[%s3638_s14 + $0xa8] sm:$0xff]  }
 0xa54   : > { %2003 = vmatprep.subr.bf16.mxu0 %v3094_v51  ;;  %v3141_v51 = vld [vmem:[%s3638_s14 + $0xf0] sm:$0xff]  }
 0xa57   : > { %2004 = vmatpush1.bf16.msra.mxu0 %v3092_v25  ;;  %v3143_v25 = vld [vmem:[%s3638_s14 + $0xb0] sm:$0xff]  }
 0xb19   : > { %v1659_v50 = vpop.f32.mrb[24].mxu0 }
 0xb1a   : > { %v2953_v4 = vpop.f32.mrb[25].mxu0 }
 0xb1b   : > { %v1662_v5 = vpop.f32.mrb[26].mxu0 }
 0xb1c   : > { %v1666_v7 = vpack.c.bf16 %v1662_v5, %v1659_v50  ;;  %v2954_v8 = vpop.f32.mrb[27].mxu0 }
 0xb1e   : > { %2960 = vmatmul.mubr.msk.bf16.vlgmr.msra.gmra.mrb[24].mxu1 %vm991_vm1, %v1666_v7 }
 0xb1f   : > { %2070 = vmatprep.mubr.bf16.mxu1 %v3338_v32  ;;  %v3197_v32 = vld [vmem:[#allocation2 + $0x8] sm:$0xff]  ;;  %2039 = vmatpush1.bf16.msra.mxu1 %v3071_v26  ;;  %v3119_v26 = vld [vmem:[%s3638_s14 + $0x80] sm:$0xff]  }
 0xb20   : > { %2040 = vmatprep.subr.bf16.mxu1 %v3079_v29  ;;  %v3122_v29 = vld [vmem:[%s3638_s14 + $0x8] sm:$0xff]  }
 0xb23   : > { %2041 = vmatpush1.bf16.msra.mxu1 %v3077_v31  ;;  %v3124_v31 = vld [vmem:[%s3638_s14 + $0x50] sm:$0xff]  }
 0xb24   : > { %2042 = vmatprep.subr.bf16.mxu1 %v3085_v42  ;;  %v3134_v42 = vld [vmem:[%s3638_s14 + $0x20] sm:$0xff]  }
 0xb27   : > { %2043 = vmatpush1.bf16.msra.mxu1 %v3083_v44  ;;  %v3136_v44 = vld [vmem:[%s3638_s14 + $0x68] sm:$0xff]  }
 0xb28   : > { %2044 = vmatprep.subr.bf16.mxu1 %v3091_v46  ;;  %v3138_v46 = vld [vmem:[%s3638_s14 + $0x28] sm:$0xff]  }
 0xb2b   : > { %2045 = vmatpush1.bf16.msra.mxu1 %v3089_v49  ;;  %v3140_v49 = vld [vmem:[%s3638_s14 + $0x70] sm:$0xff]  }
 0xb2c   : > { %2046 = vmatprep.subr.bf16.mxu1 %v3097_v24  ;;  %v3142_v24 = vld [vmem:[%s3638_s14 + $0x30] sm:$0xff]  }
 0xb2f   : > { %2047 = vmatpush1.bf16.msra.mxu1 %v3095_v52  ;;  %v3144_v52 = vld [vmem:[%s3638_s14 + $0x78] sm:$0xff]  }
 0xb30   : > { %2048 = vmatprep.subr.bf16.mxu1 %v3103_v54  ;;  %v3146_v54 = vld [vmem:[%s3638_s14 + $0x38] sm:$0xff]  }
 0xbf1   : > { %v1720_v9 = vpop.f32.mrb[24].mxu1 }
 0xbf2   : > { %v1727_v10 = vadd.f32 %v1720_v9, %v1541_v53  ;;  %v2961_v19 = vpop.f32.mrb[25].mxu1  ;;  %v3100_v53 = vld [vmem:[%s3586_s16 + $0xa4] ss:$16 sps:$4 sm:$0xff]  }
 0xbf3   : > { %v1723_v11 = vpop.f32.mrb[26].mxu1  ;;  %2005 = vmatprep.subr.bf16.mxu0 %v3100_v53  ;;  %v3145_v53 = vld [vmem:[%s3638_s14 + $0xf8] sm:$0xff]  }
 0xbf4   : > { %v1729_v14 = vadd.f32 %v3196_v13, %v1727_v10  ;;  %v1728_v15 = vadd.f32 %v1723_v11, %v1542_v58  ;;  %v2962_v16 = vpop.f32.mrb[27].mxu1  ;;  %v3101_v58 = vld [vmem:[%s3586_s16 + $0xa8] ss:$16 sps:$4 sm:$0xff]   ;;  %2006 = vmatpush1.bf16.msra.mxu0 %v3098_v55  ;;  %v2710_v10 = vld [vmem:[%s4043_s25] ss:$0 sm:$0xff] }
 0xbf5   : > { %2049 = vmatpush1.bf16.msra.mxu1 %v3101_v58  ;;  %2007 = vmatprep.subr.bf16.mxu0 %v3106_v61  ;;  %v2711_v13 = vld [vmem:[%s653_s11] ss:$0 sm:$0xff]  ;;  %v3147_v55 = vld [vmem:[%s3638_s14 + $0xb8] sm:$0xff]   ;;  %v1829_v61 = vsub.s32 3, %v3708_v56 }
 0xbf6   : > { %v1730_v20 = vadd.f32 %v3197_v32, %v1728_v15  ;;  %v3867_v21 = vadd.f32 %v2709_v12, %v1729_v14  ;;  %2050 = vmatprep.subr.bf16.mxu1 %v3109_v62  ;;  %v1813_v58 = vld [vmem:[%s3632_s5] sm:$0xf] }
 0xbf7   : > { %v1818_v62 = vrot.slane %v1813_v58, %v754_v57 }
 0xbf8   : > { %1742 = vadd.xlane.f32.xlu1 %v3867_v21  ;;  %v3870_v22 = vadd.f32 %v2709_v12, %v1730_v20  ;;  %2008 = vmatpush1.bf16.msra.mxu0 %v3104_v63  ;;  %v3116_v20 = vld [vmem:[%s3638_s14 + $0x40] sm:$0xff]   ;;  %v1826_v63 = vrot.slane %v1813_v58, %v762_v59 }
 0xbf9   : > { %2051 = vmatpush1.bf16.msra.mxu1 %v3107_v0  ;;  %2009 = vmatprep.subr.bf16.mxu0 %v3112_v17 }
 0xbfa   : > { %2052 = vmatprep.subr.bf16.mxu1 %v3115_v1  ;;  %v1822_v1 = vrot.slane %v1813_v58, %v758_v60 }
 0xbfc   : > { %1744 = vadd.xlane.f32.xlu1 %v3870_v22  ;;  %2010 = vmatpush1.bf16.msra.mxu0 %v3110_v2  ;;  %v1830_v2 = vrot.slane %v1813_v58, %v1829_v61 }
 0xbfd   : > { %2053 = vmatpush1.bf16.msra.mxu1 %v3113_v3  ;;  %2819 = vmatprep.subr.bf16.mxu0 %v3116_v20 }
 0xbfe   : > { %2841 = vmatprep.subr.bf16.mxu1 %v3117_v23 }
 0xc85   : > { %v1743_v33 = vpop.xlane.xlu1 %1742 }
 0xc86   : > { %v1746_v34 = vmul.f32 0.0078125, %v1743_v33  ;;  %v3125_v33 = vld [vmem:[%s3638_s14 + $0xd0] sm:$0xff]  }
 0xc88   : > { %v3882_v35 = vsub.f32 %v3867_v21, %v1746_v34  ;;  %v3126_v34 = vld [vmem:[%s3638_s14 + $0x10] sm:$0xff]  }
 0xc89   : > { %v1745_v36 = vpop.xlane.xlu1 %1744 }
 0xc8a   : > { %v1747_v37 = vmul.f32 0.0078125, %v1745_v36  ;;  %v1750_v38 = vmul.f32 %v3882_v35, %v3882_v35  ;;  %v3128_v36 = vld [vmem:[%s3638_s14 + $0x58] sm:$0xff]  }
 0xc8c   : > { %v3887_v39 = vsub.f32 %v3870_v22, %v1747_v37  ;;  %1752 = vadd.xlane.f32.xlu1 %v1750_v38  ;;  %v3129_v37 = vld [vmem:[%s3638_s14 + $0xd8] sm:$0xff]  }
 0xc8d   : > { %v3130_v38 = vld [vmem:[%s3638_s14 + $0x18] sm:$0xff]  }
 0xc8e   : > { %v1751_v40 = vmul.f32 %v3887_v39, %v3887_v39 }
 0xc90   : > { %1754 = vadd.xlane.f32.xlu1 %v1751_v40  ;;  %v3132_v40 = vld [vmem:[%s3638_s14 + $0x60] sm:$0xff]  }
 0xd19   : > { %v1753_v6 = vpop.xlane.xlu1 %1752 }
 0xd1a   : > { %v1756_v47 = vmul.f32 0.0078125, %v1753_v6 }
 0xd1c   : > { %v1758_v50 = vadd.f32 1e-05, %v1756_v47 }
 0xd1d   : > { %v1755_v4 = vpop.xlane.xlu1 %1754 }
 0xd1e   : > { %3184 = vrsqrt.f32 %v1758_v50  ;;  %v1757_v5 = vmul.f32 0.0078125, %v1755_v4 }
 0xd20   : > { %v1759_v7 = vadd.f32 1e-05, %v1757_v5 }
 0xd22   : > { %3186 = vrsqrt.f32 %v1759_v7 }
 0xd28   : > { %v3185_v8 = vpop.eup %3184 }
 0xd29   : > { %v1762_v9 = vmul.f32 %v3185_v8, %v3882_v35  ;;  %v3127_v35 = vld [vmem:[%s3638_s14 + $0x90] sm:$0xff]  }
 0xd2b   : > { %v1770_v12 = vmul.f32 %v2710_v10, %v1762_v9 }
 0xd2c   : > { %v3187_v19 = vpop.eup %3186 }
 0xd2d   : > { %v1763_v11 = vmul.f32 %v3187_v19, %v3887_v39  ;;  %v1778_v15 = vadd.f32 %v2711_v13, %v1770_v12  ;;  %v3131_v39 = vld [vmem:[%s3638_s14 + $0x98] sm:$0xff]  }
 0xd2f   : > { %v1771_v14 = vmul.f32 %v2710_v10, %v1763_v11 }
 0xd31   : > { %v1779_v16 = vadd.f32 %v2711_v13, %v1771_v14 }
 0xd33   : > { %v1780_v32 = vpack.c.bf16 %v1779_v16, %v1778_v15 }
 0xd35   : > { %2028 = vmatmul.mubr.bf16.vlgmr.msra.gmra.mrb[28].mxu0 %v1780_v32  ;;  %2071 = vmatmul.mubr.bf16.vlgmr.msra.gmra.mrb[28].mxu1 %v1780_v32 }
 0xd36   : > { %2820 = vmatpush3.bf16.msra.mxu0 %v3118_v18  ;;  %2842 = vmatpush3.bf16.msra.mxu1 %v3119_v26 }
 0xd37   : > { %2821 = vmatprep.subr.bf16.mxu0 %v3120_v27  ;;  %2843 = vmatprep.subr.bf16.mxu1 %v3121_v28 }
 0xd3a   : > { %2822 = vmatpush3.bf16.msra.mxu0 %v3122_v29  ;;  %2844 = vmatpush3.bf16.msra.mxu1 %v3123_v30 }
 0xd3b   : > { %2823 = vmatprep.subr.bf16.mxu0 %v3124_v31  ;;  %2845 = vmatprep.subr.bf16.mxu1 %v3125_v33 }
 0xd3e   : > { %2824 = vmatpush3.bf16.msra.mxu0 %v3126_v34  ;;  %2846 = vmatpush3.bf16.msra.mxu1 %v3127_v35 }
 0xd3f   : > { %2825 = vmatprep.subr.bf16.mxu0 %v3128_v36  ;;  %2847 = vmatprep.subr.bf16.mxu1 %v3129_v37 }
 0xd42   : > { %2826 = vmatpush3.bf16.msra.mxu0 %v3130_v38  ;;  %2848 = vmatpush3.bf16.msra.mxu1 %v3131_v39 }
 0xd43   : > { %2827 = vmatprep.subr.bf16.mxu0 %v3132_v40  ;;  %2849 = vmatprep.subr.bf16.mxu1 %v3133_v41 }
 0xd46   : > { %2828 = vmatpush3.bf16.msra.mxu0 %v3134_v42  ;;  %2850 = vmatpush3.bf16.msra.mxu1 %v3135_v43 }
 0xd47   : > { %2829 = vmatprep.subr.bf16.mxu0 %v3136_v44  ;;  %2851 = vmatprep.subr.bf16.mxu1 %v3137_v45 }
 0xd4a   : > { %2830 = vmatpush3.bf16.msra.mxu0 %v3138_v46  ;;  %2852 = vmatpush3.bf16.msra.mxu1 %v3139_v48 }
 0xd4b   : > { %2831 = vmatprep.subr.bf16.mxu0 %v3140_v49  ;;  %2853 = vmatprep.subr.bf16.mxu1 %v3141_v51 }
 0xd4e   : > { %2832 = vmatpush3.bf16.msra.mxu0 %v3142_v24  ;;  %2854 = vmatpush3.bf16.msra.mxu1 %v3143_v25 }
 0xd4f   : > { %2833 = vmatprep.subr.bf16.mxu0 %v3144_v52  ;;  %2855 = vmatprep.subr.bf16.mxu1 %v3145_v53 }
 0xd52   : > { %2834 = vmatpush3.bf16.msra.mxu0 %v3146_v54  ;;  %2856 = vmatpush3.bf16.msra.mxu1 %v3147_v55 }
 0xe08   : > { %v2029_v0 = vpop.f32.mrb[28].mxu0  ;;  %v2072_v17 = vpop.f32.mrb[28].mxu1 }
 0xe09   : > { %v2031_v3 = vpop.f32.mrb[29].mxu0  ;;  %v2074_v6 = vpop.f32.mrb[29].mxu1  ;;  %v2030_v4 = vadd.f32 %v2029_v0, %v1818_v62  ;;  %v2073_v5 = vadd.f32 %v2072_v17, %v1826_v63 }
 0xe0a   : > { %v2033_v47 = vpop.f32.mrb[30].mxu0  ;;  %v2076_v50 = vpop.f32.mrb[30].mxu1  ;;  %v2032_v57 = vadd.f32 %v2031_v3, %v1822_v1  ;;  %v2075_v19 = vadd.f32 %v2074_v6, %v1830_v2 }
 0xe0b   : > { %v2034_v7 = vadd.f32 %v2033_v47, %v1818_v62  ;;  %v2077_v8 = vadd.f32 %v2076_v50, %v1826_v63  ;;  %v2035_v9 = vpop.f32.mrb[31].mxu0  ;;  %v2078_v10 = vpop.f32.mrb[31].mxu1 }
 0xe0c   : > { %v2036_v11 = vadd.f32 %v2035_v9, %v1822_v1  ;;  %v2079_v59 = vadd.f32 %v2078_v10, %v1830_v2 }
 0xe0d   : > { %v2081_v12 = vpack.c.bf16 %v2034_v7, %v2030_v4  ;;  %v2083_v13 = vpack.c.bf16 %v2077_v8, %v2073_v5  ;;  %v2776_v5 = vld [vmem:[%s660_s13] ss:$0 sm:$0xff] }
 0xe0e   : > { %v2082_v14 = vpack.c.bf16 %v2036_v11, %v2032_v57  ;;  %v2084_v56 = vpack.c.bf16 %v2079_v59, %v2075_v19 }
 0xe0f   : > { %v2089_v60 = vmul.bf16 1027030327, %v2081_v12  ;;  %v2091_v15 = vmul.bf16 1027030327, %v2083_v13  ;;  %v2085_v51 = vmul.bf16 1056980736, %v2081_v12 }
 0xe10   : > { %v2090_v16 = vmul.bf16 1027030327, %v2082_v14  ;;  %v2092_v32 = vmul.bf16 1027030327, %v2084_v56  ;;  %v2086_v44 = vmul.bf16 1056980736, %v2082_v14 }
 0xe11   : > { %v2093_v20 = vmul.bf16 %v2089_v60, %v2081_v12  ;;  %v2095_v23 = vmul.bf16 %v2091_v15, %v2083_v13  ;;  %v2088_v48 = vmul.bf16 1056980736, %v2084_v56  ;;  %v2087_v25 = vmul.bf16 1056980736, %v2083_v13 }
 0xe12   : > { %v2094_v18 = vmul.bf16 %v2090_v16, %v2082_v14  ;;  %v2096_v26 = vmul.bf16 %v2092_v32, %v2084_v56 }
 0xe13   : > { %v2097_v27 = vmul.bf16 %v2093_v20, %v2081_v12  ;;  %v2099_v28 = vmul.bf16 %v2095_v23, %v2083_v13 }
 0xe14   : > { %v2098_v29 = vmul.bf16 %v2094_v18, %v2082_v14  ;;  %v2100_v30 = vmul.bf16 %v2096_v26, %v2084_v56 }
 0xe15   : > { %v2101_v31 = vadd.bf16 %v2097_v27, %v2081_v12  ;;  %v2103_v33 = vadd.bf16 %v2099_v28, %v2083_v13 }
 0xe16   : > { %v2102_v34 = vadd.bf16 %v2098_v29, %v2082_v14  ;;  %v2104_v35 = vadd.bf16 %v2100_v30, %v2084_v56 }
 0xe17   : > { %v2105_v36 = vmul.bf16 1061961548, %v2101_v31  ;;  %v2107_v39 = vmul.bf16 1061961548, %v2103_v33 }
 0xe18   : > { %v2106_v37 = vmul.bf16 1061961548, %v2102_v34  ;;  %v2108_v38 = vmul.bf16 1061961548, %v2104_v35 }
 0xe19   : > { %3188 = vtanh.bf16 %v2105_v36 }
 0xe1a   : > { %3190 = vtanh.bf16 %v2106_v37 }
 0xe1b   : > { %3192 = vtanh.bf16 %v2108_v38 }
 0xe1c   : > { %3194 = vtanh.bf16 %v2107_v39 }
 0xe24   : > { %v3189_v40 = vpop.eup %3188 }
 0xe25   : > { %v3191_v41 = vpop.eup %3190  ;;  %v2113_v42 = vadd.bf16 1065369472, %v3189_v40 }
 0xe26   : > { %v3193_v43 = vpop.eup %3192  ;;  %v2114_v45 = vadd.bf16 1065369472, %v3191_v41 }
 0xe27   : > { %v3195_v46 = vpop.eup %3194  ;;  %v2116_v49 = vadd.bf16 1065369472, %v3193_v43  ;;  %v2117_v54 = vmul.bf16 %v2113_v42, %v2085_v51 }
 0xe28   : > { %v2118_v24 = vmul.bf16 %v2114_v45, %v2086_v44  ;;  %v2115_v52 = vadd.bf16 1065369472, %v3195_v46 }
 0xe29   : > { %v2120_v53 = vmul.bf16 %v2116_v49, %v2088_v48 }
 0xe2a   : > { %2409 = vmatprep.mubr.bf16.mxu0 %v2118_v24  ;;  %v2119_v55 = vmul.bf16 %v2115_v52, %v2087_v25 }
 0xe2b   : > { %2450 = vmatprep.mubr.bf16.mxu1 %v2120_v53  ;;  %2410 = vmatmul.mubr.bf16.vlgmr.msra.gmra.mrb[32].mxu0 %v2117_v54 }
 0xe2c   : > { %2451 = vmatmul.mubr.bf16.vlgmr.msra.gmra.mrb[32].mxu1 %v2119_v55 }
 0xefe   : > { %v2835_v58 = vpop.f32.mrb[32].mxu0 }
 0xeff   : > { %v2857_v61 = vpop.f32.mrb[32].mxu1  ;;  %v2836_v62 = vpop.f32.mrb[33].mxu0 }
 0xf00   : > { %v2837_v63 = vadd.f32 %v2836_v62, %v2835_v58  ;;  %v2858_v0 = vpop.f32.mrb[33].mxu1  ;;  %v2838_v17 = vpop.f32.mrb[34].mxu0 }
 0xf01   : > { %v2859_v1 = vadd.f32 %v2858_v0, %v2857_v61  ;;  %v2860_v2 = vpop.f32.mrb[34].mxu1  ;;  %v2839_v3 = vpop.f32.mrb[35].mxu0 }
 0xf02   : > { %v2840_v6 = vadd.f32 %v2839_v3, %v2838_v17  ;;  %v2861_v47 = vpop.f32.mrb[35].mxu1 }
 0xf03   : > { %v2453_v50 = vadd.f32 %v2859_v1, %v2837_v63  ;;  %v2862_v4 = vadd.f32 %v2861_v47, %v2860_v2 }
 0xf05   : > { %v2459_v7 = vadd.f32 %v2453_v50, %v3867_v21  ;;  %v2456_v8 = vadd.f32 %v2862_v4, %v2840_v6 }
 0xf07   : > { %v2468_v9 = vadd.f32 %v2776_v5, %v2459_v7  ;;  %v2460_v10 = vadd.f32 %v2456_v8, %v3870_v22 }
 0xf09   : > { %2470 = vst [vmem:[#allocation2] sm:$0xff] %v2468_v9  ;;  %2472 = vst [vmem:[%s4045_s19] sm:$0xff] %v2468_v9  ;;  %v2469_v57 = vadd.f32 %v2776_v5, %v2460_v10 }
 0xf0b   : > { %2471 = vst [vmem:[#allocation2 + $0x8] sm:$0xff] %v2469_v57  ;;  %2473 = vst [vmem:[%s4045_s19 + $0x8] sm:$0xff] %v2469_v57 }
 0xf0c PF: > { %s4046_s28 = sld [smem:[#allocation11_spill]]  ;;  %s4047_s12 = sld [smem:[#allocation10_spill]] }
 0xf0d   : > { %s4048_s27 = sld [smem:[#allocation12_spill]]  ;;  %s4049_s25 = smov %s3318_s26 }
 0xf12   : > { %p26_p7 = scmp.ge.s32.totalorder %s4046_s28, 4   ;;  %s4050_s26 = smov %s4047_s12 }
 0xf14   :  { %28 = sbr.rel (!%p26_p7) target bundleno = 13 (0xd), region = 163 }
 0xf1b   :  { %2485 = vsyncpa [#allocation4], 1 }
 0xf1c   :  { %2487 = vsyncpa [#allocation4 + $0x1], 1 }
 0xf1d   :  { %2488 = vsyncpa [#allocation6], 1 }
 0xf1e   :  { %2490 = vsyncpa [#allocation6 + $0x1], 1 }

// kernel: gpt2_wrapper_forward.3
= control target key start
LH: loop header
LB: loop body
LE: loop exit
PB: predicated region body
PF: predicated region fallthrough
CT: control target
= control target key end

     0   :  { %s3303_s0 = inlined_call_operand.vmem [shape: s32[2], index: 0, kind: input, shape index: {}]   ;;  %s3304_s1 = inlined_call_operand.vmem [shape: f32[1,128], index: 1, kind: input, shape index: {}]   ;;  %s3305_s2 = inlined_call_operand.vmem [shape: f32[1,128], index: 2, kind: input, shape index: {}]   ;;  %s3306_s3 = inlined_call_operand.vmem [shape: f32[1,128], index: 3, kind: input, shape index: {}]   ;;  %s3307_s4 = inlined_call_operand.hbm [shape: bf16[4096,128], index: 4, kind: input, shape index: {}]   ;;  %s3308_s5 = inlined_call_operand.vmem [shape: f32[1,2], index: 5, kind: output, shape index: {}]  }
   0x1   :  { %s10_s20 = sshll.u32 %s3303_s0, 4  ;;  %s11_s20 = int_to_ptr.vmem [resolvable:$true] %s10_s20 }
   0x2   :  { %s2529_s21 = scalar_lea.vmem %s11_s20, 16  ;;  %p2534_p1 = scmp.lt.s32.totalorder %s11_s20, %s11_s20 }
   0x3   :  { %p2530_p0 = scmp.ne.s32.totalorder %s11_s20, %s2529_s21  ;;  %p2535_p2 = scmp.lt.s32.totalorder %s2529_s21, %s2529_s21 }
   0x5   :  { %p2536_p3 = por %p2535_p2, %p2534_p1 }
   0x7   :  { %p2537_p4 = pnand %p2536_p3, %p2530_p0 }
   0x9   :  { %2540 = shalt.err (!%p2537_p4)  }
   0xa   :  { %s2609_s22 = smov [#allocation7]  }
   0xb   :  { %13 = dma.vmem_to_smem %s11_s20, 16, %s2609_s22, [#allocation6] }
   0xc   :  { %2587 = dma.done.wait [#allocation6], 16 }
   0xd   :  { %2588 = vsyncadd [#allocation6], 4294967280 }
   0xe   :  { %15 = sfence }
   0xf   :  { %16 = vsyncpa [#allocation9], 0 }
  0x10   :  { %18 = vsyncpa [#allocation9 + $0x1], 0  ;;  %s2650_s23 = smov 0   ;;  %s2652_s24 = smov 0  }
  0x11   :  { %s2654_s0 = smov 0   ;;  %s2656_s25 = smov 0  }
  0x12 LB: > { %s2669_s26 = sadd.s32 4294967295, %s2607_s25   ;;  %s2672_s27 = sadd.s32 1, %s2607_s25   ;;  %s2607_s25 = sphi %s2656_s25, %s3315_s25   ;;  %s2603_s0 = sphi %s2654_s0, %s3314_s0   ;;  %s2599_s24 = sphi %s2652_s24, %s3313_s24   ;;  %s2595_s23 = sphi %s2650_s23, %s3312_s23  }
  0x13   : > { %s91_s28 = ssub.s32 %s2607_s25, %s2672_s27  ;;  %s94_s29 = sadd.s32 1, %s2603_s0 }
  0x14   : > { %p92_p5 = scmp.eq.s32.totalorder %s91_s28, 0  ;;  %p101_p6 = scmp.ne.s32.totalorder %s2603_s0, %s2599_s24 }
  0x15   : > { %p102_p7 = scmp.eq.s32.totalorder %s2607_s25, 0  ;;  %p107_p8 = scmp.ne.s32.totalorder %s2599_s24, %s2595_s23 }
  0x16   : > { %s2682_s30 = scalar_select %p92_p5, %s2603_s0, %s94_s29  }
  0x17   : > { %p103_p9 = por %p102_p7, %p101_p6  ;;  %p108_p10 = scmp.eq.s32.totalorder %s2669_s26, 0 }
  0x18   : > { %p2321_p11 = scmp.lt.s32.totalorder %s2607_s25, 2  ;;  %s161_s7 = sand.u32 1, %s2603_s0  }
  0x19   : > { %p2686_p12 = por %p108_p10, %p107_p8  ;;  %s2027_s8 = sshll.u32 %s161_s7, 10 }
  0x1a   : > { %s2166_s9 = sshll.u32 %s2607_s25, 14  ;;  %s165_s13 = scalar_lea.vmem [#allocation8], %s2027_s8 }
  0x1b   : > { %s2695_s12 = scalar_lea.hbm %s3307_s4, %s2166_s9  ;;  %s172_s14 = sshll.u32 %s165_s13, 4  ;;  %s2697_s14 = int_to_ptr.vmem [resolvable:$true] %s172_s14 }
  0x1c   : > { %p2699_p13 = pnand %p2321_p11, %p103_p9  ;;  %s2704_s16 = scalar_lea.sflag [#allocation9], %s161_s7 }
  0x1d   : > { %s2541_s17 = scalar_lea.hbm %s2695_s12, 16384  ;;  %s2546_s20 = scalar_lea.hbm %s3307_s4, 32768 }
  0x1e   : > { %p2542_p1 = scmp.ne.s32.totalorder %s2695_s12, %s2541_s17  ;;  %p2543_p2 = pneg %p2699_p13 }
  0x1f   : > { %p2547_p5 = scmp.lt.u32.totalorder %s2695_s12, %s3307_s4  ;;  %p2548_p6 = scmp.lt.u32.totalorder %s2546_s20, %s2541_s17 }
  0x20   : > { %p2544_p3 = pnand %p2543_p2, %p2542_p1  ;;  %p2550_p8 = scmp.lt.u32.totalorder %s2541_s17, %s2695_s12 }
  0x21   : > { %p2549_p7 = por %p2548_p6, %p2547_p5 }
  0x22   : > { %p2545_p4 = pneg %p2544_p3 }
  0x23   : > { %p2551_p9 = por %p2550_p8, %p2549_p7 }
  0x25   : > { %p2552_p10 = pnand %p2551_p9, %p2545_p4 }
  0x27   : > { %2555 = shalt.err (!%p2552_p10)
}
  0x28   : > { %s2556_s23 = scalar_lea.vmem %s2697_s14, 16384  ;;  %s2610_s28 = smov [#allocation8]  }
  0x29   : > { %p2557_p11 = scmp.ne.s32.totalorder %s2697_s14, %s2556_s23  ;;  %s2561_s29 = sshll.u32 %s2610_s28, 4  ;;  %s2562_s29 = int_to_ptr.vmem [resolvable:$false] %s2561_s29 }
  0x2a   : > { %s2563_s7 = scalar_lea.vmem %s2562_s29, 32768  ;;  %p2564_p0 = scmp.lt.s32.totalorder %s2697_s14, %s2562_s29 }
  0x2b   : > { %p2559_p1 = pnand %p2557_p11, %p2543_p2  ;;  %p2565_p5 = scmp.lt.s32.totalorder %s2563_s7, %s2556_s23 }
  0x2d   : > { %p2560_p3 = pneg %p2559_p1  ;;  %p2566_p6 = por %p2565_p5, %p2564_p0 }
  0x2f   : > { %p2567_p7 = pnand %p2566_p6, %p2560_p3 }
  0x31   : > { %2570 = shalt.err (!%p2567_p7)
}
  0x32   : > { %s2611_s8 = smov 64   ;;  %s2612_s9 = smov 4  }
  0x33   : > { %2320 = dma.hbm_to_vmem [thread:$0]  (!%p2699_p13), %s2695_s12, 16384, %s2697_s14, %s2704_s16, %s2611_s8, %s2611_s8, %s2612_s9  }
  0x34   : > { %p180_p2 = scmp.lt.s32.totalorder %s2607_s25, 3  ;;  %p3311_p4 = scmp.ge.s32.totalorder %s2607_s25, 1 }
  0x36   : > { %p181_p8 = pnand %p3311_p4, %p180_p2 }
  0x37   : > { %s186_s10 = sand.u32 (!%p181_p8), 1, %s2599_s24  }
  0x38   : > { %184 = sbr.rel (%p181_p8) target bundleno = 1485 (0x5cd), region = 36  ;;  %s2031_s11 = sshll.u32 (!%p181_p8), %s186_s10, 10 }
  0x39   : > { %s187_s13 = scalar_lea.sflag (!%p181_p8), [#allocation9], %s186_s10  ;;  %s2736_s17 = scalar_lea.vmem (!%p181_p8), [#allocation8], %s2031_s11 }
  0x3f   : > { %2590 = dma.done.wait (%p2686_p12), %s187_s13, 16384  }
  0x40   : > { %2592 = vsyncadd (%p2686_p12), %s187_s13, 4294950912  ;;  %p2032_p0 = scmp.ne.s32.totalorder %s2669_s26, 0 }
  0x41   : > { %v216_v0 = vld [vmem:[%s3304_s1] sm:$0x1] (!%p2032_p0)  ;;  %vm219_vm0 = vcmask (!%p2032_p0), 1040384   ;;  %vm243_vm1 = vcmask (!%p2032_p0), 0   ;;  %vm246_vm2 = vcmask (!%p2032_p0), 8192   ;;  %v2613_v7 = vmov (!%p2032_p0), -inf  }
  0x42   : > { %215 = sbr.rel (%p2032_p0) target bundleno = 383 (0x17f), region = 44  ;;  %v220_v1 = vsel (!%p2032_p0), %vm219_vm0, %v216_v0, 0.0  ;;  %244 = vst.msk [vmem:[#allocation3] sm:$0x1] (!%p2032_p0), %vm243_vm1, %v2613_v7  ;;  %v2614_v8 = vmov (!%p2032_p0), 0.0  }
  0x43   : > { %221 = vadd.xlane.f32.xlu0 (!%p2032_p0), %v220_v1  ;;  %245 = vst.msk [vmem:[#allocation4] sm:$0x1] (!%p2032_p0), %vm243_vm1, %v2614_v8  ;;  %v217_v13 = vld [vmem:[%s3305_s2] sm:$0x1] (!%p2032_p0)  ;;  %vm238_vm3 = vsmask.f32 (!%p2032_p0), 256 }
  0x44   : > { %247 = vst.msk [vmem:[#allocation5] sm:$0x1] (!%p2032_p0), %vm246_vm2, %v2614_v8  ;;  %v218_v15 = vld [vmem:[%s3306_s3] sm:$0x1] (!%p2032_p0)  ;;  %vm239_vm4 = vmand (!%p2032_p0), %vm219_vm0, %vm238_vm3 }
  0x45   : > { %v240_v18 = vld [vmem:[#allocation2] sm:$0x1] (!%p2032_p0) }
  0xd0   : > { %v222_v2 = vpop.xlane.xlu0 %221 }
  0xd1   : > { %v224_v3 = vmul.f32 0.0078125, %v222_v2 }
  0xd3   : > { %v225_v4 = vsub.f32 %v216_v0, %v224_v3 }
  0xd5   : > { %v226_v5 = vmul.f32 %v225_v4, %v225_v4 }
  0xd7   : > { %v227_v6 = vsel %vm219_vm0, %v226_v5, 0.0 }
  0xd8   : > { %228 = vadd.xlane.f32.xlu0 %v227_v6 }
 0x165   : > { %v229_v9 = vpop.xlane.xlu0 %228 }
 0x166   : > { %v230_v10 = vmul.f32 0.0078125, %v229_v9 }
 0x168   : > { %v231_v11 = vadd.f32 1e-05, %v230_v10 }
 0x16a   : > { %2361 = vrsqrt.f32 %v231_v11 }
 0x174   : > { %v2362_v12 = vpop.eup %2361 }
 0x175   : > { %v233_v14 = vmul.f32 %v2362_v12, %v225_v4 }
 0x177   : > { %v234_v16 = vmul.f32 %v233_v14, %v217_v13 }
 0x179   : > { %v235_v17 = vadd.f32 %v234_v16, %v218_v15 }
 0x17b   : > { %v236_v19 = vpack.c.bf16 %v235_v17, %v235_v17 }
 0x17d   : > { %v241_v20 = vsel %vm239_vm4, %v236_v19, %v240_v18 }
 0x17e   : > { %242 = vst [vmem:[#allocation2] sm:$0x1] %v241_v20 }
 0x17f PF: > { %v2364_v21 = vld [vmem:[%s2736_s17 + $0x40] sm:$0xff]   ;;  %v2368_v25 = vld [vmem:[%s2736_s17 + $0x48] sm:$0xff]   ;;  %v2372_v29 = vld [vmem:[%s2736_s17 + $0x50] sm:$0xff]   ;;  %s2161_s18 = sshll.u32 %s2669_s26, 11  ;;  %s2162_s19 = sld [smem:[#allocation7 + $0x1]]  ;;  %vm1669_vm9 = vcmask 1040384  }
 0x180   : > { %v2365_v22 = vld [vmem:[%s2736_s17 + $0xc0] sm:$0xff]   ;;  %2167 = vmatprep.subr.bf16.mxu0 %v2364_v21  ;;  %v2369_v26 = vld [vmem:[%s2736_s17 + $0xc8] sm:$0xff]   ;;  %v2373_v30 = vld [vmem:[%s2736_s17 + $0xd0] sm:$0xff]   ;;  %s1803_s20 = sld [smem:[#allocation7]]  ;;  %p2163_p12 = scmp.ne.s32.totalorder %s2669_s26, 1 }
 0x181   : > { %v2366_v23 = vld [vmem:[%s2736_s17] sm:$0xff]   ;;  %2185 = vmatprep.subr.bf16.mxu1 %v2365_v22  ;;  %v2370_v27 = vld [vmem:[%s2736_s17 + $0x8] sm:$0xff]   ;;  %v2374_v31 = vld [vmem:[%s2736_s17 + $0x10] sm:$0xff]  }
 0x182   : > { %v2367_v24 = vld [vmem:[%s2736_s17 + $0x80] sm:$0xff]   ;;  %2168 = vmatpush3.bf16.xpose.msra.mxu0 %v2366_v23  ;;  %v2371_v28 = vld [vmem:[%s2736_s17 + $0x88] sm:$0xff]   ;;  %v2375_v32 = vld [vmem:[%s2736_s17 + $0x90] sm:$0xff]  }
 0x183   : > { %2186 = vmatpush3.bf16.xpose.msra.mxu1 %v2367_v24  ;;  %2169 = vmatprep.subr.bf16.mxu0 %v2368_v25  ;;  %v2376_v33 = vld [vmem:[%s2736_s17 + $0x58] sm:$0xff]   ;;  %v2380_v37 = vld [vmem:[%s2736_s17 + $0x60] sm:$0xff]   ;;  %v2384_v42 = vld [vmem:[%s2736_s17 + $0x68] sm:$0xff]  }
 0x184   : > { %2187 = vmatprep.subr.bf16.mxu1 %v2369_v26  ;;  %v2377_v34 = vld [vmem:[%s2736_s17 + $0xd8] sm:$0xff]   ;;  %v2381_v38 = vld [vmem:[%s2736_s17 + $0xe0] sm:$0xff]   ;;  %v2385_v43 = vld [vmem:[%s2736_s17 + $0xe8] sm:$0xff]  }
 0x185   : > { %v2378_v35 = vld [vmem:[%s2736_s17 + $0x18] sm:$0xff]   ;;  %v2382_v39 = vld [vmem:[%s2736_s17 + $0x20] sm:$0xff]   ;;  %v2386_v44 = vld [vmem:[%s2736_s17 + $0x28] sm:$0xff]  }
 0x186   : > { %v2379_v36 = vld [vmem:[%s2736_s17 + $0x98] sm:$0xff]   ;;  %v2383_v40 = vld [vmem:[%s2736_s17 + $0xa0] sm:$0xff]   ;;  %v2387_v45 = vld [vmem:[%s2736_s17 + $0xa8] sm:$0xff]  }
 0x187   : > { %v2775_v41 = vld [vmem:[#allocation2] sm:$0x1]  ;;  %v2388_v46 = vld [vmem:[%s2736_s17 + $0x70] sm:$0xff]   ;;  %v2396_v54 = vld [vmem:[%s2736_s17 + $0x140] sm:$0xff]  }
 0x188   : > { %2183 = vmatprep.mubr.bf16.mxu0 %v2775_v41  ;;  %2201 = vmatprep.mubr.bf16.mxu1 %v2775_v41  ;;  %v2389_v47 = vld [vmem:[%s2736_s17 + $0xf0] sm:$0xff]   ;;  %v2392_v50 = vld [vmem:[%s2736_s17 + $0x78] sm:$0xff]   ;;  %v2397_v55 = vld [vmem:[%s2736_s17 + $0x1c0] sm:$0xff]  }
 0x189   : > { %v2390_v48 = vld [vmem:[%s2736_s17 + $0x30] sm:$0xff]   ;;  %v2393_v51 = vld [vmem:[%s2736_s17 + $0xf8] sm:$0xff]   ;;  %v2398_v56 = vld [vmem:[%s2736_s17 + $0x100] sm:$0xff]  }
 0x18a   : > { %2170 = vmatpush3.bf16.xpose.msra.mxu0 %v2370_v27  ;;  %v2391_v49 = vld [vmem:[%s2736_s17 + $0xb0] sm:$0xff]   ;;  %v2394_v52 = vld [vmem:[%s2736_s17 + $0x38] sm:$0xff]   ;;  %v2399_v57 = vld [vmem:[%s2736_s17 + $0x180] sm:$0xff]  }
 0x18b   : > { %2188 = vmatpush3.bf16.xpose.msra.mxu1 %v2371_v28  ;;  %2171 = vmatprep.subr.bf16.mxu0 %v2372_v29  ;;  %v2395_v53 = vld [vmem:[%s2736_s17 + $0xb8] sm:$0xff]   ;;  %v2400_v58 = vld [vmem:[%s2736_s17 + $0x148] sm:$0xff]   ;;  %v2404_v62 = vld [vmem:[%s2736_s17 + $0x150] sm:$0xff]  }
 0x18c   : > { %2189 = vmatprep.subr.bf16.mxu1 %v2373_v30  ;;  %v2401_v59 = vld [vmem:[%s2736_s17 + $0x1c8] sm:$0xff]   ;;  %v2405_v63 = vld [vmem:[%s2736_s17 + $0x1d0] sm:$0xff]   ;;  %v2408_v2 = vld [vmem:[%s2736_s17 + $0x158] sm:$0xff]  }
 0x18d   : > { %v2402_v60 = vld [vmem:[%s2736_s17 + $0x108] sm:$0xff]   ;;  %v2406_v0 = vld [vmem:[%s2736_s17 + $0x110] sm:$0xff]   ;;  %v2409_v3 = vld [vmem:[%s2736_s17 + $0x1d8] sm:$0xff]  }
 0x18e   : > { %v2403_v61 = vld [vmem:[%s2736_s17 + $0x188] sm:$0xff]   ;;  %v2407_v1 = vld [vmem:[%s2736_s17 + $0x190] sm:$0xff]   ;;  %v2410_v4 = vld [vmem:[%s2736_s17 + $0x118] sm:$0xff]  }
 0x18f   : > { %v2411_v5 = vld [vmem:[%s2736_s17 + $0x198] sm:$0xff]   ;;  %v2412_v6 = vld [vmem:[%s2736_s17 + $0x160] sm:$0xff]   ;;  %v2416_v10 = vld [vmem:[%s2736_s17 + $0x168] sm:$0xff]  }
 0x190   : > { %v2413_v7 = vld [vmem:[%s2736_s17 + $0x1e0] sm:$0xff]   ;;  %v2417_v11 = vld [vmem:[%s2736_s17 + $0x1e8] sm:$0xff]   ;;  %v2420_v14 = vld [vmem:[%s2736_s17 + $0x170] sm:$0xff]  }
 0x191   : > { %v2414_v8 = vld [vmem:[%s2736_s17 + $0x120] sm:$0xff]   ;;  %v2418_v12 = vld [vmem:[%s2736_s17 + $0x128] sm:$0xff]   ;;  %v2421_v15 = vld [vmem:[%s2736_s17 + $0x1f0] sm:$0xff]  }
 0x192   : > { %2172 = vmatpush3.bf16.xpose.msra.mxu0 %v2374_v31  ;;  %v2415_v9 = vld [vmem:[%s2736_s17 + $0x1a0] sm:$0xff]   ;;  %v2419_v13 = vld [vmem:[%s2736_s17 + $0x1a8] sm:$0xff]   ;;  %v2422_v16 = vld [vmem:[%s2736_s17 + $0x130] sm:$0xff]  }
 0x193   : > { %2190 = vmatpush3.bf16.xpose.msra.mxu1 %v2375_v32  ;;  %2173 = vmatprep.subr.bf16.mxu0 %v2376_v33  ;;  %v2423_v17 = vld [vmem:[%s2736_s17 + $0x1b0] sm:$0xff]   ;;  %v2424_v18 = vld [vmem:[%s2736_s17 + $0x178] sm:$0xff]   ;;  %v2428_v22 = vld [vmem:[%s2736_s17 + $0x240] sm:$0xff]  }
 0x194   : > { %2191 = vmatprep.subr.bf16.mxu1 %v2377_v34  ;;  %v2425_v19 = vld [vmem:[%s2736_s17 + $0x1f8] sm:$0xff]   ;;  %v2429_v23 = vld [vmem:[%s2736_s17 + $0x2c0] sm:$0xff]   ;;  %v2432_v26 = vld [vmem:[%s2736_s17 + $0x248] sm:$0xff]  }
 0x195   : > { %v2426_v20 = vld [vmem:[%s2736_s17 + $0x138] sm:$0xff]   ;;  %v2430_v24 = vld [vmem:[%s2736_s17 + $0x200] sm:$0xff]   ;;  %v2433_v27 = vld [vmem:[%s2736_s17 + $0x2c8] sm:$0xff]  }
 0x196   : > { %v2427_v21 = vld [vmem:[%s2736_s17 + $0x1b8] sm:$0xff]   ;;  %v2431_v25 = vld [vmem:[%s2736_s17 + $0x280] sm:$0xff]   ;;  %v2434_v28 = vld [vmem:[%s2736_s17 + $0x208] sm:$0xff]  }
 0x197   : > { %v2435_v29 = vld [vmem:[%s2736_s17 + $0x288] sm:$0xff]   ;;  %v2436_v30 = vld [vmem:[%s2736_s17 + $0x250] sm:$0xff]   ;;  %v2440_v34 = vld [vmem:[%s2736_s17 + $0x258] sm:$0xff]  }
 0x198   : > { %v2437_v31 = vld [vmem:[%s2736_s17 + $0x2d0] sm:$0xff]  }
 0x199   : > { %v2438_v32 = vld [vmem:[%s2736_s17 + $0x210] sm:$0xff]  }
 0x19a   : > { %2174 = vmatpush3.bf16.xpose.msra.mxu0 %v2378_v35  ;;  %v2439_v33 = vld [vmem:[%s2736_s17 + $0x290] sm:$0xff]   ;;  %v2441_v35 = vld [vmem:[%s2736_s17 + $0x2d8] sm:$0xff]  }
 0x19b   : > { %2192 = vmatpush3.bf16.xpose.msra.mxu1 %v2379_v36  ;;  %2175 = vmatprep.subr.bf16.mxu0 %v2380_v37  ;;  %v2442_v36 = vld [vmem:[%s2736_s17 + $0x218] sm:$0xff]  }
 0x19c   : > { %2193 = vmatprep.subr.bf16.mxu1 %v2381_v38  ;;  %v2443_v37 = vld [vmem:[%s2736_s17 + $0x298] sm:$0xff]   ;;  %v2444_v38 = vld [vmem:[%s2736_s17 + $0x260] sm:$0xff]  }
 0x1a2   : > { %2176 = vmatpush3.bf16.xpose.msra.mxu0 %v2382_v39  ;;  %v2445_v39 = vld [vmem:[%s2736_s17 + $0x2e0] sm:$0xff]  }
 0x1a3   : > { %2194 = vmatpush3.bf16.xpose.msra.mxu1 %v2383_v40  ;;  %2177 = vmatprep.subr.bf16.mxu0 %v2384_v42  ;;  %v2446_v40 = vld [vmem:[%s2736_s17 + $0x220] sm:$0xff]  }
 0x1a4   : > { %2195 = vmatprep.subr.bf16.mxu1 %v2385_v43  ;;  %v2447_v42 = vld [vmem:[%s2736_s17 + $0x2a0] sm:$0xff]   ;;  %v2448_v43 = vld [vmem:[%s2736_s17 + $0x268] sm:$0xff]  }
 0x1aa   : > { %2178 = vmatpush3.bf16.xpose.msra.mxu0 %v2386_v44  ;;  %v2449_v44 = vld [vmem:[%s2736_s17 + $0x2e8] sm:$0xff]  }
 0x1ab   : > { %2196 = vmatpush3.bf16.xpose.msra.mxu1 %v2387_v45  ;;  %2179 = vmatprep.subr.bf16.mxu0 %v2388_v46  ;;  %v2450_v45 = vld [vmem:[%s2736_s17 + $0x228] sm:$0xff]  }
 0x1ac   : > { %2197 = vmatprep.subr.bf16.mxu1 %v2389_v47  ;;  %v2451_v46 = vld [vmem:[%s2736_s17 + $0x2a8] sm:$0xff]   ;;  %v2452_v47 = vld [vmem:[%s2736_s17 + $0x270] sm:$0xff]  }
 0x1b2   : > { %2180 = vmatpush3.bf16.xpose.msra.mxu0 %v2390_v48  ;;  %v2453_v48 = vld [vmem:[%s2736_s17 + $0x2f0] sm:$0xff]  }
 0x1b3   : > { %2198 = vmatpush3.bf16.xpose.msra.mxu1 %v2391_v49  ;;  %2181 = vmatprep.subr.bf16.mxu0 %v2392_v50  ;;  %v2454_v49 = vld [vmem:[%s2736_s17 + $0x230] sm:$0xff]  }
 0x1b4   : > { %2199 = vmatprep.subr.bf16.mxu1 %v2393_v51  ;;  %v2455_v50 = vld [vmem:[%s2736_s17 + $0x2b0] sm:$0xff]   ;;  %v2456_v51 = vld [vmem:[%s2736_s17 + $0x278] sm:$0xff]  }
 0x1ba   : > { %2182 = vmatpush3.bf16.xpose.msra.mxu0 %v2394_v52  ;;  %v2457_v52 = vld [vmem:[%s2736_s17 + $0x2f8] sm:$0xff]  }
 0x1bb   : > { %2200 = vmatpush3.bf16.xpose.msra.mxu1 %v2395_v53  ;;  %2203 = vmatprep.subr.bf16.mxu0 %v2396_v54  ;;  %v2458_v53 = vld [vmem:[%s2736_s17 + $0x238] sm:$0xff]  }
 0x1bc   : > { %2221 = vmatprep.subr.bf16.mxu1 %v2397_v55  ;;  %v2459_v54 = vld [vmem:[%s2736_s17 + $0x2b8] sm:$0xff]   ;;  %v2460_v55 = vld [vmem:[%s2736_s17 + $0x340] sm:$0xff]  }
 0x1c1   : > { %2184 = vmatmul.mubr.bf16.vlgmr.msra.gmra.mrb[0].mxu0 %v2775_v41 }
 0x1c2   : > { %2202 = vmatmul.mubr.bf16.vlgmr.msra.gmra.mrb[0].mxu1 %v2775_v41  ;;  %2204 = vmatpush3.bf16.xpose.msra.mxu0 %v2398_v56  ;;  %v2461_v56 = vld [vmem:[%s2736_s17 + $0x3c0] sm:$0xff]  }
 0x1c3   : > { %2222 = vmatpush3.bf16.xpose.msra.mxu1 %v2399_v57  ;;  %2205 = vmatprep.subr.bf16.mxu0 %v2400_v58  ;;  %v2462_v57 = vld [vmem:[%s2736_s17 + $0x300] sm:$0xff]  }
 0x1c4   : > { %2223 = vmatprep.subr.bf16.mxu1 %v2401_v59  ;;  %2219 = vmatprep.mubr.bf16.mxu0 %v2775_v41  ;;  %v2463_v58 = vld [vmem:[%s2736_s17 + $0x380] sm:$0xff]   ;;  %v2464_v59 = vld [vmem:[%s2736_s17 + $0x348] sm:$0xff]  }
 0x1c5   : > { %2237 = vmatprep.mubr.bf16.mxu1 %v2775_v41 }
 0x1ca   : > { %2206 = vmatpush3.bf16.xpose.msra.mxu0 %v2402_v60  ;;  %v2465_v60 = vld [vmem:[%s2736_s17 + $0x3c8] sm:$0xff]  }
 0x1cb   : > { %2224 = vmatpush3.bf16.xpose.msra.mxu1 %v2403_v61  ;;  %2207 = vmatprep.subr.bf16.mxu0 %v2404_v62  ;;  %v2466_v61 = vld [vmem:[%s2736_s17 + $0x308] sm:$0xff]  }
 0x1cc   : > { %2225 = vmatprep.subr.bf16.mxu1 %v2405_v63  ;;  %v2467_v62 = vld [vmem:[%s2736_s17 + $0x388] sm:$0xff]   ;;  %v2468_v63 = vld [vmem:[%s2736_s17 + $0x350] sm:$0xff]  }
 0x1d2   : > { %2208 = vmatpush3.bf16.xpose.msra.mxu0 %v2406_v0  ;;  %v2469_v0 = vld [vmem:[%s2736_s17 + $0x3d0] sm:$0xff]  }
 0x1d3   : > { %2226 = vmatpush3.bf16.xpose.msra.mxu1 %v2407_v1  ;;  %2209 = vmatprep.subr.bf16.mxu0 %v2408_v2  ;;  %v2470_v1 = vld [vmem:[%s2736_s17 + $0x310] sm:$0xff]  }
 0x1d4   : > { %2227 = vmatprep.subr.bf16.mxu1 %v2409_v3  ;;  %v2471_v2 = vld [vmem:[%s2736_s17 + $0x390] sm:$0xff]   ;;  %v2472_v3 = vld [vmem:[%s2736_s17 + $0x358] sm:$0xff]  }
 0x1da   : > { %2210 = vmatpush3.bf16.xpose.msra.mxu0 %v2410_v4  ;;  %v2473_v4 = vld [vmem:[%s2736_s17 + $0x3d8] sm:$0xff]  }
 0x1db   : > { %2228 = vmatpush3.bf16.xpose.msra.mxu1 %v2411_v5  ;;  %2211 = vmatprep.subr.bf16.mxu0 %v2412_v6  ;;  %v2474_v5 = vld [vmem:[%s2736_s17 + $0x318] sm:$0xff]  }
 0x1dc   : > { %2229 = vmatprep.subr.bf16.mxu1 %v2413_v7  ;;  %v2475_v6 = vld [vmem:[%s2736_s17 + $0x398] sm:$0xff]   ;;  %v2476_v7 = vld [vmem:[%s2736_s17 + $0x360] sm:$0xff]  }
 0x1e2   : > { %2212 = vmatpush3.bf16.xpose.msra.mxu0 %v2414_v8  ;;  %v2477_v8 = vld [vmem:[%s2736_s17 + $0x3e0] sm:$0xff]  }
 0x1e3   : > { %2230 = vmatpush3.bf16.xpose.msra.mxu1 %v2415_v9  ;;  %2213 = vmatprep.subr.bf16.mxu0 %v2416_v10  ;;  %v2478_v9 = vld [vmem:[%s2736_s17 + $0x320] sm:$0xff]  }
 0x1e4   : > { %2231 = vmatprep.subr.bf16.mxu1 %v2417_v11  ;;  %v2479_v10 = vld [vmem:[%s2736_s17 + $0x3a0] sm:$0xff]   ;;  %v2480_v11 = vld [vmem:[%s2736_s17 + $0x368] sm:$0xff]  }
 0x1ea   : > { %2214 = vmatpush3.bf16.xpose.msra.mxu0 %v2418_v12  ;;  %v2481_v12 = vld [vmem:[%s2736_s17 + $0x3e8] sm:$0xff]  }
 0x1eb   : > { %2232 = vmatpush3.bf16.xpose.msra.mxu1 %v2419_v13  ;;  %2215 = vmatprep.subr.bf16.mxu0 %v2420_v14  ;;  %v2482_v13 = vld [vmem:[%s2736_s17 + $0x328] sm:$0xff]  }
 0x1ec   : > { %2233 = vmatprep.subr.bf16.mxu1 %v2421_v15  ;;  %v2483_v14 = vld [vmem:[%s2736_s17 + $0x3a8] sm:$0xff]   ;;  %v2484_v15 = vld [vmem:[%s2736_s17 + $0x370] sm:$0xff]  }
 0x1f2   : > { %2216 = vmatpush3.bf16.xpose.msra.mxu0 %v2422_v16  ;;  %v2485_v16 = vld [vmem:[%s2736_s17 + $0x3f0] sm:$0xff]  }
 0x1f3   : > { %2234 = vmatpush3.bf16.xpose.msra.mxu1 %v2423_v17  ;;  %2217 = vmatprep.subr.bf16.mxu0 %v2424_v18  ;;  %v2486_v17 = vld [vmem:[%s2736_s17 + $0x330] sm:$0xff]  }
 0x1f4   : > { %2235 = vmatprep.subr.bf16.mxu1 %v2425_v19  ;;  %v2487_v18 = vld [vmem:[%s2736_s17 + $0x3b0] sm:$0xff]   ;;  %v2488_v19 = vld [vmem:[%s2736_s17 + $0x378] sm:$0xff]  }
 0x1fa   : > { %2218 = vmatpush3.bf16.xpose.msra.mxu0 %v2426_v20  ;;  %v2489_v20 = vld [vmem:[%s2736_s17 + $0x3f8] sm:$0xff]  }
 0x1fb   : > { %2236 = vmatpush3.bf16.xpose.msra.mxu1 %v2427_v21  ;;  %2239 = vmatprep.subr.bf16.mxu0 %v2428_v22  ;;  %v2490_v21 = vld [vmem:[%s2736_s17 + $0x338] sm:$0xff]  }
 0x1fc   : > { %2257 = vmatprep.subr.bf16.mxu1 %v2429_v23  ;;  %v2491_v22 = vld [vmem:[%s2736_s17 + $0x3b8] sm:$0xff]  }
 0x201   : > { %2220 = vmatmul.mubr.bf16.vlgmr.msra.gmra.mrb[4].mxu0 %v2775_v41 }
 0x202   : > { %2238 = vmatmul.mubr.bf16.vlgmr.msra.gmra.mrb[4].mxu1 %v2775_v41  ;;  %2240 = vmatpush3.bf16.xpose.msra.mxu0 %v2430_v24 }
 0x203   : > { %2258 = vmatpush3.bf16.xpose.msra.mxu1 %v2431_v25  ;;  %2241 = vmatprep.subr.bf16.mxu0 %v2432_v26 }
 0x204   : > { %2259 = vmatprep.subr.bf16.mxu1 %v2433_v27  ;;  %2255 = vmatprep.mubr.bf16.mxu0 %v2775_v41 }
 0x205   : > { %2273 = vmatprep.mubr.bf16.mxu1 %v2775_v41 }
 0x20a   : > { %2242 = vmatpush3.bf16.xpose.msra.mxu0 %v2434_v28 }
 0x20b   : > { %2260 = vmatpush3.bf16.xpose.msra.mxu1 %v2435_v29  ;;  %2243 = vmatprep.subr.bf16.mxu0 %v2436_v30 }
 0x20c   : > { %2261 = vmatprep.subr.bf16.mxu1 %v2437_v31 }
 0x212   : > { %2244 = vmatpush3.bf16.xpose.msra.mxu0 %v2438_v32 }
 0x213   : > { %2262 = vmatpush3.bf16.xpose.msra.mxu1 %v2439_v33  ;;  %2245 = vmatprep.subr.bf16.mxu0 %v2440_v34 }
 0x214   : > { %2263 = vmatprep.subr.bf16.mxu1 %v2441_v35 }
 0x21a   : > { %2246 = vmatpush3.bf16.xpose.msra.mxu0 %v2442_v36 }
 0x21b   : > { %2264 = vmatpush3.bf16.xpose.msra.mxu1 %v2443_v37  ;;  %2247 = vmatprep.subr.bf16.mxu0 %v2444_v38 }
 0x21c   : > { %2265 = vmatprep.subr.bf16.mxu1 %v2445_v39  ;;  %v1601_v39 = vlaneseq }
 0x222   : > { %2248 = vmatpush3.bf16.xpose.msra.mxu0 %v2446_v40 }
 0x223   : > { %2266 = vmatpush3.bf16.xpose.msra.mxu1 %v2447_v42  ;;  %2249 = vmatprep.subr.bf16.mxu0 %v2448_v43 }
 0x224   : > { %2267 = vmatprep.subr.bf16.mxu1 %v2449_v44 }
 0x22a   : > { %2250 = vmatpush3.bf16.xpose.msra.mxu0 %v2450_v45 }
 0x22b   : > { %2268 = vmatpush3.bf16.xpose.msra.mxu1 %v2451_v46  ;;  %2251 = vmatprep.subr.bf16.mxu0 %v2452_v47 }
 0x22c   : > { %2269 = vmatprep.subr.bf16.mxu1 %v2453_v48  ;;  %v2920_v48 = vand.u32 127, %v1601_v39 }
 0x232   : > { %2252 = vmatpush3.bf16.xpose.msra.mxu0 %v2454_v49  ;;  %v1603_v49 = vadd.s32 128, %v2920_v48 }
 0x233   : > { %2270 = vmatpush3.bf16.xpose.msra.mxu1 %v2455_v50  ;;  %2253 = vmatprep.subr.bf16.mxu0 %v2456_v51  ;;  %v2924_v50 = vstv %s2161_s18 }
 0x234   : > { %2271 = vmatprep.subr.bf16.mxu1 %v2457_v52  ;;  %v1620_v51 = vadd.s32 %v2924_v50, %v2920_v48  ;;  %v1621_v52 = vadd.s32 %v2924_v50, %v1603_v49  ;;  %v1612_v49 = vadd.s32 1280, %v2920_v48 }
 0x236   : > { %vm1636_vm5 = vcmp.lt.s32.totalorder %v1620_v51, 4000  ;;  %vm1637_vm6 = vcmp.lt.s32.totalorder %v1621_v52, 4000 }
 0x23a   : > { %2254 = vmatpush3.bf16.xpose.msra.mxu0 %v2458_v53  ;;  %v1604_v53 = vadd.s32 256, %v2920_v48 }
 0x23b   : > { %2272 = vmatpush3.bf16.xpose.msra.mxu1 %v2459_v54  ;;  %2275 = vmatprep.subr.bf16.mxu0 %v2460_v55  ;;  %v2930_v54 = vstv %s2162_s19 }
 0x23c   : > { %2293 = vmatprep.subr.bf16.mxu1 %v2461_v56  ;;  %v1622_v55 = vadd.s32 %v2924_v50, %v1604_v53  ;;  %v1605_v56 = vadd.s32 384, %v2920_v48  ;;  %vm1886_vm7 = vcmp.eq.s32.totalorder %v1620_v51, %v2930_v54  ;;  %vm1887_vm8 = vcmp.eq.s32.totalorder %v1621_v52, %v2930_v54 }
 0x23e   : > { %vm1638_vm11 = vcmp.lt.s32.totalorder %v1622_v55, 4000  ;;  %vm1888_vm13 = vcmp.eq.s32.totalorder %v1622_v55, %v2930_v54 }
 0x241   : > { %2256 = vmatmul.mubr.bf16.vlgmr.msra.gmra.mrb[8].mxu0 %v2775_v41 }
 0x242   : > { %2274 = vmatmul.mubr.bf16.vlgmr.msra.gmra.mrb[8].mxu1 %v2775_v41  ;;  %2276 = vmatpush3.bf16.xpose.msra.mxu0 %v2462_v57  ;;  %v2934_v57 = vstv %s1803_s20 }
 0x243   : > { %2294 = vmatpush3.bf16.xpose.msra.mxu1 %v2463_v58  ;;  %2277 = vmatprep.subr.bf16.mxu0 %v2464_v59  ;;  %v1606_v58 = vadd.s32 512, %v2920_v48  ;;  %vm1805_vm10 = vcmp.eq.s32.totalorder %v1620_v51, %v2934_v57  ;;  %vm1806_vm12 = vcmp.eq.s32.totalorder %v1621_v52, %v2934_v57  ;;  %vm1807_vm0 = vcmp.eq.s32.totalorder %v1622_v55, %v2934_v57 }
 0x244   : > { %2295 = vmatprep.subr.bf16.mxu1 %v2465_v60  ;;  %2291 = vmatprep.mubr.bf16.mxu0 %v2775_v41 }
 0x245   : > { %2309 = vmatprep.mubr.bf16.mxu1 %v2775_v41 }
 0x24a   : > { %2278 = vmatpush3.bf16.xpose.msra.mxu0 %v2466_v61  ;;  %v1623_v61 = vadd.s32 %v2924_v50, %v1605_v56 }
 0x24b   : > { %2296 = vmatpush3.bf16.xpose.msra.mxu1 %v2467_v62  ;;  %2279 = vmatprep.subr.bf16.mxu0 %v2468_v63 }
 0x24c   : > { %2297 = vmatprep.subr.bf16.mxu1 %v2469_v0  ;;  %v1624_v0 = vadd.s32 %v2924_v50, %v1606_v58  ;;  %vm1639_vm14 = vcmp.lt.s32.totalorder %v1623_v61, 4000  ;;  %vm1889_vm1 = vcmp.eq.s32.totalorder %v1623_v61, %v2930_v54  ;;  %vm1808_vm4 = vcmp.eq.s32.totalorder %v1623_v61, %v2934_v57 }
 0x24e   : > { %vm1640_vm15 = vcmp.lt.s32.totalorder %v1624_v0, 4000  ;;  %vm1890_vm2 = vcmp.eq.s32.totalorder %v1624_v0, %v2930_v54 }
 0x252   : > { %2280 = vmatpush3.bf16.xpose.msra.mxu0 %v2470_v1  ;;  %v1607_v1 = vadd.s32 640, %v2920_v48 }
 0x253   : > { %2298 = vmatpush3.bf16.xpose.msra.mxu1 %v2471_v2  ;;  %2281 = vmatprep.subr.bf16.mxu0 %v2472_v3 }
 0x254   : > { %2299 = vmatprep.subr.bf16.mxu1 %v2473_v4 }
 0x25a   : > { %2282 = vmatpush3.bf16.xpose.msra.mxu0 %v2474_v5 }
 0x25b   : > { %2300 = vmatpush3.bf16.xpose.msra.mxu1 %v2475_v6  ;;  %2283 = vmatprep.subr.bf16.mxu0 %v2476_v7  ;;  %v1625_v7 = vadd.s32 %v2924_v50, %v1607_v1 }
 0x25c   : > { %2301 = vmatprep.subr.bf16.mxu1 %v2477_v8 }
 0x25d   : > { %vm1641_vm3 = vcmp.lt.s32.totalorder %v1625_v7, 4000 }
 0x262   : > { %2284 = vmatpush3.bf16.xpose.msra.mxu0 %v2478_v9 }
 0x263   : > { %2302 = vmatpush3.bf16.xpose.msra.mxu1 %v2479_v10  ;;  %2285 = vmatprep.subr.bf16.mxu0 %v2480_v11  ;;  %v1608_v10 = vadd.s32 768, %v2920_v48 }
 0x264   : > { %2303 = vmatprep.subr.bf16.mxu1 %v2481_v12 }
 0x26a   : > { %2286 = vmatpush3.bf16.xpose.msra.mxu0 %v2482_v13 }
 0x26b   : > { %2304 = vmatpush3.bf16.xpose.msra.mxu1 %v2483_v14  ;;  %2287 = vmatprep.subr.bf16.mxu0 %v2484_v15 }
 0x26c   : > { %2305 = vmatprep.subr.bf16.mxu1 %v2485_v16 }
 0x272   : > { %2288 = vmatpush3.bf16.xpose.msra.mxu0 %v2486_v17  ;;  %v1609_v17 = vadd.s32 896, %v2920_v48 }
 0x273   : > { %2306 = vmatpush3.bf16.xpose.msra.mxu1 %v2487_v18  ;;  %2289 = vmatprep.subr.bf16.mxu0 %v2488_v19  ;;  %v1626_v19 = vadd.s32 %v2924_v50, %v1608_v10 }
 0x274   : > { %2307 = vmatprep.subr.bf16.mxu1 %v2489_v20 }
 0x27a   : > { %2290 = vmatpush3.bf16.xpose.msra.mxu0 %v2490_v21 }
 0x27b   : > { %2308 = vmatpush3.bf16.xpose.msra.mxu1 %v2491_v22 }
 0x281   : > { %2292 = vmatmul.mubr.bf16.vlgmr.msra.gmra.mrb[12].mxu0 %v2775_v41 }
 0x282   : > { %2310 = vmatmul.mubr.bf16.vlgmr.msra.gmra.mrb[12].mxu1 %v2775_v41 }
 0x294   : > { %v1307_v23 = vpop.f32.mrb[0].mxu0 }
 0x295   : > { %v1348_v24 = vpop.f32.mrb[0].mxu1  ;;  %v1309_v25 = vpop.f32.mrb[1].mxu0  ;;  %v2937_v59 = vsel %vm1636_vm5, %v1307_v23, -1e+30  ;;  %vm1809_vm5 = vcmp.eq.s32.totalorder %v1624_v0, %v2934_v57  ;;  %v1610_v23 = vadd.s32 1024, %v2920_v48 }
 0x296   : > { %v2901_v26 = vpop.f32.mrb[1].mxu1  ;;  %v1311_v27 = vpop.f32.mrb[2].mxu0  ;;  %v2940_v60 = vsel %vm1637_vm6, %v1309_v25, -1e+30  ;;  %v1902_v62 = vsel %vm1886_vm7, %v2937_v59, 0.0  ;;  %v1821_v2 = vsel %vm1805_vm10, %v2937_v59, 0.0  ;;  %vm1891_vm6 = vcmp.eq.s32.totalorder %v1625_v7, %v2930_v54 }
 0x297   : > { %v1352_v28 = vpop.f32.mrb[2].mxu1  ;;  %v1312_v29 = vpop.f32.mrb[3].mxu0  ;;  %v1903_v63 = vsel %vm1887_vm8, %v2940_v60, 0.0  ;;  %v1822_v3 = vsel %vm1806_vm12, %v2940_v60, 0.0  ;;  %v1918_v4 = vsel %vm1669_vm9, %v1902_v62, 0.0  ;;  %v1837_v8 = vsel %vm1669_vm9, %v1821_v2, 0.0 }
 0x298   : > { %v1353_v30 = vpop.f32.mrb[3].mxu1  ;;  %v2953_v5 = vsel %vm1638_vm11, %v1348_v24, -1e+30  ;;  %v1919_v6 = vsel %vm1669_vm9, %v1903_v63, 0.0  ;;  %v1838_v9 = vsel %vm1669_vm9, %v1822_v3, 0.0  ;;  %v1627_v29 = vadd.s32 %v2924_v50, %v1609_v17 }
 0x299   : > { %v1904_v11 = vsel %vm1888_vm13, %v2953_v5, 0.0  ;;  %v1920_v12 = vadd.f32 %v1919_v6, %v1918_v4  ;;  %v2964_v13 = vsel %vm1639_vm14, %v2901_v26, -1e+30  ;;  %v1823_v15 = vsel %vm1807_vm0, %v2953_v5, 0.0 }
 0x29a   : > { %v1839_v16 = vadd.f32 %v1838_v9, %v1837_v8  ;;  %v1921_v18 = vsel %vm1669_vm9, %v1904_v11, 0.0  ;;  %v1905_v20 = vsel %vm1889_vm1, %v2964_v13, 0.0  ;;  %v1840_v24 = vsel %vm1669_vm9, %v1823_v15, 0.0 }
 0x29b   : > { %v1922_v21 = vadd.f32 %v1921_v18, %v1920_v12  ;;  %v1824_v26 = vsel %vm1808_vm4, %v2964_v13, 0.0  ;;  %v1923_v30 = vsel %vm1669_vm9, %v1905_v20, 0.0  ;;  %vm1642_vm7 = vcmp.lt.s32.totalorder %v1626_v19, 4000 }
 0x29c   : > { %v1841_v27 = vadd.f32 %v1840_v24, %v1839_v16  ;;  %vm1810_vm8 = vcmp.eq.s32.totalorder %v1625_v7, %v2934_v57  ;;  %vm1811_vm10 = vcmp.eq.s32.totalorder %v1626_v19, %v2934_v57  ;;  %vm1892_vm11 = vcmp.eq.s32.totalorder %v1626_v19, %v2930_v54 }
 0x29d   : > { %vm1643_vm12 = vcmp.lt.s32.totalorder %v1627_v29, 4000  ;;  %vm1812_vm14 = vcmp.eq.s32.totalorder %v1627_v29, %v2934_v57  ;;  %v3011_v58 = vsel %vm1669_vm9, %v2937_v59, -inf  ;;  %v3015_v63 = vadd.s32 %v2924_v50, %v1612_v49 }
 0x29e   : > { %v3019_v0 = vsel %vm1669_vm9, %v2953_v5, -inf  ;;  %v3030_v3 = vsel %vm1669_vm9, %v2940_v60, -inf  ;;  %v3037_v7 = vsel %vm1669_vm9, %v2964_v13, -inf }
 0x29f   : > { %vm1815_vm4 = vcmp.eq.s32.totalorder %v3015_v63, %v2934_v57 }
 0x2d4   : > { %v2903_v31 = vpop.f32.mrb[4].mxu0 }
 0x2d5   : > { %v2905_v32 = vpop.f32.mrb[4].mxu1  ;;  %v2907_v33 = vpop.f32.mrb[5].mxu0  ;;  %v2968_v14 = vsel %vm1640_vm15, %v2903_v31, -1e+30  ;;  %vm1893_vm15 = vcmp.eq.s32.totalorder %v1627_v29, %v2930_v54 }
 0x2d6   : > { %v2909_v34 = vpop.f32.mrb[5].mxu1  ;;  %v1393_v35 = vpop.f32.mrb[6].mxu0  ;;  %v1906_v22 = vsel %vm1890_vm2, %v2968_v14, 0.0  ;;  %v2982_v25 = vsel %vm1641_vm3, %v2907_v33, -1e+30  ;;  %v1825_v28 = vsel %vm1809_vm5, %v2968_v14, 0.0  ;;  %vm1896_vm5 = vcmp.eq.s32.totalorder %v3015_v63, %v2930_v54 }
 0x2d7   : > { %v1434_v41 = vpop.f32.mrb[6].mxu1  ;;  %v1394_v36 = vpop.f32.mrb[7].mxu0  ;;  %v1925_v31 = vsel %vm1669_vm9, %v1906_v22, 0.0  ;;  %v1924_v35 = vadd.f32 %v1923_v30, %v1922_v21  ;;  %v1907_v33 = vsel %vm1891_vm6, %v2982_v25, 0.0  ;;  %v2999_v51 = vsel %vm1642_vm7, %v2905_v32, -1e+30 }
 0x2d8   : > { %v1435_v37 = vpop.f32.mrb[7].mxu1  ;;  %v1628_v41 = vadd.s32 %v2924_v50, %v1610_v23  ;;  %v1611_v36 = vadd.s32 1152, %v2920_v48  ;;  %v1927_v52 = vsel %vm1669_vm9, %v1907_v33, 0.0  ;;  %v1613_v32 = vadd.s32 1408, %v2920_v48 }
 0x2d9   : > { %v1842_v37 = vsel %vm1669_vm9, %v1824_v26, 0.0  ;;  %v1908_v61 = vsel %vm1892_vm11, %v2999_v51, 0.0  ;;  %v3022_v1 = vsel %vm1643_vm12, %v2909_v34, -1e+30  ;;  %v1827_v4 = vsel %vm1811_vm10, %v2999_v51, 0.0 }
 0x2da   : > { %vm1644_vm13 = vcmp.lt.s32.totalorder %v1628_v41, 4000  ;;  %v1629_v55 = vadd.s32 %v2924_v50, %v1611_v36  ;;  %vm1894_vm0 = vcmp.eq.s32.totalorder %v1628_v41, %v2930_v54  ;;  %v1929_v34 = vsel %vm1669_vm9, %v1908_v61, 0.0 }
 0x2db   : > { %vm1813_vm2 = vcmp.eq.s32.totalorder %v1628_v41, %v2934_v57  ;;  %v1909_v8 = vsel %vm1893_vm15, %v3022_v1, 0.0  ;;  %vm1646_vm3 = vcmp.lt.s32.totalorder %v3015_v63, 4000  ;;  %v1848_v11 = vsel %vm1669_vm9, %v1827_v4, 0.0 }
 0x2dc   : > { %vm1645_vm1 = vcmp.lt.s32.totalorder %v1629_v55, 4000  ;;  %vm1895_vm6 = vcmp.eq.s32.totalorder %v1629_v55, %v2930_v54  ;;  %v1828_v15 = vsel %vm1812_vm14, %v3022_v1, 0.0  ;;  %vm1814_vm7 = vcmp.eq.s32.totalorder %v1629_v55, %v2934_v57 }
 0x2dd   : > { %v1931_v18 = vsel %vm1669_vm9, %v1909_v8, 0.0  ;;  %v1674_v20 = vsel %vm1669_vm9, %v2968_v14, -inf  ;;  %v1616_v23 = vadd.s32 1792, %v2920_v48  ;;  %v1678_v24 = vsel %vm1669_vm9, %v2999_v51, -inf }
 0x2de   : > { %v1850_v26 = vsel %vm1669_vm9, %v1828_v15, 0.0  ;;  %v1676_v29 = vsel %vm1669_vm9, %v2982_v25, -inf  ;;  %v1680_v33 = vsel %vm1669_vm9, %v3022_v1, -inf  ;;  %v1679_v49 = vmax.f32 %v3019_v0, %v1678_v24 }
 0x2df   : > { %v1681_v55 = vmax.f32 %v3037_v7, %v1680_v33 }
 0x314   : > { %v2911_v38 = vpop.f32.mrb[8].mxu0 }
 0x315   : > { %v2913_v40 = vpop.f32.mrb[8].mxu1  ;;  %v2915_v42 = vpop.f32.mrb[9].mxu0  ;;  %v3025_v2 = vsel %vm1644_vm13, %v2911_v38, -1e+30  ;;  %v3042_v38 = vadd.s32 %v2924_v50, %v1613_v32 }
 0x316   : > { %v2917_v43 = vpop.f32.mrb[9].mxu1  ;;  %v1475_v44 = vpop.f32.mrb[10].mxu0  ;;  %v1910_v10 = vsel %vm1894_vm0, %v3025_v2, 0.0  ;;  %v3055_v12 = vsel %vm1645_vm1, %v2915_v42, -1e+30  ;;  %v1829_v17 = vsel %vm1813_vm2, %v3025_v2, 0.0 }
 0x317   : > { %v1516_v45 = vpop.f32.mrb[10].mxu1  ;;  %v1476_v46 = vpop.f32.mrb[11].mxu0  ;;  %v1844_v44 = vsel %vm1669_vm9, %v1825_v28, 0.0  ;;  %v1933_v19 = vsel %vm1669_vm9, %v1910_v10, 0.0  ;;  %v1614_v42 = vadd.s32 1536, %v2920_v48  ;;  %v1911_v22 = vsel %vm1895_vm6, %v3055_v12, 0.0 }
 0x318   : > { %v1517_v47 = vpop.f32.mrb[11].mxu1  ;;  %v1843_v45 = vadd.f32 %v1842_v37, %v1841_v27  ;;  %v1926_v46 = vadd.f32 %v1925_v31, %v1924_v35  ;;  %vm1816_vm10 = vcmp.eq.s32.totalorder %v3042_v38, %v2934_v57  ;;  %v1852_v27 = vsel %vm1669_vm9, %v1829_v17, 0.0 }
 0x319   : > { %v1826_v47 = vsel %vm1810_vm8, %v2982_v25, 0.0  ;;  %vm1647_vm8 = vcmp.lt.s32.totalorder %v3042_v38, 4000  ;;  %v1615_v28 = vadd.s32 1664, %v2920_v48  ;;  %v1830_v35 = vsel %vm1814_vm7, %v3055_v12, 0.0 }
 0x31a   : > { %v1845_v53 = vadd.f32 %v1844_v44, %v1843_v45  ;;  %v1846_v56 = vsel %vm1669_vm9, %v1826_v47, 0.0  ;;  %v1928_v62 = vadd.f32 %v1927_v52, %v1926_v46  ;;  %v3088_v41 = vsel %vm1646_vm3, %v2913_v40, -1e+30 }
 0x31b   : > { %v1935_v36 = vsel %vm1669_vm9, %v1911_v22, 0.0  ;;  %v1632_v37 = vadd.s32 %v2924_v50, %v1614_v42  ;;  %vm1897_vm11 = vcmp.eq.s32.totalorder %v3042_v38, %v2930_v54  ;;  %v3095_v45 = vadd.s32 %v2924_v50, %v1616_v23 }
 0x31c   : > { %v1847_v6 = vadd.f32 %v1846_v56, %v1845_v53  ;;  %v1930_v9 = vadd.f32 %v1929_v34, %v1928_v62  ;;  %v1617_v46 = vadd.s32 1920, %v2920_v48  ;;  %v1675_v47 = vmax.f32 %v3011_v58, %v1674_v20 }
 0x31d   : > { %v1854_v40 = vsel %vm1669_vm9, %v1830_v35, 0.0  ;;  %v1633_v52 = vadd.s32 %v2924_v50, %v1615_v28  ;;  %v1677_v53 = vmax.f32 %v3030_v3, %v1676_v29  ;;  %v1912_v56 = vsel %vm1896_vm5, %v3088_v41, 0.0 }
 0x31e   : > { %v1849_v16 = vadd.f32 %v1848_v11, %v1847_v6  ;;  %v1932_v21 = vadd.f32 %v1931_v18, %v1930_v9  ;;  %v3111_v58 = vsel %vm1647_vm8, %v2917_v43, -1e+30  ;;  %vm1648_vm12 = vcmp.lt.s32.totalorder %v1632_v37, 4000 }
 0x31f   : > { %vm1817_vm13 = vcmp.eq.s32.totalorder %v1632_v37, %v2934_v57  ;;  %vm1898_vm14 = vcmp.eq.s32.totalorder %v1632_v37, %v2930_v54  ;;  %v1831_v61 = vsel %vm1815_vm4, %v3088_v41, 0.0  ;;  %vm1650_vm15 = vcmp.lt.s32.totalorder %v3095_v45, 4000 }
 0x320   : > { %v1851_v30 = vadd.f32 %v1850_v26, %v1849_v16  ;;  %v1934_v31 = vadd.f32 %v1933_v19, %v1932_v21  ;;  %v3121_v0 = vadd.s32 %v2924_v50, %v1617_v46  ;;  %v1682_v43 = vsel %vm1669_vm9, %v3025_v2, -inf }
 0x321   : > { %v1937_v3 = vsel %vm1669_vm9, %v1912_v56, 0.0  ;;  %vm1649_vm0 = vcmp.lt.s32.totalorder %v1633_v52, 4000  ;;  %vm1819_vm1 = vcmp.eq.s32.totalorder %v3095_v45, %v2934_v57  ;;  %v1686_v4 = vsel %vm1669_vm9, %v3088_v41, -inf }
 0x322   : > { %v1853_v44 = vadd.f32 %v1852_v27, %v1851_v30  ;;  %v1936_v32 = vadd.f32 %v1935_v36, %v1934_v31  ;;  %v1684_v63 = vsel %vm1669_vm9, %v3055_v12, -inf  ;;  %v1913_v50 = vsel %vm1897_vm11, %v3111_v58, 0.0 }
 0x323   : > { %v1856_v7 = vsel %vm1669_vm9, %v1831_v61, 0.0  ;;  %v1688_v34 = vsel %vm1669_vm9, %v3111_v58, -inf  ;;  %v1832_v8 = vsel %vm1816_vm10, %v3111_v58, 0.0  ;;  %vm1900_vm2 = vcmp.eq.s32.totalorder %v3095_v45, %v2930_v54 }
 0x324   : > { %v1855_v62 = vadd.f32 %v1854_v40, %v1853_v44  ;;  %v1938_v6 = vadd.f32 %v1937_v3, %v1936_v32  ;;  %vm1818_vm3 = vcmp.eq.s32.totalorder %v1633_v52, %v2934_v57  ;;  %vm1899_vm4 = vcmp.eq.s32.totalorder %v1633_v52, %v2930_v54 }
 0x325   : > { %vm1651_vm5 = vcmp.lt.s32.totalorder %v3121_v0, 4000  ;;  %vm1820_vm6 = vcmp.eq.s32.totalorder %v3121_v0, %v2934_v57  ;;  %v1683_v10 = vmax.f32 %v1675_v47, %v1682_v43  ;;  %v1687_v11 = vmax.f32 %v1679_v49, %v1686_v4 }
 0x326   : > { %v1857_v9 = vadd.f32 %v1856_v7, %v1855_v62  ;;  %v1685_v15 = vmax.f32 %v1677_v53, %v1684_v63  ;;  %v1939_v16 = vsel %vm1669_vm9, %v1913_v50, 0.0  ;;  %v1689_v17 = vmax.f32 %v1681_v55, %v1688_v34 }
 0x327   : > { %v1858_v18 = vsel %vm1669_vm9, %v1832_v8, 0.0  ;;  %v1940_v19 = vadd.f32 %v1939_v16, %v1938_v6  ;;  %vm1901_vm7 = vcmp.eq.s32.totalorder %v3121_v0, %v2930_v54  ;;  %vm1800_vm8 = vcmask 0  }
 0x328   : > { %v1859_v28 = vadd.f32 %v1858_v18, %v1857_v9  ;;  %vm1878_vm10 = vcmp.eq.s32.totalorder %v2920_v48, 0  ;;  %vm1882_vm11 = vcmask 8192  }
 0x354   : > { %v1553_v38 = vpop.f32.mrb[12].mxu0 }
 0x355   : > { %v3153_v42 = vsel %vm1648_vm12, %v1553_v38, -1e+30  ;;  %v1594_v20 = vpop.f32.mrb[12].mxu1  ;;  %v1555_v21 = vpop.f32.mrb[13].mxu0  ;;  %vm1959_vm12 = vcmp.eq.s32.totalorder %v2920_v48, 1 }
 0x356   : > { %v1690_v22 = vsel %vm1669_vm9, %v3153_v42, -inf  ;;  %v1833_v23 = vsel %vm1817_vm13, %v3153_v42, 0.0  ;;  %v1914_v24 = vsel %vm1898_vm14, %v3153_v42, 0.0  ;;  %v3165_v26 = vsel %vm1650_vm15, %v1594_v20, -1e+30  ;;  %v1596_v27 = vpop.f32.mrb[13].mxu1 }
 0x357   : > { %v1860_v29 = vsel %vm1669_vm9, %v1833_v23, 0.0  ;;  %v1941_v30 = vsel %vm1669_vm9, %v1914_v24, 0.0  ;;  %v1694_v31 = vsel %vm1669_vm9, %v3165_v26, -inf  ;;  %v1557_v35 = vpop.f32.mrb[14].mxu0  ;;  %v1598_v33 = vpop.f32.mrb[14].mxu1  ;;  %v1691_v49 = vmax.f32 %v1683_v10, %v1690_v22 }
 0x358   : > { %v1942_v36 = vadd.f32 %v1941_v30, %v1940_v19  ;;  %v3172_v44 = vsel %vm1649_vm0, %v1555_v21, -1e+30  ;;  %v3176_v37 = vsel %vm1651_vm5, %v1596_v27, -1e+30  ;;  %v1558_v46 = vpop.f32.mrb[15].mxu0  ;;  %v1599_v47 = vpop.f32.mrb[15].mxu1  ;;  %v1695_v62 = vmax.f32 %v1687_v11, %v1694_v31 }
 0x359   : > { %v1692_v40 = vsel %vm1669_vm9, %v3172_v44, -inf  ;;  %v1834_v53 = vsel %vm1818_vm3, %v3172_v44, 0.0  ;;  %v1915_v55 = vsel %vm1899_vm4, %v3172_v44, 0.0  ;;  %v1696_v56 = vsel %vm1669_vm9, %v3176_v37, -inf  ;;  %v3209_v20 = vld [vmem:[#allocation3] sm:$0x1] }
 0x35a   : > { %v1943_v32 = vsel %vm1669_vm9, %v1915_v55, 0.0  ;;  %v1693_v61 = vmax.f32 %v1685_v15, %v1692_v40  ;;  %v1697_v43 = vmax.f32 %v1689_v17, %v1696_v56  ;;  %v1835_v3 = vsel %vm1819_vm1, %v3165_v26, 0.0  ;;  %v1877_v40 = vld [vmem:[#allocation5] sm:$0x1] }
 0x35b   : > { %v1861_v4 = vadd.f32 %v1860_v29, %v1859_v28  ;;  %v1862_v63 = vsel %vm1669_vm9, %v1834_v53, 0.0  ;;  %v1916_v52 = vsel %vm1900_vm2, %v3165_v26, 0.0  ;;  %v1836_v7 = vsel %vm1820_vm6, %v3176_v37, 0.0 }
 0x35c   : > { %v1698_v50 = vmax.f32 %v1691_v49, %v1693_v61  ;;  %v1699_v6 = vmax.f32 %v1695_v62, %v1697_v43  ;;  %v1944_v8 = vadd.f32 %v1943_v32, %v1942_v36  ;;  %v1864_v10 = vsel %vm1669_vm9, %v1835_v3, 0.0 }
 0x35d   : > { %v1863_v34 = vadd.f32 %v1862_v63, %v1861_v4  ;;  %v1866_v15 = vsel %vm1669_vm9, %v1836_v7, 0.0  ;;  %v1945_v45 = vsel %vm1669_vm9, %v1916_v52, 0.0  ;;  %v1917_v38 = vsel %vm1901_vm7, %v3176_v37, 0.0 }
 0x35e   : > { %v1700_v9 = vmax.f32 %v1698_v50, %v1699_v6  ;;  %v1946_v17 = vadd.f32 %v1945_v45, %v1944_v8  ;;  %v1947_v57 = vsel %vm1669_vm9, %v1917_v38, 0.0  ;;  %v2615_v19 = vmov 0  }
 0x35f   : > { %v1865_v11 = vadd.f32 %v1864_v10, %v1863_v34  ;;  %2363 = vset.pattern.permute.xlu0 %v2615_v19  ;;  %v3224_v3 = vshrl.u32 %v1601_v39, 7 }
 0x360   : > { %1701 = vmax.xlane.f32.xlu0 %v1700_v9  ;;  %v1948_v18 = vadd.f32 %v1947_v57, %v1946_v17 }
 0x361   : > { %v1867_v16 = vadd.f32 %v1866_v15, %v1865_v11  ;;  %v1716_v4 = vsub.s32 0, %v3224_v3 }
 0x363   : > { %1868 = vadd.xlane.f32.xlu1 %v1867_v16 }
 0x367   : > { %1949 = vadd.xlane.f32.xlu1 %v1948_v18 }
 0x3ed   : > { %v1702_v54 = vpop.xlane.xlu0 %1701 }
 0x3ee   : > { %v3212_v0 = vmax.f32 %v3209_v20, %v1702_v54 }
 0x3f0   : > { %v1705_v21 = vsub.f32 %v3209_v20, %v3212_v0  ;;  %1802 = vst.msk [vmem:[#allocation3] sm:$0x1] %vm1800_vm8, %v3212_v0  ;;  %v1869_v22 = vpop.xlane.xlu1 %1868  ;;  %1711 = vperm.xlu0 %2363, %v3212_v0  }
 0x3f1   : > { %v1870_v23 = vrot.slane %v1869_v22, 4 }
 0x3f3   : > { %v1871_v24 = vadd.f32 %v1870_v23, %v1869_v22 }
 0x3f4   : > { %v1950_v27 = vpop.xlane.xlu1 %1949 }
 0x3f5   : > { %v1872_v28 = vrot.slane %v1871_v24, 2  ;;  %v1951_v29 = vrot.slane %v1950_v27, 4 }
 0x3f7   : > { %v1952_v30 = vadd.f32 %v1951_v29, %v1950_v27  ;;  %v1873_v31 = vadd.f32 %v1872_v28, %v1871_v24 }
 0x3f9   : > { %v1953_v35 = vrot.slane %v1952_v30, 2  ;;  %v1874_v33 = vrot.slane %v1873_v31, 1 }
 0x3fb   : > { %v1875_v36 = vadd.f32 %v1874_v33, %v1873_v31  ;;  %v1954_v46 = vadd.f32 %v1953_v35, %v1952_v30 }
 0x3fd   : > { %2311 = vpush %v1875_v36  ;;  %v1955_v47 = vrot.slane %v1954_v46, 1 }
 0x3ff   : > { %v1956_v49 = vadd.f32 %v1955_v47, %v1954_v46 }
 0x401   : > { %2313 = vpush %v1956_v49 }
 0x42e   : > { %s2312_s21 = spop %2311 }
 0x42f   : > { %v1879_v53 = vstv %s2312_s21 }
 0x430   : > { %v1880_v55 = vsel %vm1878_vm10, %v1879_v53, 0.0 }
 0x431   : > { %v1881_v56 = vadd.f32 %v1880_v55, %v1877_v40 }
 0x432   : > { %s2314_s22 = spop %2313 }
 0x433   : > { %1883 = vst.msk [vmem:[#allocation5] sm:$0x1] %vm1882_vm11, %v1881_v56  ;;  %v1960_v32 = vstv %s2314_s22 }
 0x434   : > { %v1961_v62 = vsel %vm1959_vm12, %v1960_v32, 0.0 }
 0x43a   : > { %v1958_v61 = vld [vmem:[#allocation5] sm:$0x1] }
 0x43b   : > { %v1962_v43 = vadd.f32 %v1961_v62, %v1958_v61 }
 0x43d   : > { %1963 = vst.msk [vmem:[#allocation5] sm:$0x1] %vm1882_vm11, %v1962_v43 }
 0x46f   : > { %v1712_v63 = vpop.permute.xlu0 %1711 }
 0x470   : > { %v3229_v50 = vrot.slane %v1712_v63, %v1716_v4 }
 0x472   : > { %v1718_v6 = vsub.f32 %v2937_v59, %v3229_v50  ;;  %v1719_v48 = vsub.f32 %v2940_v60, %v3229_v50  ;;  %v1720_v52 = vsub.f32 %v2953_v5, %v3229_v50  ;;  %v1721_v39 = vsub.f32 %v2964_v13, %v3229_v50 }
 0x473   : > { %v1722_v7 = vsub.f32 %v2968_v14, %v3229_v50  ;;  %v1723_v10 = vsub.f32 %v2982_v25, %v3229_v50  ;;  %v1724_v59 = vsub.f32 %v2999_v51, %v3229_v50  ;;  %v1725_v5 = vsub.f32 %v3022_v1, %v3229_v50 }
 0x474   : > { %v1734_v34 = vmul.f32 1.442695, %v1718_v6  ;;  %v1736_v8 = vmul.f32 1.442695, %v1719_v48  ;;  %v1738_v9 = vmul.f32 1.442695, %v1720_v52  ;;  %v1726_v14 = vsub.f32 %v3025_v2, %v3229_v50 }
 0x475   : > { %v1740_v11 = vmul.f32 1.442695, %v1721_v39  ;;  %v1742_v60 = vmul.f32 1.442695, %v1722_v7  ;;  %v1744_v13 = vmul.f32 1.442695, %v1723_v10  ;;  %v1727_v25 = vsub.f32 %v3055_v12, %v3229_v50 }
 0x476   : > { %2492 = vpow2.f32 %v1734_v34  ;;  %v1746_v15 = vmul.f32 1.442695, %v1724_v59  ;;  %v1748_v45 = vmul.f32 1.442695, %v1725_v5  ;;  %v1728_v51 = vsub.f32 %v3088_v41, %v3229_v50 }
 0x477   : > { %2494 = vpow2.f32 %v1736_v8  ;;  %v1750_v16 = vmul.f32 1.442695, %v1726_v14  ;;  %v1729_v1 = vsub.f32 %v3111_v58, %v3229_v50  ;;  %v1752_v57 = vmul.f32 1.442695, %v1727_v25 }
 0x478   : > { %2496 = vpow2.f32 %v1738_v9  ;;  %v1730_v54 = vsub.f32 %v3153_v42, %v3229_v50  ;;  %v1754_v41 = vmul.f32 1.442695, %v1728_v51  ;;  %v1731_v58 = vsub.f32 %v3172_v44, %v3229_v50 }
 0x479   : > { %2498 = vpow2.f32 %v1740_v11  ;;  %v1756_v27 = vmul.f32 1.442695, %v1729_v1  ;;  %v1732_v31 = vsub.f32 %v3165_v26, %v3229_v50  ;;  %v1733_v46 = vsub.f32 %v3176_v37, %v3229_v50  ;;  %v1704_v1 = vld [vmem:[#allocation4] sm:$0x1] }
 0x47a   : > { %2500 = vpow2.f32 %v1742_v60  ;;  %v1758_v42 = vmul.f32 1.442695, %v1730_v54  ;;  %v1760_v44 = vmul.f32 1.442695, %v1731_v58 }
 0x47b   : > { %2502 = vpow2.f32 %v1744_v13  ;;  %v1762_v53 = vmul.f32 1.442695, %v1732_v31  ;;  %v1764_v32 = vmul.f32 1.442695, %v1733_v46 }
 0x47c   : > { %2504 = vpow2.f32 %v1746_v15 }
 0x47d   : > { %2506 = vpow2.f32 %v1748_v45 }
 0x47e   : > { %2508 = vpow2.f32 %v1750_v16 }
 0x47f   : > { %2510 = vpow2.f32 %v1752_v57 }
 0x480   : > { %v2493_v38 = vpop.eup %2492  ;;  %2512 = vpow2.f32 %v1754_v41  ;;  %v1969_v41 = vld [vmem:[#allocation3] sm:$0x1] (!%p2163_p12) }
 0x481   : > { %v2495_v17 = vpop.eup %2494  ;;  %v1766_v2 = vsel %vm1669_vm9, %v2493_v38, 0.0  ;;  %2514 = vpow2.f32 %v1756_v27  ;;  %v1706_v38 = vmul.f32 1.442695, %v1705_v21  ;;  %v1968_v21 = vld [vmem:[#allocation5] sm:$0x1] (!%p2163_p12) }
 0x482   : > { %v2497_v18 = vpop.eup %2496  ;;  %v1767_v19 = vsel %vm1669_vm9, %v2495_v17, 0.0  ;;  %2516 = vpow2.f32 %v1758_v42 }
 0x483   : > { %v2499_v12 = vpop.eup %2498  ;;  %v1768_v22 = vadd.f32 %v1767_v19, %v1766_v2  ;;  %v1769_v23 = vsel %vm1669_vm9, %v2497_v18, 0.0  ;;  %2518 = vpow2.f32 %v1760_v44 }
 0x484   : > { %v2501_v24 = vpop.eup %2500  ;;  %v1771_v29 = vsel %vm1669_vm9, %v2499_v12, 0.0  ;;  %2520 = vpow2.f32 %v1762_v53  ;;  %v2616_v12 = vmov (!%p2163_p12), 0  }
 0x485   : > { %v1770_v28 = vadd.f32 %v1769_v23, %v1768_v22  ;;  %v2503_v30 = vpop.eup %2502  ;;  %v1773_v33 = vsel %vm1669_vm9, %v2501_v24, 0.0  ;;  %2522 = vpow2.f32 %v1764_v32  ;;  %2526 = vset.pattern.permute.xlu0 (!%p2163_p12), %v2616_v12 }
 0x486   : > { %v2505_v36 = vpop.eup %2504  ;;  %v1775_v49 = vsel %vm1669_vm9, %v2503_v30, 0.0  ;;  %2524 = vpow2.f32 %v1706_v38 }
 0x487   : > { %v1772_v35 = vadd.f32 %v1771_v29, %v1770_v28  ;;  %v2507_v40 = vpop.eup %2506  ;;  %v1777_v26 = vsel %vm1669_vm9, %v2505_v36, 0.0 }
 0x488   : > { %v2509_v56 = vpop.eup %2508  ;;  %v1779_v62 = vsel %vm1669_vm9, %v2507_v40, 0.0 }
 0x489   : > { %v1774_v47 = vadd.f32 %v1773_v33, %v1772_v35  ;;  %v2511_v43 = vpop.eup %2510  ;;  %v1781_v63 = vsel %vm1669_vm9, %v2509_v56, 0.0 }
 0x48a   : > { %v2513_v50 = vpop.eup %2512  ;;  %v1783_v48 = vsel %vm1669_vm9, %v2511_v43, 0.0 }
 0x48b   : > { %v1776_v55 = vadd.f32 %v1775_v49, %v1774_v47  ;;  %v2515_v52 = vpop.eup %2514  ;;  %v1785_v7 = vsel %vm1669_vm9, %v2513_v50, 0.0 }
 0x48c   : > { %v2517_v34 = vpop.eup %2516  ;;  %v1787_v9 = vsel %vm1669_vm9, %v2515_v52, 0.0 }
 0x48d   : > { %v1778_v61 = vadd.f32 %v1777_v26, %v1776_v55  ;;  %v2519_v10 = vpop.eup %2518  ;;  %v1789_v59 = vsel %vm1669_vm9, %v2517_v34, 0.0 }
 0x48e   : > { %v2521_v60 = vpop.eup %2520  ;;  %v1791_v13 = vsel %vm1669_vm9, %v2519_v10, 0.0 }
 0x48f   : > { %v1780_v37 = vadd.f32 %v1779_v62, %v1778_v61  ;;  %v2523_v14 = vpop.eup %2522  ;;  %v1793_v25 = vsel %vm1669_vm9, %v2521_v60, 0.0 }
 0x490   : > { %v1795_v51 = vsel %vm1669_vm9, %v2523_v14, 0.0  ;;  %v2525_v17 = vpop.eup %2524 }
 0x491   : > { %v1782_v6 = vadd.f32 %v1781_v63, %v1780_v37  ;;  %v1708_v57 = vmul.f32 %v2525_v17, %v1704_v1 }
 0x493   : > { %v1784_v39 = vadd.f32 %v1783_v48, %v1782_v6 }
 0x495   : > { %v1786_v8 = vadd.f32 %v1785_v7, %v1784_v39 }
 0x497   : > { %v1788_v11 = vadd.f32 %v1787_v9, %v1786_v8 }
 0x499   : > { %v1790_v5 = vadd.f32 %v1789_v59, %v1788_v11 }
 0x49b   : > { %v1792_v15 = vadd.f32 %v1791_v13, %v1790_v5 }
 0x49d   : > { %v1794_v45 = vadd.f32 %v1793_v25, %v1792_v15 }
 0x49f   : > { %v1796_v16 = vadd.f32 %v1795_v51, %v1794_v45 }
 0x4a1   : > { %1797 = vadd.xlane.f32.xlu1 %v1796_v16 }
 0x52b   : > { %1967 = sbr.rel (%p2163_p12) target bundleno = 1485 (0x5cd), region = 48 }
 0x52e   : > { %v1798_v2 = vpop.xlane.xlu1 %1797 }
 0x52f   : > { %v1799_v18 = vadd.f32 %v1798_v2, %v1708_v57 }
 0x531   : > { %1801 = vst.msk [vmem:[#allocation4] sm:$0x1] %vm1800_vm8, %v1799_v18 }
 0x538   : > { %v1970_v19 = vld [vmem:[#allocation4] sm:$0x1] }
 0x539   : > { %2527 = vlog2.f32 %v1970_v19 }
 0x543   : > { %v2528_v54 = vpop.eup %2527 }
 0x544   : > { %v1972_v22 = vmul.f32 0.6931472, %v2528_v54 }
 0x546   : > { %v1973_v20 = vadd.f32 %v1972_v22, %v1969_v41 }
 0x548   : > { %1976 = vperm.xlu0 %2526, %v1973_v20  }
 0x5c7   : > { %v1977_v0 = vpop.permute.xlu0 %1976 }
 0x5c8   : > { %v1982_v23 = vrot.slane %v1977_v0, %v1716_v4 }
 0x5ca   : > { %v1983_v24 = vsub.f32 %v1968_v21, %v1982_v23 }
 0x5cc   : > { %1984 = vst.msk [vmem:[%s3308_s5] sm:$0x1] %vm1882_vm11, %v1983_v24 }
 0x5cd PF: > { %p21_p13 = scmp.ge.s32.totalorder %s2672_s27, 4   ;;  %s3312_s23 = smov %s2599_s24 }
 0x5ce   : > { %s3313_s24 = smov %s2603_s0  ;;  %s3314_s0 = smov %s2682_s30 }
 0x5cf   : > { %s3315_s25 = smov %s2672_s27  ;;  %23 = sbr.rel (!%p21_p13) target bundleno = 18 (0x12), region = 80 }
 0x5d6   :  { %1996 = vsyncpa [#allocation9], 1 }
 0x5d7   :  { %1998 = vsyncpa [#allocation9 + $0x1], 1 }

</bundles_post_ra>
